<compile_context>
chip_gen: v7x
topology: tpu7x:2x2x1
jax: 0.10.0
libtpu: 0.0.40
codegen_flags: <defaults>
</compile_context>

<pallas_src>
import functools

import jax
import jax.numpy as jnp
from jax.experimental import pallas as pl
from jax.experimental.pallas import tpu as pltpu

FEATURE_SIZE = 1280          # efficientnet_v2_s.classifier[1].in_features
STEM_CHANNELS = 32
HIDDEN = 128                 # per-head hidden width
HEAD_OUT_LANES = 128         # lane-dense packed head output width
NUM_CLASSES_LIST = (9, 2, 5)  # (age, gender, race)
BN_EPS = 1e-5
N_HEADS = 3


# ---------------------------------------------------------------------------
# Single fused kernel: 3x3 "same" SiLU conv stem (in-VMEM halo patches) +
# global-average-pool + folded (proj @ head-w1) linear + ReLU + block-diagonal
# head-w2.  grid = (B,): one step per image, weights resident.
# ---------------------------------------------------------------------------
def _make_fused_kernel(H, W, C, chunk_rows, inv_hw):
    Wp = W + 2  # padded row width (pixels)

    def kernel(x_ref, wc_ref, bc_ref, w1_ref, b1_ref, w2_ref, b2_ref, o_ref):
        pooled = jnp.zeros((1, STEM_CHANNELS), jnp.float32)

        # Static (unrolled) chunk loop over output rows; every slice offset is
        # a Python int, so all loads below are static VMEM slices (no HBM).
        for r0 in range(0, H, chunk_rows):
            ch = min(chunk_rows, H - r0)
            rows = ch * Wp              # conv evaluated at all Wp columns/row;
            base = r0 * Wp              # the 2 pad columns are masked below.
            parts = []
            for di in range(3):
                for dj in range(3):
                    off = base + di * Wp + dj
                    # Image kept f32 in VMEM so these 9 unaligned sublane
                    # slices avoid packed-bf16 relayouts; traffic is still a
                    # small multiple of raw image bytes (no 9x im2col).
                    parts.append(x_ref[0, off:off + rows, :])
            patches = jnp.concatenate(parts, axis=-1)            # (rows, 9C) f32
            y = jnp.dot(patches.astype(wc_ref.dtype), wc_ref[...],
                        preferred_element_type=jnp.float32)      # bf16 MXU, f32 acc
            y = y + bc_ref[...]
            y = y * jax.nn.sigmoid(y)                             # SiLU (f32 VPU/EUP)
            # Mask the 2 padded-column garbage rows of each image row.
            col = jax.lax.broadcasted_iota(jnp.int32, (rows, 1), 0) % Wp
            y = jnp.where(col < W, y, 0.0)
            pooled = pooled + jnp.sum(y, axis=0, keepdims=True)

        pooled = pooled * inv_hw                                  # GAP, f32 (1, 32)
        # TODO(synk): BN folded into w1/b1 (eval mode); Dropout is identity.
        h = jnp.dot(pooled, w1_ref[...], preferred_element_type=jnp.float32)
        h = jnp.maximum(h + b1_ref[...], 0.0)                     # bias(+BN) + ReLU
        out = jnp.dot(h, w2_ref[...], preferred_element_type=jnp.float32)
        o_ref[0] = out + b2_ref[...]                              # (1, 128) lane-dense

    return kernel


# ---------------------------------------------------------------------------
# Parameters
# ---------------------------------------------------------------------------
def init_params(key, in_channels, num_classes_list=NUM_CLASSES_LIST):
    ks = jax.random.split(key, 8)
    p = {}
    p["stem_w"] = jax.random.normal(ks[0], (9 * in_channels, STEM_CHANNELS),
                                    jnp.float32) * 0.05
    p["stem_b"] = jnp.zeros((1, STEM_CHANNELS), jnp.float32)
    p["proj_w"] = jax.random.normal(ks[1], (STEM_CHANNELS, FEATURE_SIZE),
                                    jnp.float32) * 0.05
    p["proj_b"] = jnp.zeros((1, FEATURE_SIZE), jnp.float32)
    for i, (name, nc) in enumerate(zip(("age", "gender", "race"),
                                       num_classes_list)):
        k1, k2 = jax.random.split(ks[2 + i], 2)
        p[f"{name}_w1"] = jax.random.normal(
            k1, (FEATURE_SIZE, HIDDEN), jnp.float32) * (1.0 / FEATURE_SIZE ** 0.5)
        p[f"{name}_b1"] = jnp.zeros((1, HIDDEN), jnp.float32)
        p[f"{name}_gamma"] = jnp.ones((1, HIDDEN), jnp.float32)
        p[f"{name}_beta"] = jnp.zeros((1, HIDDEN), jnp.float32)
        p[f"{name}_mean"] = jnp.zeros((1, HIDDEN), jnp.float32)
        p[f"{name}_var"] = jnp.ones((1, HIDDEN), jnp.float32)
        p[f"{name}_w2"] = jax.random.normal(
            k2, (HIDDEN, nc), jnp.float32) * (1.0 / HIDDEN ** 0.5)
        p[f"{name}_b2"] = jnp.zeros((1, nc), jnp.float32)
    return p


def prepare_params(params, num_classes_list=NUM_CLASSES_LIST):
    """Fold eval-mode BN into head-w1/b1, concat the heads, fold the 32->1280
    projection into the concatenated head-w1 (GAP -> proj -> Linear1 is purely
    linear), and build the block-diagonal lane-dense head-w2."""
    assert sum(num_classes_list) <= HEAD_OUT_LANES
    w1s, b1s = [], []
    w2 = jnp.zeros((N_HEADS * HIDDEN, HEAD_OUT_LANES), jnp.float32)
    b2 = jnp.zeros((1, HEAD_OUT_LANES), jnp.float32)
    col = 0
    for i, (name, nc) in enumerate(zip(("age", "gender", "race"),
                                       num_classes_list)):
        scale = params[f"{name}_gamma"] * jax.lax.rsqrt(params[f"{name}_var"] + BN_EPS)
        w1s.append(params[f"{name}_w1"] * scale)                        # (1280, 128)
        b1s.append((params[f"{name}_b1"] - params[f"{name}_mean"]) * scale
                   + params[f"{name}_beta"])                            # (1, 128)
        w2 = w2.at[i * HIDDEN:(i + 1) * HIDDEN, col:col + nc].set(
            params[f"{name}_w2"])
        b2 = b2.at[:, col:col + nc].set(params[f"{name}_b2"])
        col += nc
    w1_cat = jnp.concatenate(w1s, axis=1)                               # (1280, 384)
    b1_cat = jnp.concatenate(b1s, axis=1)                               # (1, 384)
    return {
        "stem_w": params["stem_w"].astype(jnp.bfloat16),                # (9C, 32)
        "stem_b": params["stem_b"].astype(jnp.float32),                 # (1, 32)
        # Projection folded into head-w1 (kept f32 for precision, tiny matmul):
        #   feature @ w1 + b1 == pooled @ (proj_w @ w1) + (proj_b @ w1 + b1)
        "heads_w1": (params["proj_w"] @ w1_cat).astype(jnp.float32),    # (32, 384)
        "heads_b1": (params["proj_b"] @ w1_cat + b1_cat).astype(jnp.float32),
        "heads_w2": w2,                                                 # (384, 128)
        "heads_b2": b2,                                                 # (1, 128)
    }


# ---------------------------------------------------------------------------
# Forward
# ---------------------------------------------------------------------------
@functools.partial(jax.jit, static_argnames=("num_classes_list",))
def multi_task_forward(x_nchw, fused_params, num_classes_list=NUM_CLASSES_LIST):
    B, C, H, W = x_nchw.shape
    Wp = W + 2
    # (H+2) padded rows + 1 extra zero row so the bottom-right halo slices of
    # the last output row stay inside the per-image slab.
    img_rows = (H + 3) * Wp

    # Cheap XLA prep only: NHWC, zero-pad, flatten spatial to rows
    # (channels-minor).  No 9x im2col materialized in HBM.
    x_nhwc = jnp.transpose(x_nchw, (0, 2, 3, 1)).astype(jnp.float32)
    xpad = jnp.pad(x_nhwc, ((0, 0), (1, 2), (1, 1), (0, 0)))  # (B, H+3, W+2, C)
    xflat = xpad.reshape(B, img_rows, C)                       # (B, img_rows, C)

    chunk_rows = max(1, min(H, 4096 // Wp))   # <=~4k patch rows per inner chunk

    flops = B * (2 * H * Wp * 9 * C * STEM_CHANNELS
                 + 2 * STEM_CHANNELS * N_HEADS * HIDDEN
                 + 2 * N_HEADS * HIDDEN * HEAD_OUT_LANES)
    bytes_accessed = (xflat.size * 4
                      + 9 * C * STEM_CHANNELS * 2
                      + (STEM_CHANNELS * N_HEADS * HIDDEN
                         + N_HEADS * HIDDEN * HEAD_OUT_LANES
                         + N_HEADS * HIDDEN + HEAD_OUT_LANES + STEM_CHANNELS) * 4
                      + B * HEAD_OUT_LANES * 4)

    heads3 = pl.pallas_call(
        _make_fused_kernel(H, W, C, chunk_rows, 1.0 / float(H * W)),
        out_shape=jax.ShapeDtypeStruct((B, 1, HEAD_OUT_LANES), jnp.float32),
        grid_spec=pltpu.PrefetchScalarGridSpec(
            num_scalar_prefetch=0,
            grid=(B,),
            in_specs=[
                # whole padded image per batch, resident in VMEM
                pl.BlockSpec((1, img_rows, C), lambda b: (b, 0, 0)),
                # resident weights (constant index maps)
                pl.BlockSpec((9 * C, STEM_CHANNELS), lambda b: (0, 0)),
                pl.BlockSpec((1, STEM_CHANNELS), lambda b: (0, 0)),
                pl.BlockSpec((STEM_CHANNELS, N_HEADS * HIDDEN), lambda b: (0, 0)),
                pl.BlockSpec((1, N_HEADS * HIDDEN), lambda b: (0, 0)),
                pl.BlockSpec((N_HEADS * HIDDEN, HEAD_OUT_LANES), lambda b: (0, 0)),
                pl.BlockSpec((1, HEAD_OUT_LANES), lambda b: (0, 0)),
            ],
            out_specs=pl.BlockSpec((1, 1, HEAD_OUT_LANES), lambda b: (b, 0, 0)),
        ),
        compiler_params=pltpu.CompilerParams(
            dimension_semantics=("parallel",),      # batch across v7x TensorCores
            vmem_limit_bytes=32 * 1024 * 1024,      # keep v7x (64 MiB) headroom
        ),
        cost_estimate=pl.CostEstimate(
            flops=flops,
            transcendentals=B * H * Wp * STEM_CHANNELS,
            bytes_accessed=bytes_accessed,
        ),
    )(xflat, fused_params["stem_w"], fused_params["stem_b"],
      fused_params["heads_w1"], fused_params["heads_b1"],
      fused_params["heads_w2"], fused_params["heads_b2"])

    heads_out = heads3.reshape(B, HEAD_OUT_LANES)
    n_age, n_gender, n_race = num_classes_list
    return {
        "age": heads_out[:, :n_age],
        "gender": heads_out[:, n_age:n_age + n_gender],
        "race": heads_out[:, n_age + n_gender:n_age + n_gender + n_race],
    }


if __name__ == "__main__":
    key = jax.random.PRNGKey(0)
    k_x, k_p = jax.random.split(key)

    B, C, H, W = 2, 4, 16, 16
    x = jax.random.normal(k_x, (B, C, H, W), jnp.float32)      # NCHW input
    params = init_params(k_p, C, NUM_CLASSES_LIST)
    fused = prepare_params(params, NUM_CLASSES_LIST)

    out = multi_task_forward(x, fused)
    out = jax.block_until_ready(out)

    assert out["age"].shape == (B, NUM_CLASSES_LIST[0])
    assert out["gender"].shape == (B, NUM_CLASSES_LIST[1])
    assert out["race"].shape == (B, NUM_CLASSES_LIST[2])
    assert all(bool(jnp.all(jnp.isfinite(v))) for v in out.values())
    print("KERNEL_OK")
</pallas_src>

<mosaic_0001>
module attributes {stable_mosaic.version = 11 : i64} {
  func.func @kernel(%arg0: i32, %arg1: memref<1x342x4xf32, #tpu.memory_space<vmem>>, %arg2: memref<36x32xbf16, #tpu.memory_space<vmem>>, %arg3: memref<1x32xf32, #tpu.memory_space<vmem>>, %arg4: memref<32x384xf32, #tpu.memory_space<vmem>>, %arg5: memref<1x384xf32, #tpu.memory_space<vmem>>, %arg6: memref<384x128xf32, #tpu.memory_space<vmem>>, %arg7: memref<1x128xf32, #tpu.memory_space<vmem>>, %arg8: memref<1x1x128xf32, #tpu.memory_space<vmem>>) attributes {dimension_semantics = [#tpu.dimension_semantics<parallel>], iteration_bounds = array<i64: 2>, scalar_prefetch = 0 : i64, scratch_operands = 0 : i64, tpu.core_type = #tpu.core_type<tc>, window_params = [{transform_indices = @transform_0, window_bounds = array<i64: 1, 342, 4>}, {pipeline_mode = #tpu.pipeline_mode<synchronous>, transform_indices = @transform_1, window_bounds = array<i64: 36, 32>}, {pipeline_mode = #tpu.pipeline_mode<synchronous>, transform_indices = @transform_2, window_bounds = array<i64: 1, 32>}, {pipeline_mode = #tpu.pipeline_mode<synchronous>, transform_indices = @transform_3, window_bounds = array<i64: 32, 384>}, {pipeline_mode = #tpu.pipeline_mode<synchronous>, transform_indices = @transform_4, window_bounds = array<i64: 1, 384>}, {pipeline_mode = #tpu.pipeline_mode<synchronous>, transform_indices = @transform_5, window_bounds = array<i64: 384, 128>}, {pipeline_mode = #tpu.pipeline_mode<synchronous>, transform_indices = @transform_6, window_bounds = array<i64: 1, 128>}, {transform_indices = @transform_7, window_bounds = array<i64: 1, 1, 128>}]} {
    %cst = arith.constant 0.000000e+00 : f32
    %0 = vector.broadcast %cst : f32 to vector<1x32xf32>
    %c0 = arith.constant 0 : index
    %c0_0 = arith.constant 0 : index
    %c0_1 = arith.constant 0 : index
    %1 = vector.load %arg1[%c0, %c0_0, %c0_1] : memref<1x342x4xf32, #tpu.memory_space<vmem>>, vector<1x288x4xf32>
    %2 = vector.shape_cast %1 : vector<1x288x4xf32> to vector<288x4xf32>
    %c0_2 = arith.constant 0 : index
    %c1 = arith.constant 1 : index
    %c0_3 = arith.constant 0 : index
    %3 = vector.load %arg1[%c0_2, %c1, %c0_3] : memref<1x342x4xf32, #tpu.memory_space<vmem>>, vector<1x288x4xf32>
    %4 = vector.shape_cast %3 : vector<1x288x4xf32> to vector<288x4xf32>
    %c0_4 = arith.constant 0 : index
    %c2 = arith.constant 2 : index
    %c0_5 = arith.constant 0 : index
    %5 = vector.load %arg1[%c0_4, %c2, %c0_5] : memref<1x342x4xf32, #tpu.memory_space<vmem>>, vector<1x288x4xf32>
    %6 = vector.shape_cast %5 : vector<1x288x4xf32> to vector<288x4xf32>
    %c0_6 = arith.constant 0 : index
    %c18 = arith.constant 18 : index
    %c0_7 = arith.constant 0 : index
    %7 = vector.load %arg1[%c0_6, %c18, %c0_7] : memref<1x342x4xf32, #tpu.memory_space<vmem>>, vector<1x288x4xf32>
    %8 = vector.shape_cast %7 : vector<1x288x4xf32> to vector<288x4xf32>
    %c0_8 = arith.constant 0 : index
    %c19 = arith.constant 19 : index
    %c0_9 = arith.constant 0 : index
    %9 = vector.load %arg1[%c0_8, %c19, %c0_9] : memref<1x342x4xf32, #tpu.memory_space<vmem>>, vector<1x288x4xf32>
    %10 = vector.shape_cast %9 : vector<1x288x4xf32> to vector<288x4xf32>
    %c0_10 = arith.constant 0 : index
    %c20 = arith.constant 20 : index
    %c0_11 = arith.constant 0 : index
    %11 = vector.load %arg1[%c0_10, %c20, %c0_11] : memref<1x342x4xf32, #tpu.memory_space<vmem>>, vector<1x288x4xf32>
    %12 = vector.shape_cast %11 : vector<1x288x4xf32> to vector<288x4xf32>
    %c0_12 = arith.constant 0 : index
    %c36 = arith.constant 36 : index
    %c0_13 = arith.constant 0 : index
    %13 = vector.load %arg1[%c0_12, %c36, %c0_13] : memref<1x342x4xf32, #tpu.memory_space<vmem>>, vector<1x288x4xf32>
    %14 = vector.shape_cast %13 : vector<1x288x4xf32> to vector<288x4xf32>
    %c0_14 = arith.constant 0 : index
    %c37 = arith.constant 37 : index
    %c0_15 = arith.constant 0 : index
    %15 = vector.load %arg1[%c0_14, %c37, %c0_15] : memref<1x342x4xf32, #tpu.memory_space<vmem>>, vector<1x288x4xf32>
    %16 = vector.shape_cast %15 : vector<1x288x4xf32> to vector<288x4xf32>
    %c0_16 = arith.constant 0 : index
    %c38 = arith.constant 38 : index
    %c0_17 = arith.constant 0 : index
    %17 = vector.load %arg1[%c0_16, %c38, %c0_17] : memref<1x342x4xf32, #tpu.memory_space<vmem>>, vector<1x288x4xf32>
    %18 = vector.shape_cast %17 : vector<1x288x4xf32> to vector<288x4xf32>
    %19 = tpu.concatenate %2, %4, %6, %8, %10, %12, %14, %16, %18 in 1 : vector<288x4xf32>, vector<288x4xf32>, vector<288x4xf32>, vector<288x4xf32>, vector<288x4xf32>, vector<288x4xf32>, vector<288x4xf32>, vector<288x4xf32>, vector<288x4xf32> -> vector<288x36xf32>
    %20 = arith.truncf %19 : vector<288x36xf32> to vector<288x36xbf16>
    %c0_18 = arith.constant 0 : index
    %c0_19 = arith.constant 0 : index
    %21 = vector.load %arg2[%c0_18, %c0_19] : memref<36x32xbf16, #tpu.memory_space<vmem>>, vector<36x32xbf16>
    %cst_20 = arith.constant dense<0.000000e+00> : vector<288x32xf32>
    %22 = tpu.matmul %20, %21, %cst_20 {dimension_numbers = #tpu.dot_dimension_numbers<[1], [0], [0], [1], [0, 0, 1, 1], [], []>} : vector<288x36xbf16>, vector<36x32xbf16>, vector<288x32xf32> -> vector<288x32xf32>
    %c0_21 = arith.constant 0 : index
    %c0_22 = arith.constant 0 : index
    %23 = vector.load %arg3[%c0_21, %c0_22] : memref<1x32xf32, #tpu.memory_space<vmem>>, vector<1x32xf32>
    %24 = vector.broadcast %23 : vector<1x32xf32> to vector<288x32xf32>
    %25 = arith.addf %22, %24 : vector<288x32xf32>
    %26 = arith.negf %25 : vector<288x32xf32>
    %27 = math.exp %26 : vector<288x32xf32>
    %cst_23 = arith.constant 1.000000e+00 : f32
    %28 = vector.broadcast %cst_23 : f32 to vector<288x32xf32>
    %29 = arith.addf %28, %27 : vector<288x32xf32>
    %30 = arith.divf %28, %29 : vector<288x32xf32>
    %31 = arith.mulf %25, %30 : vector<288x32xf32>
    %32 = tpu.iota {dimensions = array<i32: 0>} : vector<288x1xi32>
    %c18_i32 = arith.constant 18 : i32
    %c0_i32 = arith.constant 0 : i32
    %33 = arith.cmpi eq, %c18_i32, %c0_i32 : i32
    %c1_i32 = arith.constant 1 : i32
    %34 = arith.select %33, %c1_i32, %c18_i32 : i32
    %35 = vector.broadcast %34 : i32 to vector<288x1xi32>
    %36 = arith.remsi %32, %35 : vector<288x1xi32>
    %c0_i32_24 = arith.constant 0 : i32
    %37 = vector.broadcast %c0_i32_24 : i32 to vector<288x1xi32>
    %38 = arith.cmpi ne, %36, %37 : vector<288x1xi32>
    %c0_i32_25 = arith.constant 0 : i32
    %39 = vector.broadcast %c0_i32_25 : i32 to vector<288x1xi32>
    %40 = arith.cmpi slt, %36, %39 : vector<288x1xi32>
    %c0_i32_26 = arith.constant 0 : i32
    %41 = arith.cmpi slt, %34, %c0_i32_26 : i32
    %42 = vector.broadcast %41 : i1 to vector<288x1xi1>
    %43 = vector.broadcast %42 : vector<288x1xi1> to vector<288x1xi1>
    %44 = arith.xori %40, %43 : vector<288x1xi1>
    %45 = arith.andi %44, %38 : vector<288x1xi1>
    %46 = vector.broadcast %34 : i32 to vector<288x1xi32>
    %47 = arith.addi %36, %46 : vector<288x1xi32>
    %48 = arith.select %45, %47, %36 : vector<288x1xi1>, vector<288x1xi32>
    %c16_i32 = arith.constant 16 : i32
    %49 = vector.broadcast %c16_i32 : i32 to vector<288x1xi32>
    %50 = arith.cmpi slt, %48, %49 : vector<288x1xi32>
    %cst_27 = arith.constant 0.000000e+00 : f32
    %51 = vector.shape_cast %50 : vector<288x1xi1> to vector<288x1xi1>
    %52 = vector.broadcast %51 : vector<288x1xi1> to vector<288x32xi1>
    %53 = vector.broadcast %cst_27 : f32 to vector<288x32xf32>
    %54 = arith.select %52, %31, %53 : vector<288x32xi1>, vector<288x32xf32>
    %cst_28 = arith.constant dense<0.000000e+00> : vector<32xf32>
    %55 = vector.multi_reduction <add>, %54, %cst_28 [0] : vector<288x32xf32> to vector<32xf32>
    %56 = vector.shape_cast %55 : vector<32xf32> to vector<1x32xf32>
    %57 = arith.addf %0, %56 : vector<1x32xf32>
    %cst_29 = arith.constant 3.906250e-03 : f32
    %58 = vector.broadcast %cst_29 : f32 to vector<1x32xf32>
    %59 = arith.mulf %57, %58 : vector<1x32xf32>
    %c0_30 = arith.constant 0 : index
    %c0_31 = arith.constant 0 : index
    %60 = vector.load %arg4[%c0_30, %c0_31] : memref<32x384xf32, #tpu.memory_space<vmem>>, vector<32x384xf32>
    %cst_32 = arith.constant dense<0.000000e+00> : vector<1x384xf32>
    %61 = tpu.matmul %59, %60, %cst_32 {dimension_numbers = #tpu.dot_dimension_numbers<[1], [0], [0], [1], [0, 0, 1, 1], [], []>} : vector<1x32xf32>, vector<32x384xf32>, vector<1x384xf32> -> vector<1x384xf32>
    %c0_33 = arith.constant 0 : index
    %c0_34 = arith.constant 0 : index
    %62 = vector.load %arg5[%c0_33, %c0_34] : memref<1x384xf32, #tpu.memory_space<vmem>>, vector<1x384xf32>
    %63 = arith.addf %61, %62 : vector<1x384xf32>
    %cst_35 = arith.constant 0.000000e+00 : f32
    %64 = vector.broadcast %cst_35 : f32 to vector<1x384xf32>
    %65 = arith.maximumf %63, %64 : vector<1x384xf32>
    %c0_36 = arith.constant 0 : index
    %c0_37 = arith.constant 0 : index
    %66 = vector.load %arg6[%c0_36, %c0_37] : memref<384x128xf32, #tpu.memory_space<vmem>>, vector<384x128xf32>
    %cst_38 = arith.constant dense<0.000000e+00> : vector<1x128xf32>
    %67 = tpu.matmul %65, %66, %cst_38 {dimension_numbers = #tpu.dot_dimension_numbers<[1], [0], [0], [1], [0, 0, 1, 1], [], []>} : vector<1x384xf32>, vector<384x128xf32>, vector<1x128xf32> -> vector<1x128xf32>
    %c0_39 = arith.constant 0 : index
    %c0_40 = arith.constant 0 : index
    %68 = vector.load %arg7[%c0_39, %c0_40] : memref<1x128xf32, #tpu.memory_space<vmem>>, vector<1x128xf32>
    %69 = arith.addf %67, %68 : vector<1x128xf32>
    %c0_41 = arith.constant 0 : index
    %c0_42 = arith.constant 0 : index
    %c0_43 = arith.constant 0 : index
    %70 = vector.load %arg8[%c0_41, %c0_42, %c0_43] : memref<1x1x128xf32, #tpu.memory_space<vmem>>, vector<1x1x128xf32>
    %71 = vector.shape_cast %70 : vector<1x1x128xf32> to vector<1x128xf32>
    %72 = vector.shape_cast %69 : vector<1x128xf32> to vector<1x1x128xf32>
    tpu.vector_store %arg8[%c0_41, %c0_42, %c0_43], %72 {strides = array<i32>} : memref<1x1x128xf32, #tpu.memory_space<vmem>>, vector<1x1x128xf32>,
    return
  }
  func.func @transform_0(%arg0: i32) -> (i32, i32, i32) {
    %c0_i32 = arith.constant 0 : i32
    %c0_i32_0 = arith.constant 0 : i32
    %c0_i32_1 = arith.constant 0 : i32
    return %arg0, %c0_i32, %c0_i32_0 : i32, i32, i32
  }
  func.func @transform_1(%arg0: i32) -> (i32, i32) {
    %c0_i32 = arith.constant 0 : i32
    %c0_i32_0 = arith.constant 0 : i32
    %c0_i32_1 = arith.constant 0 : i32
    return %c0_i32, %c0_i32_0 : i32, i32
  }
  func.func @transform_2(%arg0: i32) -> (i32, i32) {
    %c0_i32 = arith.constant 0 : i32
    %c0_i32_0 = arith.constant 0 : i32
    %c0_i32_1 = arith.constant 0 : i32
    return %c0_i32, %c0_i32_0 : i32, i32
  }
  func.func @transform_3(%arg0: i32) -> (i32, i32) {
    %c0_i32 = arith.constant 0 : i32
    %c0_i32_0 = arith.constant 0 : i32
    %c0_i32_1 = arith.constant 0 : i32
    return %c0_i32, %c0_i32_0 : i32, i32
  }
  func.func @transform_4(%arg0: i32) -> (i32, i32) {
    %c0_i32 = arith.constant 0 : i32
    %c0_i32_0 = arith.constant 0 : i32
    %c0_i32_1 = arith.constant 0 : i32
    return %c0_i32, %c0_i32_0 : i32, i32
  }
  func.func @transform_5(%arg0: i32) -> (i32, i32) {
    %c0_i32 = arith.constant 0 : i32
    %c0_i32_0 = arith.constant 0 : i32
    %c0_i32_1 = arith.constant 0 : i32
    return %c0_i32, %c0_i32_0 : i32, i32
  }
  func.func @transform_6(%arg0: i32) -> (i32, i32) {
    %c0_i32 = arith.constant 0 : i32
    %c0_i32_0 = arith.constant 0 : i32
    %c0_i32_1 = arith.constant 0 : i32
    return %c0_i32, %c0_i32_0 : i32, i32
  }
  func.func @transform_7(%arg0: i32) -> (i32, i32, i32) {
    %c0_i32 = arith.constant 0 : i32
    %c0_i32_0 = arith.constant 0 : i32
    %c0_i32_1 = arith.constant 0 : i32
    return %arg0, %c0_i32, %c0_i32_0 : i32, i32, i32
  }
}

</mosaic_0001>

<bundles_post_ra>
// kernel: multi_task_forward.1
= control target key start
LH: loop header
LB: loop body
LE: loop exit
PB: predicated region body
PF: predicated region fallthrough
CT: control target
= control target key end

     0   :  { %s5018_s24 = smov 0   ;;  %s7272_s0 = inlined_call_operand.vmem [shape: f32[2,342,4], index: 0, kind: input, shape index: {}]   ;;  %s7273_s1 = inlined_call_operand.vmem [shape: bf16[36,32], index: 1, kind: input, shape index: {}]   ;;  %s7274_s2 = inlined_call_operand.vmem [shape: f32[1,32], index: 2, kind: input, shape index: {}]   ;;  %s7275_s3 = inlined_call_operand.vmem [shape: f32[32,384], index: 3, kind: input, shape index: {}]   ;;  %s7276_s4 = inlined_call_operand.vmem [shape: f32[1,384], index: 4, kind: input, shape index: {}]   ;;  %s7277_s5 = inlined_call_operand.vmem [shape: f32[384,128], index: 5, kind: input, shape index: {}]   ;;  %s7278_s6 = inlined_call_operand.vmem [shape: f32[1,128], index: 6, kind: input, shape index: {}]   ;;  %s7279_s7 = inlined_call_operand.vmem [shape: f32[2,1,128], index: 7, kind: output, shape index: {}]  }
   0x1 LB: > { %s3694_s25 = sadd.s32 4294967295, %s4965_s24   ;;  %p3698_p0 = scmp.ge.s32.totalorder %s4965_s24, 1  ;;  %s4965_s24 = sphi %s5018_s24, %s17_s24  }
   0x2   : > { %p237_p1 = scmp.lt.s32.totalorder %s4965_s24, 3 }
   0x4   : > { %p238_p2 = pnand %p3698_p0, %p237_p1 }
   0x5   : > { %p267_p3 = scmp.lt.s32.totalorder (!%p238_p2), %s3694_s25, 1  ;;  %s4967_s30 = smov (!%p238_p2), 8   ;;  %v4811_v53 = vld [vmem:[%s7273_s1] sm:$0xff] (!%p238_p2)   ;;  %v4812_v55 = vld [vmem:[%s7273_s1 + $0x8] sm:$0xff] (!%p238_p2)   ;;  %vm2012_vm0 = vcmask (!%p238_p2), 1041408   ;;  %vm1616_vm1 = vcmask (!%p238_p2), 31744  }
   0x6   : > { %241 = sbr.rel (%p238_p2) target bundleno = 1160 (0x488), region = 48  ;;  %s4968_s8 = smov (!%p238_p2), 4   ;;  %3840 = vmatprep.subr.bf16.mxu0 (!%p238_p2), %v4811_v53  ;;  %v4813_v60 = vld [vmem:[%s7273_s1 + $0x10] ss:$0 sps:$4 sm:$0x33] (!%p238_p2)   ;;  %vm1653_vm2 = vcmask (!%p238_p2), 64512  }
   0x7   : > { %s4969_s9 = smov (!%p238_p2), 12   ;;  %s4970_s10 = smov (!%p238_p2), 16   ;;  %3841 = vmatpush3.bf16.msra.mxu0 (!%p238_p2), %v4811_v53  ;;  %vm1690_vm3 = vcmask (!%p238_p2), 97280   ;;  %vm1727_vm4 = vcmask (!%p238_p2), 130048   ;;  %vm1764_vm5 = vcmask (!%p238_p2), 162816   ;;  %vm1801_vm6 = vcmask (!%p238_p2), 195584  }
   0x8   : > { %s4971_s11 = smov (!%p238_p2), 20   ;;  %s4972_s12 = smov (!%p238_p2), 24   ;;  %3842 = vmatprep.subr.bf16.mxu0 (!%p238_p2), %v4812_v55  ;;  %vm1838_vm7 = vcmask (!%p238_p2), 228352   ;;  %vm1875_vm8 = vcmask (!%p238_p2), 261120   ;;  %vm1957_vm9 = vcmask (!%p238_p2), 293888  }
   0x9   : > { %s4973_s13 = smov (!%p238_p2), 28   ;;  %s4974_s14 = smov (!%p238_p2), 32  }
   0xb   : > { %3843 = vmatpush3.bf16.msra.mxu0 (!%p238_p2), %v4812_v55 }
   0xc   : > { %3998 = vmatprep.subr.msk.bf16.mxu0 (!%p238_p2), %vm2012_vm0, %v4813_v60 }
   0xd   : > { %s7405_s25 = smov (!%p267_p3, %s3694_s25), 1 }
   0xe   : > { %s3999_s26 = smul.u32 344, %s7405_s25  ;;  %s274_s27 = scalar_lea.vmem %s7279_s7, %s7405_s25 }
  0x10   : > { %s5032_s29 = scalar_lea.vmem %s7272_s0, %s3999_s26 }
  0x11   : > { %v348_v0 = vld [vmem:[%s5032_s29 + $0x2] sm:$0xff]  ;;  %v349_v1 = vld [vmem:[%s5032_s29 + $0xa] sm:$0xff]  ;;  %v350_v5 = vld [vmem:[%s5032_s29 + $0x12] sm:$0xff] }
  0x12   : > { %v312_v2 = vld [vmem:[%s5032_s29 + $0x1] sm:$0xff]  ;;  %v4101_v3 = vpack.i.bf16 %v349_v1, %v348_v0  ;;  %v313_v4 = vld [vmem:[%s5032_s29 + $0x9] sm:$0xff]  ;;  %v314_v8 = vld [vmem:[%s5032_s29 + $0x11] sm:$0xff]  ;;  %v2014_v1 = vsel %vm2012_vm0, %v4813_v60, 0 }
  0x13   : > { %v351_v6 = vld [vmem:[%s5032_s29 + $0x1a] sm:$0xff]  ;;  %v4091_v7 = vpack.i.bf16 %v313_v4, %v312_v2  ;;  %v352_v12 = vld [vmem:[%s5032_s29 + $0x22] sm:$0xff]  ;;  %v353_v13 = vld [vmem:[%s5032_s29 + $0x2a] sm:$0xff]  ;;  %3845 = vmatpush3.bf16.msra.mxu0 %v2014_v1 }
  0x14   : > { %v315_v9 = vld [vmem:[%s5032_s29 + $0x19] sm:$0xff]  ;;  %4102 = vrot.lane.b32.xlu1 %v4101_v3, %s4967_s30  ;;  %v4106_v10 = vpack.i.bf16 %v351_v6, %v350_v5  ;;  %v5047_v14 = vpack.i.bf16 %v353_v13, %v352_v12  ;;  %v388_v15 = vld [vmem:[%s5032_s29 + $0x23] sm:$0xff]  ;;  %v389_v16 = vld [vmem:[%s5032_s29 + $0x2b] sm:$0xff] }
  0x15   : > { %4092 = vrot.lane.b32.xlu0 %v4091_v7, %s4968_s8  ;;  %v4096_v11 = vpack.i.bf16 %v315_v9, %v314_v8  ;;  %v386_v17 = vld [vmem:[%s5032_s29 + $0x13] sm:$0xff]  ;;  %v387_v18 = vld [vmem:[%s5032_s29 + $0x1b] sm:$0xff]  ;;  %v4126_v19 = vpack.i.bf16 %v389_v16, %v388_v15  ;;  %v424_v21 = vld [vmem:[%s5032_s29 + $0x24] sm:$0xff] }
  0x16   : > { %v4121_v20 = vpack.i.bf16 %v387_v18, %v386_v17  ;;  %v425_v22 = vld [vmem:[%s5032_s29 + $0x2c] sm:$0xff]  ;;  %v422_v23 = vld [vmem:[%s5032_s29 + $0x14] sm:$0xff]  ;;  %v423_v24 = vld [vmem:[%s5032_s29 + $0x1c] sm:$0xff] }
  0x17   : > { %v4136_v25 = vpack.i.bf16 %v425_v22, %v424_v21  ;;  %v4131_v26 = vpack.i.bf16 %v423_v24, %v422_v23  ;;  %v426_v27 = vld [vmem:[%s5032_s29 + $0x34] sm:$0xff]  ;;  %v427_v28 = vld [vmem:[%s5032_s29 + $0x3c] sm:$0xff]  ;;  %v460_v32 = vld [vmem:[%s5032_s29 + $0x25] sm:$0xff] }
  0x18   : > { %4107 = vrot.lane.b32.xlu1 %v4106_v10, %s4967_s30  ;;  %v5066_v29 = vpack.i.bf16 %v427_v28, %v426_v27  ;;  %v462_v30 = vld [vmem:[%s5032_s29 + $0x35] sm:$0xff]  ;;  %v463_v31 = vld [vmem:[%s5032_s29 + $0x3d] sm:$0xff]  ;;  %v461_v33 = vld [vmem:[%s5032_s29 + $0x2d] sm:$0xff] }
  0x19   : > { %4097 = vrot.lane.b32.xlu0 %v4096_v11, %s4968_s8  ;;  %v4156_v34 = vpack.i.bf16 %v463_v31, %v462_v30  ;;  %v4151_v35 = vpack.i.bf16 %v461_v33, %v460_v32  ;;  %v316_v36 = vld [vmem:[%s5032_s29 + $0x21] sm:$0xff]  ;;  %v317_v37 = vld [vmem:[%s5032_s29 + $0x29] sm:$0xff]  ;;  %v318_v42 = vld [vmem:[%s5032_s29 + $0x31] sm:$0xff] }
  0x1a   : > { %v496_v38 = vld [vmem:[%s5032_s29 + $0x26] sm:$0xff]  ;;  %v497_v39 = vld [vmem:[%s5032_s29 + $0x2e] sm:$0xff]  ;;  %v4166_v40 = vpack.i.bf16 %v317_v37, %v316_v36  ;;  %v319_v43 = vld [vmem:[%s5032_s29 + $0x39] sm:$0xff] }
  0x1b   : > { %v4161_v41 = vpack.i.bf16 %v497_v39, %v496_v38  ;;  %v498_v44 = vld [vmem:[%s5032_s29 + $0x36] sm:$0xff]  ;;  %v499_v45 = vld [vmem:[%s5032_s29 + $0x3e] sm:$0xff]  ;;  %v4176_v46 = vpack.i.bf16 %v319_v43, %v318_v42  ;;  %v357_v52 = vld [vmem:[%s5032_s29 + $0x4a] sm:$0xff] }
  0x1c   : > { %4117 = vrot.lane.b32.xlu1 %v5047_v14, %s4969_s9  ;;  %v4171_v47 = vpack.i.bf16 %v499_v45, %v498_v44  ;;  %v354_v48 = vld [vmem:[%s5032_s29 + $0x32] sm:$0xff]  ;;  %v355_v49 = vld [vmem:[%s5032_s29 + $0x3a] sm:$0xff]  ;;  %v356_v51 = vld [vmem:[%s5032_s29 + $0x42] sm:$0xff] }
  0x1d   : > { %4112 = vrot.lane.b32.xlu0 %v4106_v10, %s4969_s9  ;;  %v4186_v50 = vpack.i.bf16 %v355_v49, %v354_v48  ;;  %v5098_v54 = vpack.i.bf16 %v357_v52, %v356_v51  ;;  %v392_v56 = vld [vmem:[%s5032_s29 + $0x43] sm:$0xff]  ;;  %v393_v57 = vld [vmem:[%s5032_s29 + $0x4b] sm:$0xff]  ;;  %v390_v58 = vld [vmem:[%s5032_s29 + $0x33] sm:$0xff] }
  0x1e   : > { %v391_v59 = vld [vmem:[%s5032_s29 + $0x3b] sm:$0xff]  ;;  %v4206_v61 = vpack.i.bf16 %v393_v57, %v392_v56  ;;  %v428_v63 = vld [vmem:[%s5032_s29 + $0x44] sm:$0xff]  ;;  %v429_v0 = vld [vmem:[%s5032_s29 + $0x4c] sm:$0xff] }
  0x1f   : > { %v4201_v62 = vpack.i.bf16 %v391_v59, %v390_v58  ;;  %v4216_v2 = vpack.i.bf16 %v429_v0, %v428_v63  ;;  %v430_v3 = vld [vmem:[%s5032_s29 + $0x54] sm:$0xff]  ;;  %v431_v4 = vld [vmem:[%s5032_s29 + $0x5c] sm:$0xff]  ;;  %v464_v8 = vld [vmem:[%s5032_s29 + $0x45] sm:$0xff] }
  0x20   : > { %4127 = vrot.lane.b32.xlu1 %v4126_v19, %s4970_s10  ;;  %v4226_v5 = vpack.i.bf16 %v431_v4, %v430_v3  ;;  %v466_v6 = vld [vmem:[%s5032_s29 + $0x55] sm:$0xff]  ;;  %v467_v7 = vld [vmem:[%s5032_s29 + $0x5d] sm:$0xff]  ;;  %v465_v9 = vld [vmem:[%s5032_s29 + $0x4d] sm:$0xff] }
  0x21   : > { %4122 = vrot.lane.b32.xlu0 %v4121_v20, %s4970_s10  ;;  %v4236_v10 = vpack.i.bf16 %v467_v7, %v466_v6  ;;  %v4231_v11 = vpack.i.bf16 %v465_v9, %v464_v8  ;;  %v320_v12 = vld [vmem:[%s5032_s29 + $0x41] sm:$0xff]  ;;  %v321_v13 = vld [vmem:[%s5032_s29 + $0x49] sm:$0xff]  ;;  %v322_v18 = vld [vmem:[%s5032_s29 + $0x51] sm:$0xff] }
  0x22   : > { %v501_v15 = vld [vmem:[%s5032_s29 + $0x4e] sm:$0xff]  ;;  %v4246_v16 = vpack.i.bf16 %v321_v13, %v320_v12  ;;  %v323_v19 = vld [vmem:[%s5032_s29 + $0x59] sm:$0xff]  ;;  %v360_v27 = vld [vmem:[%s5032_s29 + $0x62] sm:$0xff] }
  0x23   : > { %v502_v20 = vld [vmem:[%s5032_s29 + $0x56] sm:$0xff]  ;;  %v503_v21 = vld [vmem:[%s5032_s29 + $0x5e] sm:$0xff]  ;;  %v4256_v22 = vpack.i.bf16 %v323_v19, %v322_v18  ;;  %v361_v28 = vld [vmem:[%s5032_s29 + $0x6a] sm:$0xff] }
  0x24   : > { %4137 = vrot.lane.b32.xlu1 %v4136_v25, %s4971_s11  ;;  %v4251_v23 = vpack.i.bf16 %v503_v21, %v502_v20  ;;  %v358_v24 = vld [vmem:[%s5032_s29 + $0x52] sm:$0xff]  ;;  %v396_v30 = vld [vmem:[%s5032_s29 + $0x63] sm:$0xff]  ;;  %v395_v33 = vld [vmem:[%s5032_s29 + $0x5b] sm:$0xff] }
  0x25   : > { %4132 = vrot.lane.b32.xlu0 %v4131_v26, %s4971_s11  ;;  %v397_v31 = vld [vmem:[%s5032_s29 + $0x6b] sm:$0xff]  ;;  %v394_v32 = vld [vmem:[%s5032_s29 + $0x53] sm:$0xff]  ;;  %v471_v43 = vld [vmem:[%s5032_s29 + $0x7d] sm:$0xff] }
  0x26   : > { %v432_v36 = vld [vmem:[%s5032_s29 + $0x64] sm:$0xff]  ;;  %v433_v37 = vld [vmem:[%s5032_s29 + $0x6c] sm:$0xff]  ;;  %v434_v39 = vld [vmem:[%s5032_s29 + $0x74] sm:$0xff] }
  0x27   : > { %v4296_v38 = vpack.i.bf16 %v433_v37, %v432_v36  ;;  %v470_v42 = vld [vmem:[%s5032_s29 + $0x75] sm:$0xff]  ;;  %v468_v44 = vld [vmem:[%s5032_s29 + $0x65] sm:$0xff]  ;;  %v469_v45 = vld [vmem:[%s5032_s29 + $0x6d] sm:$0xff] }
  0x28   : > { %4147 = vrot.lane.b32.xlu1 %v5066_v29, %s4972_s12  ;;  %v324_v48 = vld [vmem:[%s5032_s29 + $0x61] sm:$0xff]  ;;  %v325_v49 = vld [vmem:[%s5032_s29 + $0x69] sm:$0xff]  ;;  %v327_v55 = vld [vmem:[%s5032_s29 + $0x79] sm:$0xff] }
  0x29   : > { %4142 = vrot.lane.b32.xlu0 %v4136_v25, %s4972_s12  ;;  %v359_v25 = vld [vmem:[%s5032_s29 + $0x5a] sm:$0xff]  ;;  %v505_v51 = vld [vmem:[%s5032_s29 + $0x6e] sm:$0xff]  ;;  %v4326_v52 = vpack.i.bf16 %v325_v49, %v324_v48  ;;  %v364_v63 = vld [vmem:[%s5032_s29 + $0x82] sm:$0xff] }
  0x2a   : > { %v4266_v26 = vpack.i.bf16 %v359_v25, %v358_v24  ;;  %v506_v56 = vld [vmem:[%s5032_s29 + $0x76] sm:$0xff]  ;;  %v507_v57 = vld [vmem:[%s5032_s29 + $0x7e] sm:$0xff]  ;;  %v365_v0 = vld [vmem:[%s5032_s29 + $0x8a] sm:$0xff] }
  0x2b   : > { %v4331_v59 = vpack.i.bf16 %v507_v57, %v506_v56  ;;  %v362_v60 = vld [vmem:[%s5032_s29 + $0x72] sm:$0xff]  ;;  %v5190_v1 = vpack.i.bf16 %v365_v0, %v364_v63  ;;  %v436_v8 = vld [vmem:[%s5032_s29 + $0x84] sm:$0xff]  ;;  %v439_v12 = vld [vmem:[%s5032_s29 + $0x9c] sm:$0xff] }
  0x2c   : > { %4157 = vrot.lane.b32.xlu1 %v4156_v34, %s4973_s13  ;;  %v4286_v34 = vpack.i.bf16 %v397_v31, %v396_v30  ;;  %v401_v3 = vld [vmem:[%s5032_s29 + $0x8b] sm:$0xff]  ;;  %v398_v4 = vld [vmem:[%s5032_s29 + $0x73] sm:$0xff]  ;;  %v404_v48 = vld [vmem:[%s5032_s29 + $0xa3] sm:$0xff] }
  0x2d   : > { %4152 = vrot.lane.b32.xlu0 %v4151_v35, %s4973_s13  ;;  %v4281_v35 = vpack.i.bf16 %v395_v33, %v394_v32  ;;  %v437_v9 = vld [vmem:[%s5032_s29 + $0x8c] sm:$0xff]  ;;  %v331_v31 = vld [vmem:[%s5032_s29 + $0x99] sm:$0xff]  ;;  %v440_v63 = vld [vmem:[%s5032_s29 + $0xa4] sm:$0xff] }
  0x2e   : > { %v473_v18 = vld [vmem:[%s5032_s29 + $0x8d] sm:$0xff]  ;;  %v510_v33 = vld [vmem:[%s5032_s29 + $0x96] sm:$0xff] }
  0x2f   : > { %v508_v25 = vld [vmem:[%s5032_s29 + $0x86] sm:$0xff]  ;;  %v330_v30 = vld [vmem:[%s5032_s29 + $0x91] sm:$0xff] }
  0x30   : > { %4167 = vrot.lane.b32.xlu1 %v4166_v40, %s4968_s8  ;;  %v435_v40 = vld [vmem:[%s5032_s29 + $0x7c] sm:$0xff]  ;;  %v4416_v36 = vpack.i.bf16 %v331_v31, %v330_v30  ;;  %v405_v49 = vld [vmem:[%s5032_s29 + $0xab] sm:$0xff] }
  0x31   : > { %4162 = vrot.lane.b32.xlu0 %v4161_v41, %s4974_s14  ;;  %v4306_v41 = vpack.i.bf16 %v435_v40, %v434_v39  ;;  %v367_v39 = vld [vmem:[%s5032_s29 + $0x9a] sm:$0xff]  ;;  %v441_v0 = vld [vmem:[%s5032_s29 + $0xac] sm:$0xff] }
  0x32   : > { %v279_v56 = vld [vmem:[%s5032_s29 + $0x18] sm:$0xff] }
  0x34   : > { %4177 = vrot.lane.b32.xlu1 %v4176_v46, %s4968_s8  ;;  %v4316_v46 = vpack.i.bf16 %v471_v43, %v470_v42  ;;  %v368_v43 = vld [vmem:[%s5032_s29 + $0xa2] sm:$0xff] }
  0x35   : > { %4172 = vrot.lane.b32.xlu0 %v4171_v47, %s4974_s14  ;;  %v4311_v47 = vpack.i.bf16 %v469_v45, %v468_v44  ;;  %v369_v44 = vld [vmem:[%s5032_s29 + $0xaa] sm:$0xff] }
  0x36   : > { %v5266_v57 = vpack.i.bf16 %v369_v44, %v368_v43 }
  0x38   : > { %4187 = vrot.lane.b32.xlu1 %v4186_v50, %s4967_s30 }
  0x39   : > { %4182 = vrot.lane.b32.xlu0 %v5047_v14, %s4967_s30  ;;  %v500_v14 = vld [vmem:[%s5032_s29 + $0x46] sm:$0xff] }
  0x3a   : > { %v4241_v17 = vpack.i.bf16 %v501_v15, %v500_v14  ;;  %v474_v14 = vld [vmem:[%s5032_s29 + $0x95] sm:$0xff]  ;;  %v475_v15 = vld [vmem:[%s5032_s29 + $0x9d] sm:$0xff] }
  0x3b   : > { %v4396_v20 = vpack.i.bf16 %v475_v15, %v474_v14 }
  0x3c   : > { %4197 = vrot.lane.b32.xlu1 %v5098_v54, %s4969_s9 }
  0x3d   : > { %4192 = vrot.lane.b32.xlu0 %v4186_v50, %s4969_s9  ;;  %v504_v50 = vld [vmem:[%s5032_s29 + $0x66] sm:$0xff] }
  0x3e   : > { %v4321_v53 = vpack.i.bf16 %v505_v51, %v504_v50  ;;  %v276_v50 = vld [vmem:[%s5032_s29] sm:$0xff]  ;;  %v277_v51 = vld [vmem:[%s5032_s29 + $0x8] sm:$0xff] }
  0x40   : > { %4207 = vrot.lane.b32.xlu1 %v4206_v61, %s4970_s10  ;;  %v363_v61 = vld [vmem:[%s5032_s29 + $0x7a] sm:$0xff] }
  0x41   : > { %4202 = vrot.lane.b32.xlu0 %v4201_v62, %s4970_s10  ;;  %v4346_v62 = vpack.i.bf16 %v363_v61, %v362_v60  ;;  %v4446_v61 = vpack.i.bf16 %v405_v49, %v404_v48 }
  0x44   : > { %4217 = vrot.lane.b32.xlu1 %v4216_v2, %s4971_s11 }
  0x45   : > { %4212 = vrot.lane.b32.xlu0 %v5066_v29, %s4971_s11  ;;  %v4276_v29 = vpack.i.bf16 %v361_v28, %v360_v27 }
  0x48   : > { %4227 = vrot.lane.b32.xlu1 %v4226_v5, %s4972_s12 }
  0x49   : > { %4222 = vrot.lane.b32.xlu0 %v4216_v2, %s4972_s12  ;;  %v400_v2 = vld [vmem:[%s5032_s29 + $0x83] sm:$0xff] }
  0x4a   : > { %v4366_v6 = vpack.i.bf16 %v401_v3, %v400_v2 }
  0x4c   : > { %4237 = vrot.lane.b32.xlu1 %v4236_v10, %s4973_s13  ;;  %v4376_v10 = vpack.i.bf16 %v437_v9, %v436_v8  ;;  %v443_v8 = vld [vmem:[%s5032_s29 + $0xbc] sm:$0xff] }
  0x4d   : > { %4232 = vrot.lane.b32.xlu0 %v4231_v11, %s4973_s13  ;;  %v438_v11 = vld [vmem:[%s5032_s29 + $0x94] sm:$0xff] }
  0x4e   : > { %v5207_v13 = vpack.i.bf16 %v439_v12, %v438_v11 }
  0x50   : > { %4247 = vrot.lane.b32.xlu1 %v4246_v16, %s4968_s8 }
  0x51   : > { %4242 = vrot.lane.b32.xlu0 %v4241_v17, %s4974_s14  ;;  %v472_v17 = vld [vmem:[%s5032_s29 + $0x85] sm:$0xff] }
  0x52   : > { %v4391_v21 = vpack.i.bf16 %v473_v18, %v472_v17  ;;  %v5292_v17 = vpack.i.bf16 %v441_v0, %v440_v63 }
  0x54   : > { %4257 = vrot.lane.b32.xlu1 %v4256_v22, %s4968_s8  ;;  %v328_v22 = vld [vmem:[%s5032_s29 + $0x81] sm:$0xff] }
  0x55   : > { %4252 = vrot.lane.b32.xlu0 %v4251_v23, %s4974_s14  ;;  %v329_v23 = vld [vmem:[%s5032_s29 + $0x89] sm:$0xff] }
  0x56   : > { %v4406_v28 = vpack.i.bf16 %v329_v23, %v328_v22 }
  0x58   : > { %4267 = vrot.lane.b32.xlu1 %v4266_v26, %s4967_s30 }
  0x59   : > { %4262 = vrot.lane.b32.xlu0 %v5098_v54, %s4967_s30  ;;  %v326_v54 = vld [vmem:[%s5032_s29 + $0x71] sm:$0xff] }
  0x5a   : > { %v4336_v58 = vpack.i.bf16 %v327_v55, %v326_v54  ;;  %v278_v55 = vld [vmem:[%s5032_s29 + $0x10] sm:$0xff] }
  0x5c   : > { %4277 = vrot.lane.b32.xlu1 %v4276_v29, %s4969_s9 }
  0x5d   : > { %4272 = vrot.lane.b32.xlu0 %v4266_v26, %s4969_s9  ;;  %v509_v26 = vld [vmem:[%s5032_s29 + $0x8e] sm:$0xff] }
  0x60   : > { %4287 = vrot.lane.b32.xlu1 %v4286_v34, %s4970_s10  ;;  %v511_v34 = vld [vmem:[%s5032_s29 + $0x9e] sm:$0xff] }
  0x61   : > { %4282 = vrot.lane.b32.xlu0 %v4281_v35, %s4970_s10  ;;  %v4411_v37 = vpack.i.bf16 %v511_v34, %v510_v33 }
  0x64   : > { %4297 = vrot.lane.b32.xlu1 %v4296_v38, %s4971_s11 }
  0x65   : > { %4292 = vrot.lane.b32.xlu0 %v4226_v5, %s4971_s11  ;;  %v399_v5 = vld [vmem:[%s5032_s29 + $0x7b] sm:$0xff] }
  0x66   : > { %v4361_v7 = vpack.i.bf16 %v399_v5, %v398_v4 }
  0x68   : > { %4307 = vrot.lane.b32.xlu1 %v4306_v41, %s4972_s12 }
  0x69   : > { %4302 = vrot.lane.b32.xlu0 %v4296_v38, %s4972_s12  ;;  %v366_v38 = vld [vmem:[%s5032_s29 + $0x92] sm:$0xff] }
  0x6a   : > { %v4426_v42 = vpack.i.bf16 %v367_v39, %v366_v38 }
  0x6c   : > { %4317 = vrot.lane.b32.xlu1 %v4316_v46, %s4973_s13 }
  0x6d   : > { %4312 = vrot.lane.b32.xlu0 %v4311_v47, %s4973_s13 }
  0x70   : > { %4327 = vrot.lane.b32.xlu1 %v4326_v52, %s4968_s8 }
  0x71   : > { %4322 = vrot.lane.b32.xlu0 %v4321_v53, %s4974_s14 }
  0x74   : > { %4337 = vrot.lane.b32.xlu1 %v4336_v58, %s4968_s8  ;;  %v402_v58 = vld [vmem:[%s5032_s29 + $0x93] sm:$0xff] }
  0x75   : > { %4332 = vrot.lane.b32.xlu0 %v4331_v59, %s4974_s14 }
  0x78   : > { %4347 = vrot.lane.b32.xlu1 %v4346_v62, %s4967_s30 }
  0x79   : > { %4342 = vrot.lane.b32.xlu0 %v4276_v29, %s4967_s30  ;;  %v4401_v29 = vpack.i.bf16 %v509_v26, %v508_v25 }
  0x7c   : > { %4357 = vrot.lane.b32.xlu1 %v5190_v1, %s4969_s9 }
  0x7d   : > { %4352 = vrot.lane.b32.xlu0 %v4346_v62, %s4969_s9  ;;  %v403_v62 = vld [vmem:[%s5032_s29 + $0x9b] sm:$0xff] }
  0x80   : > { %4367 = vrot.lane.b32.xlu1 %v4366_v6, %s4970_s10 }
  0x81   : > { %4362 = vrot.lane.b32.xlu0 %v4361_v7, %s4970_s10  ;;  %v442_v7 = vld [vmem:[%s5032_s29 + $0xb4] sm:$0xff] }
  0x84   : > { %4377 = vrot.lane.b32.xlu1 %v4376_v10, %s4971_s11 }
  0x85   : > { %4372 = vrot.lane.b32.xlu0 %v4306_v41, %s4971_s11 }
  0x86   : > { %v5212_v16 = vpop.permute.xlu1 %4102 }
  0x87   : > { %v5216_v19 = vpop.permute.xlu0 %4092  ;;  %v4105_v59 = vunpack.i.h.bf16 %v5212_v16  ;;  %v4104_v60 = vunpack.i.l.bf16 %v5212_v16  ;;  %v4441_v16 = vpack.i.bf16 %v403_v62, %v402_v58 }
  0x88   : > { %4387 = vrot.lane.b32.xlu1 %v5207_v13, %s4972_s12  ;;  %v4095_v45 = vunpack.i.h.bf16 %v5216_v19  ;;  %v4094_v46 = vunpack.i.l.bf16 %v5216_v19 }
  0x89   : > { %4382 = vrot.lane.b32.xlu0 %v4376_v10, %s4972_s12 }
  0x8a   : > { %v5223_v24 = vpop.permute.xlu1 %4107  ;;  %v1617_v2 = vsel %vm1616_vm1, %v276_v50, %v4094_v46  ;;  %v1618_v3 = vsel %vm1616_vm1, %v277_v51, %v4095_v45 }
  0x8b   : > { %v5227_v27 = vpop.permute.xlu0 %4097  ;;  %v4110_v4 = vunpack.i.h.bf16 %v5223_v24  ;;  %v4109_v5 = vunpack.i.l.bf16 %v5223_v24  ;;  %v1654_v18 = vsel %vm1653_vm2, %v1617_v2, %v4104_v60  ;;  %v1655_v19 = vsel %vm1653_vm2, %v1618_v3, %v4105_v59  ;;  %v476_v2 = vld [vmem:[%s5032_s29 + $0xa5] sm:$0xff]  ;;  %v477_v3 = vld [vmem:[%s5032_s29 + $0xad] sm:$0xff] }
  0x8c   : > { %4397 = vrot.lane.b32.xlu1 %v4396_v20, %s4973_s13  ;;  %v4100_v52 = vunpack.i.h.bf16 %v5227_v27  ;;  %v4099_v53 = vunpack.i.l.bf16 %v5227_v27  ;;  %v5297_v20 = vpack.i.bf16 %v443_v8, %v442_v7 }
  0x8d   : > { %4392 = vrot.lane.b32.xlu0 %v4391_v21, %s4973_s13 }
  0x8e   : > { %v5233_v32 = vpop.permute.xlu1 %4117  ;;  %v1620_v9 = vsel %vm1616_vm1, %v279_v56, %v4100_v52 }
  0x8f   : > { %v5237_v35 = vpop.permute.xlu0 %4112  ;;  %v4120_v10 = vunpack.i.h.bf16 %v5233_v32  ;;  %v4119_v11 = vunpack.i.l.bf16 %v5233_v32  ;;  %v1657_v22 = vsel %vm1653_vm2, %v1620_v9, %v4110_v4 }
  0x90   : > { %4407 = vrot.lane.b32.xlu1 %v4406_v28, %s4968_s8  ;;  %v4115_v14 = vunpack.i.h.bf16 %v5237_v35  ;;  %v4114_v15 = vunpack.i.l.bf16 %v5237_v35 }
  0x91   : > { %4402 = vrot.lane.b32.xlu0 %v4401_v29, %s4974_s14  ;;  %v1694_v27 = vsel %vm1690_vm3, %v1657_v22, %v4120_v10  ;;  %v512_v22 = vld [vmem:[%s5032_s29 + $0xa6] sm:$0xff] }
  0x92   : > { %v5243_v40 = vpop.permute.xlu1 %4127  ;;  %v1691_v31 = vsel %vm1690_vm3, %v1654_v18, %v4114_v15  ;;  %v1692_v32 = vsel %vm1690_vm3, %v1655_v19, %v4115_v14  ;;  %v4471_v14 = vpack.i.bf16 %v477_v3, %v476_v2  ;;  %v332_v15 = vld [vmem:[%s5032_s29 + $0xa1] sm:$0xff] }
  0x93   : > { %v5245_v41 = vpop.permute.xlu0 %4122  ;;  %v4130_v35 = vunpack.i.h.bf16 %v5243_v40  ;;  %v281_v3 = vld [vmem:[%s5032_s29 + $0x28] sm:$0xff] }
  0x94   : > { %4417 = vrot.lane.b32.xlu1 %v4416_v36, %s4968_s8  ;;  %v4125_v23 = vunpack.i.h.bf16 %v5245_v41  ;;  %v4124_v24 = vunpack.i.l.bf16 %v5245_v41  ;;  %v4129_v36 = vunpack.i.l.bf16 %v5243_v40 }
  0x95   : > { %4412 = vrot.lane.b32.xlu0 %v4411_v37, %s4974_s14 }
  0x96   : > { %v5253_v47 = vpop.permute.xlu1 %4137  ;;  %v1728_v39 = vsel %vm1727_vm4, %v1691_v31, %v4124_v24  ;;  %v1729_v41 = vsel %vm1727_vm4, %v1692_v32, %v4125_v23  ;;  %v513_v23 = vld [vmem:[%s5032_s29 + $0xae] sm:$0xff]  ;;  %v515_v31 = vld [vmem:[%s5032_s29 + $0xbe] sm:$0xff] }
  0x97   : > { %v5261_v54 = vpop.permute.xlu0 %4132  ;;  %v4139_v43 = vunpack.i.l.bf16 %v5253_v47 }
  0x98   : > { %4427 = vrot.lane.b32.xlu1 %v4426_v42, %s4967_s30  ;;  %v4135_v28 = vunpack.i.h.bf16 %v5261_v54  ;;  %v4134_v29 = vunpack.i.l.bf16 %v5261_v54  ;;  %v479_v54 = vld [vmem:[%s5032_s29 + $0xbd] sm:$0xff] }
  0x99   : > { %4422 = vrot.lane.b32.xlu0 %v5190_v1, %s4967_s30  ;;  %v1619_v1 = vsel %vm1616_vm1, %v278_v55, %v4099_v53  ;;  %v478_v53 = vld [vmem:[%s5032_s29 + $0xb5] sm:$0xff] }
  0x9a   : > { %v5280_v6 = vpop.permute.xlu1 %4147  ;;  %v1656_v21 = vsel %vm1653_vm2, %v1619_v1, %v4109_v5  ;;  %v1765_v45 = vsel %vm1764_vm5, %v1728_v39, %v4134_v29  ;;  %v1766_v40 = vsel %vm1764_vm5, %v1729_v41, %v4135_v28  ;;  %v4476_v7 = vpack.i.bf16 %v479_v54, %v478_v53  ;;  %v335_v28 = vld [vmem:[%s5032_s29 + $0xb9] sm:$0xff]  ;;  %v372_v41 = vld [vmem:[%s5032_s29 + $0xc2] sm:$0xff] }
  0x9b   : > { %v4143_v12 = vpop.permute.xlu0 %4142  ;;  %v1693_v26 = vsel %vm1690_vm3, %v1656_v21, %v4119_v11  ;;  %v4150_v46 = vunpack.i.h.bf16 %v5280_v6  ;;  %v4149_v48 = vunpack.i.l.bf16 %v5280_v6 }
  0x9c   : > { %4437 = vrot.lane.b32.xlu1 %v5266_v57, %s4969_s9  ;;  %v4145_v33 = vunpack.i.h.bf16 %v4143_v12  ;;  %v4144_v34 = vunpack.i.l.bf16 %v4143_v12  ;;  %v1730_v60 = vsel %vm1727_vm4, %v1693_v26, %v4129_v36  ;;  %v4481_v26 = vpack.i.bf16 %v513_v23, %v512_v22  ;;  %v371_v36 = vld [vmem:[%s5032_s29 + $0xba] sm:$0xff] }
  0x9d   : > { %4432 = vrot.lane.b32.xlu0 %v4426_v42, %s4969_s9  ;;  %v4140_v42 = vunpack.i.h.bf16 %v5253_v47  ;;  %v1767_v4 = vsel %vm1764_vm5, %v1730_v60, %v4139_v43  ;;  %v408_v43 = vld [vmem:[%s5032_s29 + $0xc3] sm:$0xff] }
  0x9e   : > { %v4158_v25 = vpop.permute.xlu1 %4157  ;;  %v1802_v47 = vsel %vm1801_vm6, %v1765_v45, %v4144_v34  ;;  %v1803_v52 = vsel %vm1801_vm6, %v1766_v40, %v4145_v33  ;;  %v1804_v8 = vsel %vm1801_vm6, %v1767_v4, %v4149_v48  ;;  %v409_v45 = vld [vmem:[%s5032_s29 + $0xcb] sm:$0xff]  ;;  %v406_v40 = vld [vmem:[%s5032_s29 + $0xb3] sm:$0xff] }
  0x9f   : > { %v4153_v30 = vpop.permute.xlu0 %4152  ;;  %v4160_v55 = vunpack.i.h.bf16 %v4158_v25  ;;  %v4159_v56 = vunpack.i.l.bf16 %v4158_v25  ;;  %v4526_v54 = vpack.i.bf16 %v409_v45, %v408_v43 }
  0xa0   : > { %4447 = vrot.lane.b32.xlu1 %v4446_v61, %s4970_s10  ;;  %v4155_v37 = vunpack.i.h.bf16 %v4153_v30  ;;  %v4154_v38 = vunpack.i.l.bf16 %v4153_v30  ;;  %v1731_v61 = vsel %vm1727_vm4, %v1694_v27, %v4130_v35  ;;  %v334_v27 = vld [vmem:[%s5032_s29 + $0xb1] sm:$0xff] }
  0xa1   : > { %4442 = vrot.lane.b32.xlu0 %v4441_v16, %s4970_s10  ;;  %v1841_v11 = vsel %vm1838_vm7, %v1804_v8, %v4159_v56  ;;  %v333_v16 = vld [vmem:[%s5032_s29 + $0xa9] sm:$0xff]  ;;  %v514_v30 = vld [vmem:[%s5032_s29 + $0xb6] sm:$0xff]  ;;  %v4496_v33 = vpack.i.bf16 %v335_v28, %v334_v27 }
  0xa2   : > { %v5317_v44 = vpop.permute.xlu1 %4167  ;;  %v1839_v58 = vsel %vm1838_vm7, %v1802_v47, %v4154_v38  ;;  %v1840_v59 = vsel %vm1838_vm7, %v1803_v52, %v4155_v37  ;;  %v4486_v25 = vpack.i.bf16 %v333_v16, %v332_v15  ;;  %v4491_v34 = vpack.i.bf16 %v515_v31, %v514_v30  ;;  %v370_v35 = vld [vmem:[%s5032_s29 + $0xb2] sm:$0xff] }
  0xa3   : > { %v4163_v49 = vpop.permute.xlu0 %4162  ;;  %v4506_v39 = vpack.i.bf16 %v371_v36, %v370_v35  ;;  %v445_v47 = vld [vmem:[%s5032_s29 + $0xcc] sm:$0xff]  ;;  %v446_v56 = vld [vmem:[%s5032_s29 + $0xd4] sm:$0xff]  ;;  %v4169_v60 = vunpack.i.l.bf16 %v5317_v44 }
  0xa4   : > { %v4165_v50 = vunpack.i.h.bf16 %v4163_v49  ;;  %v4164_v51 = vunpack.i.l.bf16 %v4163_v49  ;;  %4457 = vrot.lane.b32.xlu1 %v5292_v17, %s4971_s11 }
  0xa5   : > { %4452 = vrot.lane.b32.xlu0 %v5207_v13, %s4971_s11  ;;  %v1768_v13 = vsel %vm1764_vm5, %v1731_v61, %v4140_v42  ;;  %v373_v42 = vld [vmem:[%s5032_s29 + $0xca] sm:$0xff] }
  0xa6   : > { %v5335_v62 = vpop.permute.xlu1 %4177  ;;  %v1876_v63 = vsel %vm1875_vm8, %v1839_v58, %v4164_v51  ;;  %v1877_v0 = vsel %vm1875_vm8, %v1840_v59, %v4165_v50  ;;  %v1805_v1 = vsel %vm1801_vm6, %v1768_v13, %v4150_v46  ;;  %v407_v46 = vld [vmem:[%s5032_s29 + $0xbb] sm:$0xff]  ;;  %v5393_v50 = vpack.i.bf16 %v373_v42, %v372_v41  ;;  %v444_v51 = vld [vmem:[%s5032_s29 + $0xc4] sm:$0xff]  ;;  %v282_v61 = vld [vmem:[%s5032_s29 + $0x30] sm:$0xff] }
  0xa7   : > { %v4173_v5 = vpop.permute.xlu0 %4172  ;;  %v1912_v6 = vpack.c.bf16 %v1877_v0, %v1876_v63  ;;  %v1842_v12 = vsel %vm1838_vm7, %v1805_v1, %v4160_v55  ;;  %v4180_v52 = vunpack.i.h.bf16 %v5335_v62  ;;  %v4179_v53 = vunpack.i.l.bf16 %v5335_v62  ;;  %v447_v58 = vld [vmem:[%s5032_s29 + $0xdc] sm:$0xff] }
  0xa8   : > { %v4175_v9 = vunpack.i.h.bf16 %v4173_v5  ;;  %v4174_v10 = vunpack.i.l.bf16 %v4173_v5  ;;  %4467 = vrot.lane.b32.xlu1 %v5297_v20, %s4972_s12  ;;  %v4521_v55 = vpack.i.bf16 %v407_v46, %v406_v40  ;;  %v4170_v59 = vunpack.i.h.bf16 %v5317_v44  ;;  %v283_v63 = vld [vmem:[%s5032_s29 + $0x38] sm:$0xff]  ;;  %v280_v62 = vld [vmem:[%s5032_s29 + $0x20] sm:$0xff] }
  0xa9   : > { %4462 = vrot.lane.b32.xlu0 %v5292_v17, %s4972_s12  ;;  %3846 = vmatprep.mubr.msk.bf16.mxu0 %vm1957_vm9, %v1912_v6  ;;  %v5416_v6 = vpack.i.bf16 %v445_v47, %v444_v51  ;;  %v5420_v1 = vpack.i.bf16 %v447_v58, %v446_v56 }
  0xaa   : > { %v1878_v18 = vsel %vm1875_vm8, %v1841_v11, %v4174_v10  ;;  %v1879_v19 = vsel %vm1875_vm8, %v1842_v12, %v4175_v9  ;;  %v5356_v21 = vpop.permute.xlu1 %4187  ;;  %v1623_v9 = vsel %vm1616_vm1, %v282_v61, %v4179_v53  ;;  %v1621_v12 = vsel %vm1616_vm1, %v280_v62, %v4169_v60  ;;  %v483_v53 = vld [vmem:[%s5032_s29 + $0xdd] sm:$0xff]  ;;  %v481_v62 = vld [vmem:[%s5032_s29 + $0xcd] sm:$0xff] }
  0xab   : > { %v5360_v24 = vpop.permute.xlu0 %4182  ;;  %v1913_v17 = vpack.c.bf16 %v1879_v19, %v1878_v18  ;;  %v4190_v0 = vunpack.i.h.bf16 %v5356_v21  ;;  %v4189_v2 = vunpack.i.l.bf16 %v5356_v21 }
  0xac   : > { %4477 = vrot.lane.b32.xlu1 %v4476_v7, %s4973_s13  ;;  %v4185_v4 = vunpack.i.h.bf16 %v5360_v24  ;;  %v4184_v13 = vunpack.i.l.bf16 %v5360_v24 }
  0xad   : > { %4472 = vrot.lane.b32.xlu0 %v4471_v14, %s4973_s13  ;;  %3847 = vmatmul.mubr.msk.bf16.vlgmr.msra.gmra.mrb[0].mxu0 %vm1957_vm9, %v1913_v17  ;;  %v1622_v14 = vsel %vm1616_vm1, %v281_v3, %v4170_v59  ;;  %v1660_v15 = vsel %vm1653_vm2, %v1623_v9, %v4189_v2  ;;  %v480_v2 = vld [vmem:[%s5032_s29 + $0xc5] sm:$0xff] }
  0xae   : > { %v5367_v29 = vpop.permute.xlu1 %4197  ;;  %v1658_v18 = vsel %vm1653_vm2, %v1621_v12, %v4184_v13  ;;  %v1659_v19 = vsel %vm1653_vm2, %v1622_v14, %v4185_v4  ;;  %v336_v12 = vld [vmem:[%s5032_s29 + $0xc1] sm:$0xff]  ;;  %v337_v14 = vld [vmem:[%s5032_s29 + $0xc9] sm:$0xff] }
  0xaf   : > { %v5371_v32 = vpop.permute.xlu0 %4192  ;;  %v4200_v44 = vunpack.i.h.bf16 %v5367_v29  ;;  %v4199_v7 = vunpack.i.l.bf16 %v5367_v29 }
  0xb0   : > { %4487 = vrot.lane.b32.xlu1 %v4486_v25, %s4968_s8  ;;  %v4195_v10 = vunpack.i.h.bf16 %v5371_v32  ;;  %v4194_v11 = vunpack.i.l.bf16 %v5371_v32 }
  0xb1   : > { %4482 = vrot.lane.b32.xlu0 %v4481_v26, %s4974_s14  ;;  %v1697_v24 = vsel %vm1690_vm3, %v1660_v15, %v4199_v7 }
  0xb2   : > { %v5377_v37 = vpop.permute.xlu1 %4207  ;;  %v1695_v28 = vsel %vm1690_vm3, %v1658_v18, %v4194_v11  ;;  %v1696_v29 = vsel %vm1690_vm3, %v1659_v19, %v4195_v10  ;;  %v4551_v11 = vpack.i.bf16 %v481_v62, %v480_v2  ;;  %v516_v19 = vld [vmem:[%s5032_s29 + $0xc6] sm:$0xff] }
  0xb3   : > { %v5379_v38 = vpop.permute.xlu0 %4202  ;;  %v4210_v32 = vunpack.i.h.bf16 %v5377_v37  ;;  %v284_v2 = vld [vmem:[%s5032_s29 + $0x40] sm:$0xff] }
  0xb4   : > { %4497 = vrot.lane.b32.xlu1 %v4496_v33, %s4968_s8  ;;  %v4205_v21 = vunpack.i.h.bf16 %v5379_v38  ;;  %v4204_v22 = vunpack.i.l.bf16 %v5379_v38  ;;  %v4209_v33 = vunpack.i.l.bf16 %v5377_v37 }
  0xb5   : > { %4492 = vrot.lane.b32.xlu0 %v4491_v34, %s4974_s14 }
  0xb6   : > { %v5389_v48 = vpop.permute.xlu1 %4217  ;;  %v1732_v36 = vsel %vm1727_vm4, %v1695_v28, %v4204_v22  ;;  %v1733_v38 = vsel %vm1727_vm4, %v1696_v29, %v4205_v21  ;;  %v1734_v59 = vsel %vm1727_vm4, %v1697_v24, %v4209_v33  ;;  %v517_v21 = vld [vmem:[%s5032_s29 + $0xce] sm:$0xff]  ;;  %v519_v28 = vld [vmem:[%s5032_s29 + $0xde] sm:$0xff] }
  0xb7   : > { %v5391_v49 = vpop.permute.xlu0 %4212  ;;  %v4219_v41 = vunpack.i.l.bf16 %v5389_v48  ;;  %v4561_v24 = vpack.i.bf16 %v517_v21, %v516_v19  ;;  %v375_v33 = vld [vmem:[%s5032_s29 + $0xda] sm:$0xff] }
  0xb8   : > { %4507 = vrot.lane.b32.xlu1 %v4506_v39, %s4967_s30  ;;  %v4215_v25 = vunpack.i.h.bf16 %v5391_v49  ;;  %v4214_v26 = vunpack.i.l.bf16 %v5391_v49 }
  0xb9   : > { %4502 = vrot.lane.b32.xlu0 %v5266_v57, %s4967_s30  ;;  %v1624_v57 = vsel %vm1616_vm1, %v283_v63, %v4180_v52  ;;  %v1771_v3 = vsel %vm1764_vm5, %v1734_v59, %v4219_v41  ;;  %v412_v41 = vld [vmem:[%s5032_s29 + $0xe3] sm:$0xff]  ;;  %v286_v59 = vld [vmem:[%s5032_s29 + $0x50] sm:$0xff] }
  0xba   : > { %v5414_v5 = vpop.permute.xlu1 %4227  ;;  %v1661_v16 = vsel %vm1653_vm2, %v1624_v57, %v4190_v0  ;;  %v1769_v43 = vsel %vm1764_vm5, %v1732_v36, %v4214_v26  ;;  %v1770_v37 = vsel %vm1764_vm5, %v1733_v38, %v4215_v25  ;;  %v339_v25 = vld [vmem:[%s5032_s29 + $0xd9] sm:$0xff]  ;;  %v376_v38 = vld [vmem:[%s5032_s29 + $0xe2] sm:$0xff] }
  0xbb   : > { %v4223_v8 = vpop.permute.xlu0 %4222  ;;  %v1698_v17 = vsel %vm1690_vm3, %v1661_v16, %v4200_v44  ;;  %v4230_v45 = vunpack.i.h.bf16 %v5414_v5  ;;  %v4229_v40 = vunpack.i.l.bf16 %v5414_v5 }
  0xbc   : > { %4517 = vrot.lane.b32.xlu1 %v5393_v50, %s4969_s9  ;;  %v4225_v30 = vunpack.i.h.bf16 %v4223_v8  ;;  %v4224_v31 = vunpack.i.l.bf16 %v4223_v8  ;;  %v1735_v60 = vsel %vm1727_vm4, %v1698_v17, %v4210_v32  ;;  %v338_v17 = vld [vmem:[%s5032_s29 + $0xd1] sm:$0xff] }
  0xbd   : > { %4512 = vrot.lane.b32.xlu0 %v4506_v39, %s4969_s9  ;;  %v4220_v39 = vunpack.i.h.bf16 %v5389_v48  ;;  %v482_v48 = vld [vmem:[%s5032_s29 + $0xd5] sm:$0xff]  ;;  %v1808_v44 = vsel %vm1801_vm6, %v1771_v3, %v4229_v40 }
  0xbe   : > { %v4238_v23 = vpop.permute.xlu1 %4237  ;;  %v1806_v49 = vsel %vm1801_vm6, %v1769_v43, %v4224_v31  ;;  %v1807_v51 = vsel %vm1801_vm6, %v1770_v37, %v4225_v30  ;;  %v4556_v5 = vpack.i.bf16 %v483_v53, %v482_v48  ;;  %v4576_v30 = vpack.i.bf16 %v339_v25, %v338_v17  ;;  %v374_v32 = vld [vmem:[%s5032_s29 + $0xd2] sm:$0xff] }
  0xbf   : > { %v4233_v27 = vpop.permute.xlu0 %4232  ;;  %v1772_v4 = vsel %vm1764_vm5, %v1735_v60, %v4220_v39  ;;  %v4586_v36 = vpack.i.bf16 %v375_v33, %v374_v32  ;;  %v377_v39 = vld [vmem:[%s5032_s29 + $0xea] sm:$0xff]  ;;  %v287_v60 = vld [vmem:[%s5032_s29 + $0x58] sm:$0xff] }
  0xc0   : > { %4527 = vrot.lane.b32.xlu1 %v4526_v54, %s4970_s10  ;;  %v4235_v34 = vunpack.i.h.bf16 %v4233_v27  ;;  %v4234_v35 = vunpack.i.l.bf16 %v4233_v27  ;;  %v4240_v54 = vunpack.i.h.bf16 %v4238_v23  ;;  %v1809_v7 = vsel %vm1801_vm6, %v1772_v4, %v4230_v45  ;;  %v518_v27 = vld [vmem:[%s5032_s29 + $0xd6] sm:$0xff]  ;;  %v413_v43 = vld [vmem:[%s5032_s29 + $0xeb] sm:$0xff] }
  0xc1   : > { %4522 = vrot.lane.b32.xlu0 %v4521_v55, %s4970_s10  ;;  %v4239_v55 = vunpack.i.l.bf16 %v4238_v23  ;;  %v4566_v23 = vpack.i.bf16 %v337_v14, %v336_v12  ;;  %v4571_v31 = vpack.i.bf16 %v519_v28, %v518_v27  ;;  %v410_v45 = vld [vmem:[%s5032_s29 + $0xd3] sm:$0xff]  ;;  %v4606_v53 = vpack.i.bf16 %v413_v43, %v412_v41 }
  0xc2   : > { %v5451_v42 = vpop.permute.xlu1 %4247  ;;  %v1843_v56 = vsel %vm1838_vm7, %v1806_v49, %v4234_v35  ;;  %v1844_v58 = vsel %vm1838_vm7, %v1807_v51, %v4235_v34  ;;  %v1846_v10 = vsel %vm1838_vm7, %v1809_v7, %v4240_v54  ;;  %v411_v49 = vld [vmem:[%s5032_s29 + $0xdb] sm:$0xff]  ;;  %v448_v51 = vld [vmem:[%s5032_s29 + $0xe4] sm:$0xff] }
  0xc3   : > { %v4243_v46 = vpop.permute.xlu0 %4242  ;;  %v1845_v57 = vsel %vm1838_vm7, %v1808_v44, %v4239_v55  ;;  %v450_v54 = vld [vmem:[%s5032_s29 + $0xf4] sm:$0xff]  ;;  %v451_v55 = vld [vmem:[%s5032_s29 + $0xfc] sm:$0xff] }
  0xc4   : > { %v4245_v47 = vunpack.i.h.bf16 %v4243_v46  ;;  %v4244_v52 = vunpack.i.l.bf16 %v4243_v46  ;;  %4537 = vrot.lane.b32.xlu1 %v5416_v6, %s4971_s11  ;;  %v5526_v46 = vpack.i.bf16 %v377_v39, %v376_v38  ;;  %v5554_v7 = vpack.i.bf16 %v451_v55, %v450_v54 }
  0xc5   : > { %4532 = vrot.lane.b32.xlu0 %v5297_v20, %s4971_s11 }
  0xc6   : > { %v1880_v61 = vsel %vm1875_vm8, %v1843_v56, %v4244_v52  ;;  %v1881_v63 = vsel %vm1875_vm8, %v1844_v58, %v4245_v47  ;;  %v5471_v0 = vpop.permute.xlu1 %4257  ;;  %v449_v47 = vld [vmem:[%s5032_s29 + $0xec] sm:$0xff]  ;;  %v4250_v56 = vunpack.i.h.bf16 %v5451_v42  ;;  %v4249_v58 = vunpack.i.l.bf16 %v5451_v42 }
  0xc7   : > { %v4253_v13 = vpop.permute.xlu0 %4252  ;;  %v1914_v20 = vpack.c.bf16 %v1881_v63, %v1880_v61  ;;  %v4260_v52 = vunpack.i.h.bf16 %v5471_v0  ;;  %v4259_v48 = vunpack.i.l.bf16 %v5471_v0  ;;  %v285_v0 = vld [vmem:[%s5032_s29 + $0x48] sm:$0xff] }
  0xc8   : > { %v4255_v8 = vunpack.i.h.bf16 %v4253_v13  ;;  %v4254_v9 = vunpack.i.l.bf16 %v4253_v13  ;;  %4547 = vrot.lane.b32.xlu1 %v5420_v1, %s4972_s12  ;;  %v4601_v13 = vpack.i.bf16 %v411_v49, %v410_v45 }
  0xc9   : > { %4542 = vrot.lane.b32.xlu0 %v5416_v6, %s4972_s12  ;;  %3850 = vmatprep.mubr.msk.bf16.mxu0 %vm1957_vm9, %v1914_v20  ;;  %v5550_v20 = vpack.i.bf16 %v449_v47, %v448_v51 }
  0xca   : > { %v1882_v15 = vsel %vm1875_vm8, %v1845_v57, %v4254_v9  ;;  %v1883_v16 = vsel %vm1875_vm8, %v1846_v10, %v4255_v8  ;;  %v5490_v18 = vpop.permute.xlu1 %4267  ;;  %v1628_v8 = vsel %vm1616_vm1, %v287_v60, %v4260_v52  ;;  %v1625_v10 = vsel %vm1616_vm1, %v284_v2, %v4249_v58  ;;  %v484_v2 = vld [vmem:[%s5032_s29 + $0xe5] sm:$0xff] }
  0xcb   : > { %v5494_v22 = vpop.permute.xlu0 %4262  ;;  %v1915_v6 = vpack.c.bf16 %v1883_v16, %v1882_v15  ;;  %v4270_v61 = vunpack.i.h.bf16 %v5490_v18  ;;  %v4269_v63 = vunpack.i.l.bf16 %v5490_v18 }
  0xcc   : > { %4557 = vrot.lane.b32.xlu1 %v4556_v5, %s4973_s13  ;;  %v4265_v62 = vunpack.i.h.bf16 %v5494_v22  ;;  %v4264_v3 = vunpack.i.l.bf16 %v5494_v22 }
  0xcd   : > { %4552 = vrot.lane.b32.xlu0 %v4551_v11, %s4973_s13  ;;  %3851 = vmatmul.mubr.msk.bf16.gmra.mrb[4].mxu0 %vm1957_vm9, %v1915_v6  ;;  %v1626_v11 = vsel %vm1616_vm1, %v285_v0, %v4250_v56  ;;  %v1665_v14 = vsel %vm1653_vm2, %v1628_v8, %v4270_v61  ;;  %v485_v0 = vld [vmem:[%s5032_s29 + $0xed] sm:$0xff] }
  0xce   : > { %v5501_v26 = vpop.permute.xlu1 %4277  ;;  %v1662_v15 = vsel %vm1653_vm2, %v1625_v10, %v4264_v3  ;;  %v1663_v16 = vsel %vm1653_vm2, %v1626_v11, %v4265_v62  ;;  %v340_v10 = vld [vmem:[%s5032_s29 + $0xe1] sm:$0xff]  ;;  %v341_v11 = vld [vmem:[%s5032_s29 + $0xe9] sm:$0xff] }
  0xcf   : > { %v5505_v29 = vpop.permute.xlu0 %4272  ;;  %v4280_v42 = vunpack.i.h.bf16 %v5501_v26  ;;  %v4279_v5 = vunpack.i.l.bf16 %v5501_v26 }
  0xd0   : > { %4567 = vrot.lane.b32.xlu1 %v4566_v23, %s4968_s8  ;;  %v4275_v9 = vunpack.i.h.bf16 %v5505_v29  ;;  %v4274_v57 = vunpack.i.l.bf16 %v5505_v29 }
  0xd1   : > { %4562 = vrot.lane.b32.xlu0 %v4561_v24, %s4974_s14  ;;  %v1702_v6 = vsel %vm1690_vm3, %v1665_v14, %v4280_v42 }
  0xd2   : > { %v5511_v34 = vpop.permute.xlu1 %4287  ;;  %v1699_v25 = vsel %vm1690_vm3, %v1662_v15, %v4274_v57  ;;  %v1700_v26 = vsel %vm1690_vm3, %v1663_v16, %v4275_v9  ;;  %v4631_v57 = vpack.i.bf16 %v485_v0, %v484_v2  ;;  %v520_v16 = vld [vmem:[%s5032_s29 + $0xe6] sm:$0xff] }
  0xd3   : > { %v5513_v35 = vpop.permute.xlu0 %4282  ;;  %v4290_v29 = vunpack.i.h.bf16 %v5511_v34  ;;  %v289_v0 = vld [vmem:[%s5032_s29 + $0x68] sm:$0xff] }
  0xd4   : > { %4577 = vrot.lane.b32.xlu1 %v4576_v30, %s4968_s8  ;;  %v4285_v18 = vunpack.i.h.bf16 %v5513_v35  ;;  %v4284_v19 = vunpack.i.l.bf16 %v5513_v35  ;;  %v4289_v30 = vunpack.i.l.bf16 %v5511_v34 }
  0xd5   : > { %4572 = vrot.lane.b32.xlu0 %v4571_v31, %s4974_s14 }
  0xd6   : > { %v5521_v37 = vpop.permute.xlu1 %4297  ;;  %v1736_v33 = vsel %vm1727_vm4, %v1699_v25, %v4284_v19  ;;  %v1737_v35 = vsel %vm1727_vm4, %v1700_v26, %v4285_v18  ;;  %v521_v18 = vld [vmem:[%s5032_s29 + $0xee] sm:$0xff]  ;;  %v523_v25 = vld [vmem:[%s5032_s29 + $0xfe] sm:$0xff] }
  0xd7   : > { %v5524_v40 = vpop.permute.xlu0 %4292  ;;  %v4299_v38 = vunpack.i.l.bf16 %v5521_v37 }
  0xd8   : > { %4587 = vrot.lane.b32.xlu1 %v4586_v36, %s4967_s30  ;;  %v4295_v23 = vunpack.i.h.bf16 %v5524_v40  ;;  %v4294_v24 = vunpack.i.l.bf16 %v5524_v40 }
  0xd9   : > { %4582 = vrot.lane.b32.xlu0 %v5393_v50, %s4967_s30  ;;  %v1627_v50 = vsel %vm1616_vm1, %v286_v59, %v4259_v48  ;;  %v487_v48 = vld [vmem:[%s5032_s29 + $0xfd] sm:$0xff]  ;;  %v1739_v59 = vsel %vm1727_vm4, %v1702_v6, %v4290_v29  ;;  %v342_v6 = vld [vmem:[%s5032_s29 + $0xf1] sm:$0xff] }
  0xda   : > { %v5548_v4 = vpop.permute.xlu1 %4307  ;;  %v1664_v12 = vsel %vm1653_vm2, %v1627_v50, %v4269_v63  ;;  %v1773_v41 = vsel %vm1764_vm5, %v1736_v33, %v4294_v24  ;;  %v1774_v34 = vsel %vm1764_vm5, %v1737_v35, %v4295_v23  ;;  %v343_v23 = vld [vmem:[%s5032_s29 + $0xf9] sm:$0xff]  ;;  %v380_v35 = vld [vmem:[%s5032_s29 + $0x102] sm:$0xff] }
  0xdb   : > { %v4303_v44 = vpop.permute.xlu0 %4302  ;;  %v1701_v22 = vsel %vm1690_vm3, %v1664_v12, %v4279_v5  ;;  %v4310_v43 = vunpack.i.h.bf16 %v5548_v4  ;;  %v4309_v45 = vunpack.i.l.bf16 %v5548_v4  ;;  %v378_v29 = vld [vmem:[%s5032_s29 + $0xf2] sm:$0xff] }
  0xdc   : > { %4597 = vrot.lane.b32.xlu1 %v5526_v46, %s4969_s9  ;;  %v4305_v27 = vunpack.i.h.bf16 %v4303_v44  ;;  %v4304_v28 = vunpack.i.l.bf16 %v4303_v44  ;;  %v1738_v58 = vsel %vm1727_vm4, %v1701_v22, %v4289_v30  ;;  %v4641_v22 = vpack.i.bf16 %v521_v18, %v520_v16  ;;  %v379_v30 = vld [vmem:[%s5032_s29 + $0xfa] sm:$0xff] }
  0xdd   : > { %4592 = vrot.lane.b32.xlu0 %v4586_v36, %s4969_s9  ;;  %v4300_v36 = vunpack.i.h.bf16 %v5521_v37  ;;  %v486_v37 = vld [vmem:[%s5032_s29 + $0xf5] sm:$0xff]  ;;  %v1775_v62 = vsel %vm1764_vm5, %v1738_v58, %v4299_v38  ;;  %v4666_v33 = vpack.i.bf16 %v379_v30, %v378_v29  ;;  %v416_v38 = vld [vmem:[%s5032_s29 + $0x103] sm:$0xff] }
  0xde   : > { %v4318_v21 = vpop.permute.xlu1 %4317  ;;  %v1810_v49 = vsel %vm1801_vm6, %v1773_v41, %v4304_v28  ;;  %v1811_v51 = vsel %vm1801_vm6, %v1774_v34, %v4305_v27  ;;  %v1812_v42 = vsel %vm1801_vm6, %v1775_v62, %v4309_v45  ;;  %v4656_v27 = vpack.i.bf16 %v343_v23, %v342_v6  ;;  %v417_v41 = vld [vmem:[%s5032_s29 + $0x10b] sm:$0xff]  ;;  %v414_v34 = vld [vmem:[%s5032_s29 + $0xf3] sm:$0xff] }
  0xdf   : > { %v4313_v17 = vpop.permute.xlu0 %4312  ;;  %v4319_v54 = vunpack.i.l.bf16 %v4318_v21  ;;  %v1776_v3 = vsel %vm1764_vm5, %v1739_v59, %v4300_v36  ;;  %v381_v36 = vld [vmem:[%s5032_s29 + $0x10a] sm:$0xff] }
  0xe0   : > { %4607 = vrot.lane.b32.xlu1 %v4606_v53, %s4970_s10  ;;  %v4315_v31 = vunpack.i.h.bf16 %v4313_v17  ;;  %v4314_v32 = vunpack.i.l.bf16 %v4313_v17  ;;  %v4320_v53 = vunpack.i.h.bf16 %v4318_v21  ;;  %v1813_v5 = vsel %vm1801_vm6, %v1776_v3, %v4310_v43  ;;  %v522_v17 = vld [vmem:[%s5032_s29 + $0xf6] sm:$0xff] }
  0xe1   : > { %4602 = vrot.lane.b32.xlu0 %v4601_v13, %s4970_s10  ;;  %v4636_v13 = vpack.i.bf16 %v487_v48, %v486_v37  ;;  %v1849_v8 = vsel %vm1838_vm7, %v1812_v42, %v4319_v54  ;;  %v4651_v28 = vpack.i.bf16 %v523_v25, %v522_v17  ;;  %v415_v43 = vld [vmem:[%s5032_s29 + $0xfb] sm:$0xff]  ;;  %v4686_v48 = vpack.i.bf16 %v417_v41, %v416_v38  ;;  %v290_v59 = vld [vmem:[%s5032_s29 + $0x70] sm:$0xff] }
  0xe2   : > { %v5585_v39 = vpop.permute.xlu1 %4327  ;;  %v1847_v55 = vsel %vm1838_vm7, %v1810_v49, %v4314_v32  ;;  %v1848_v56 = vsel %vm1838_vm7, %v1811_v51, %v4315_v31  ;;  %v1850_v9 = vsel %vm1838_vm7, %v1813_v5, %v4320_v53  ;;  %v5661_v49 = vpack.i.bf16 %v381_v36, %v380_v35  ;;  %v452_v51 = vld [vmem:[%s5032_s29 + $0x104] sm:$0xff]  ;;  %v454_v54 = vld [vmem:[%s5032_s29 + $0x114] sm:$0xff] }
  0xe3   : > { %v4323_v40 = vpop.permute.xlu0 %4322  ;;  %v4681_v53 = vpack.i.bf16 %v415_v43, %v414_v34  ;;  %v4329_v58 = vunpack.i.l.bf16 %v5585_v39 }
  0xe4   : > { %v4325_v47 = vunpack.i.h.bf16 %v4323_v40  ;;  %v4324_v52 = vunpack.i.l.bf16 %v4323_v40  ;;  %4617 = vrot.lane.b32.xlu1 %v5550_v20, %s4971_s11 }
  0xe5   : > { %4612 = vrot.lane.b32.xlu0 %v5420_v1, %s4971_s11 }
  0xe6   : > { %v1884_v60 = vsel %vm1875_vm8, %v1847_v55, %v4324_v52  ;;  %v1885_v61 = vsel %vm1875_vm8, %v1848_v56, %v4325_v47  ;;  %v5605_v63 = vpop.permute.xlu1 %4337  ;;  %v453_v47 = vld [vmem:[%s5032_s29 + $0x10c] sm:$0xff]  ;;  %v455_v55 = vld [vmem:[%s5032_s29 + $0x11c] sm:$0xff]  ;;  %v4330_v56 = vunpack.i.h.bf16 %v5585_v39 }
  0xe7   : > { %v1916_v4 = vpack.c.bf16 %v1885_v61, %v1884_v60  ;;  %v4333_v1 = vpop.permute.xlu0 %4332  ;;  %v4340_v52 = vunpack.i.h.bf16 %v5605_v63  ;;  %v4339_v37 = vunpack.i.l.bf16 %v5605_v63  ;;  %v291_v60 = vld [vmem:[%s5032_s29 + $0x78] sm:$0xff]  ;;  %v288_v63 = vld [vmem:[%s5032_s29 + $0x60] sm:$0xff]  ;;  %v5688_v5 = vpack.i.bf16 %v455_v55, %v454_v54 }
  0xe8   : > { %v4335_v44 = vunpack.i.h.bf16 %v4333_v1  ;;  %v4334_v50 = vunpack.i.l.bf16 %v4333_v1  ;;  %4627 = vrot.lane.b32.xlu1 %v5554_v7, %s4972_s12  ;;  %v5684_v1 = vpack.i.bf16 %v453_v47, %v452_v51 }
  0xe9   : > { %4622 = vrot.lane.b32.xlu0 %v5550_v20, %s4972_s12  ;;  %3854 = vmatprep.mubr.msk.bf16.mxu0 %vm1957_vm9, %v1916_v4  ;;  %v4646_v20 = vpack.i.bf16 %v341_v11, %v340_v10 }
  0xea   : > { %v1886_v12 = vsel %vm1875_vm8, %v1849_v8, %v4334_v50  ;;  %v1887_v14 = vsel %vm1875_vm8, %v1850_v9, %v4335_v44  ;;  %v5624_v15 = vpop.permute.xlu1 %4347  ;;  %v1631_v44 = vsel %vm1616_vm1, %v290_v59, %v4339_v37  ;;  %v1629_v9 = vsel %vm1616_vm1, %v288_v63, %v4329_v58  ;;  %v491_v37 = vld [vmem:[%s5032_s29 + $0x11d] sm:$0xff]  ;;  %v489_v63 = vld [vmem:[%s5032_s29 + $0x10d] sm:$0xff] }
  0xeb   : > { %v1917_v19 = vpack.c.bf16 %v1887_v14, %v1886_v12  ;;  %v5628_v21 = vpop.permute.xlu0 %4342  ;;  %v4350_v61 = vunpack.i.h.bf16 %v5624_v15  ;;  %v4349_v2 = vunpack.i.l.bf16 %v5624_v15 }
  0xec   : > { %4637 = vrot.lane.b32.xlu1 %v4636_v13, %s4973_s13  ;;  %v4345_v62 = vunpack.i.h.bf16 %v5628_v21  ;;  %v4344_v3 = vunpack.i.l.bf16 %v5628_v21 }
  0xed   : > { %4632 = vrot.lane.b32.xlu0 %v4631_v57, %s4973_s13  ;;  %3855 = vmatmul.mubr.msk.bf16.gmra.mrb[8].mxu0 %vm1957_vm9, %v1917_v19  ;;  %v1630_v57 = vsel %vm1616_vm1, %v289_v0, %v4330_v56  ;;  %v1668_v10 = vsel %vm1653_vm2, %v1631_v44, %v4349_v2  ;;  %v488_v2 = vld [vmem:[%s5032_s29 + $0x105] sm:$0xff] }
  0xee   : > { %v5635_v24 = vpop.permute.xlu1 %4357  ;;  %v1666_v12 = vsel %vm1653_vm2, %v1629_v9, %v4344_v3  ;;  %v1667_v14 = vsel %vm1653_vm2, %v1630_v57, %v4345_v62  ;;  %v344_v9 = vld [vmem:[%s5032_s29 + $0x101] sm:$0xff]  ;;  %v345_v57 = vld [vmem:[%s5032_s29 + $0x109] sm:$0xff] }
  0xef   : > { %v5639_v26 = vpop.permute.xlu0 %4352  ;;  %v4360_v39 = vunpack.i.h.bf16 %v5635_v24  ;;  %v4359_v13 = vunpack.i.l.bf16 %v5635_v24 }
  0xf0   : > { %4647 = vrot.lane.b32.xlu1 %v4646_v20, %s4968_s8  ;;  %v4355_v50 = vunpack.i.h.bf16 %v5639_v26  ;;  %v4354_v8 = vunpack.i.l.bf16 %v5639_v26 }
  0xf1   : > { %4642 = vrot.lane.b32.xlu0 %v4641_v22, %s4974_s14  ;;  %v1705_v19 = vsel %vm1690_vm3, %v1668_v10, %v4359_v13 }
  0xf2   : > { %v5645_v31 = vpop.permute.xlu1 %4367  ;;  %v1703_v23 = vsel %vm1690_vm3, %v1666_v12, %v4354_v8  ;;  %v1704_v24 = vsel %vm1690_vm3, %v1667_v14, %v4355_v50  ;;  %v4711_v8 = vpack.i.bf16 %v489_v63, %v488_v2  ;;  %v524_v14 = vld [vmem:[%s5032_s29 + $0x106] sm:$0xff] }
  0xf3   : > { %v5647_v32 = vpop.permute.xlu0 %4362  ;;  %v4370_v26 = vunpack.i.h.bf16 %v5645_v31  ;;  %v293_v63 = vld [vmem:[%s5032_s29 + $0x88] sm:$0xff] }
  0xf4   : > { %4657 = vrot.lane.b32.xlu1 %v4656_v27, %s4968_s8  ;;  %v4365_v15 = vunpack.i.h.bf16 %v5647_v32  ;;  %v4364_v16 = vunpack.i.l.bf16 %v5647_v32  ;;  %v4369_v27 = vunpack.i.l.bf16 %v5645_v31 }
  0xf5   : > { %4652 = vrot.lane.b32.xlu0 %v4651_v28, %s4974_s14 }
  0xf6   : > { %v5657_v45 = vpop.permute.xlu1 %4377  ;;  %v1740_v30 = vsel %vm1727_vm4, %v1703_v23, %v4364_v16  ;;  %v1741_v32 = vsel %vm1727_vm4, %v1704_v24, %v4365_v15  ;;  %v1742_v56 = vsel %vm1727_vm4, %v1705_v19, %v4369_v27  ;;  %v525_v15 = vld [vmem:[%s5032_s29 + $0x10e] sm:$0xff]  ;;  %v527_v23 = vld [vmem:[%s5032_s29 + $0x11e] sm:$0xff] }
  0xf7   : > { %v5659_v40 = vpop.permute.xlu0 %4372  ;;  %v4379_v35 = vunpack.i.l.bf16 %v5657_v45  ;;  %v4721_v19 = vpack.i.bf16 %v525_v15, %v524_v14  ;;  %v383_v27 = vld [vmem:[%s5032_s29 + $0x11a] sm:$0xff] }
  0xf8   : > { %4667 = vrot.lane.b32.xlu1 %v4666_v33, %s4967_s30  ;;  %v4375_v20 = vunpack.i.h.bf16 %v5659_v40  ;;  %v4374_v22 = vunpack.i.l.bf16 %v5659_v40 }
  0xf9   : > { %4662 = vrot.lane.b32.xlu0 %v5526_v46, %s4967_s30  ;;  %v1632_v46 = vsel %vm1616_vm1, %v291_v60, %v4340_v52  ;;  %v1779_v0 = vsel %vm1764_vm5, %v1742_v56, %v4379_v35  ;;  %v420_v35 = vld [vmem:[%s5032_s29 + $0x123] sm:$0xff] }
  0xfa   : > { %v5682_v4 = vpop.permute.xlu1 %4387  ;;  %v1669_v11 = vsel %vm1653_vm2, %v1632_v46, %v4350_v61  ;;  %v1777_v38 = vsel %vm1764_vm5, %v1740_v30, %v4374_v22  ;;  %v1778_v31 = vsel %vm1764_vm5, %v1741_v32, %v4375_v20  ;;  %v347_v20 = vld [vmem:[%s5032_s29 + $0x119] sm:$0xff]  ;;  %v384_v32 = vld [vmem:[%s5032_s29 + $0x122] sm:$0xff] }
  0xfb   : > { %v4383_v42 = vpop.permute.xlu0 %4382  ;;  %v1706_v21 = vsel %vm1690_vm3, %v1669_v11, %v4360_v39  ;;  %v4390_v41 = vunpack.i.h.bf16 %v5682_v4  ;;  %v4389_v34 = vunpack.i.l.bf16 %v5682_v4 }
  0xfc   : > { %4677 = vrot.lane.b32.xlu1 %v5661_v49, %s4969_s9  ;;  %v4385_v17 = vunpack.i.h.bf16 %v4383_v42  ;;  %v4384_v25 = vunpack.i.l.bf16 %v4383_v42  ;;  %v1743_v58 = vsel %vm1727_vm4, %v1706_v21, %v4370_v26  ;;  %v346_v21 = vld [vmem:[%s5032_s29 + $0x111] sm:$0xff] }
  0xfd   : > { %4672 = vrot.lane.b32.xlu0 %v4666_v33, %s4969_s9  ;;  %v4380_v33 = vunpack.i.h.bf16 %v5657_v45  ;;  %v490_v45 = vld [vmem:[%s5032_s29 + $0x115] sm:$0xff]  ;;  %v1816_v39 = vsel %vm1801_vm6, %v1779_v0, %v4389_v34 }
  0xfe   : > { %v4398_v18 = vpop.permute.xlu1 %4397  ;;  %v1814_v40 = vsel %vm1801_vm6, %v1777_v38, %v4384_v25  ;;  %v1815_v51 = vsel %vm1801_vm6, %v1778_v31, %v4385_v17  ;;  %v4716_v4 = vpack.i.bf16 %v491_v37, %v490_v45  ;;  %v4736_v17 = vpack.i.bf16 %v347_v20, %v346_v21  ;;  %v382_v26 = vld [vmem:[%s5032_s29 + $0x112] sm:$0xff] }
  0xff   : > { %v4393_v6 = vpop.permute.xlu0 %4392  ;;  %v1780_v62 = vsel %vm1764_vm5, %v1743_v58, %v4380_v33  ;;  %v4746_v30 = vpack.i.bf16 %v383_v27, %v382_v26  ;;  %v385_v33 = vld [vmem:[%s5032_s29 + $0x12a] sm:$0xff]  ;;  %v418_v31 = vld [vmem:[%s5032_s29 + $0x113] sm:$0xff] }
 0x100   : > { %4687 = vrot.lane.b32.xlu1 %v4686_v48, %s4970_s10  ;;  %v4395_v28 = vunpack.i.h.bf16 %v4393_v6  ;;  %v4394_v29 = vunpack.i.l.bf16 %v4393_v6  ;;  %v4400_v48 = vunpack.i.h.bf16 %v4398_v18  ;;  %v1817_v13 = vsel %vm1801_vm6, %v1780_v62, %v4390_v41  ;;  %v526_v6 = vld [vmem:[%s5032_s29 + $0x116] sm:$0xff]  ;;  %v421_v38 = vld [vmem:[%s5032_s29 + $0x12b] sm:$0xff] }
 0x101   : > { %4682 = vrot.lane.b32.xlu0 %v4681_v53, %s4970_s10  ;;  %v4399_v53 = vunpack.i.l.bf16 %v4398_v18  ;;  %v4731_v25 = vpack.i.bf16 %v527_v23, %v526_v6  ;;  %v419_v41 = vld [vmem:[%s5032_s29 + $0x11b] sm:$0xff]  ;;  %v4766_v37 = vpack.i.bf16 %v421_v38, %v420_v35  ;;  %v294_v58 = vld [vmem:[%s5032_s29 + $0x90] sm:$0xff] }
 0x102   : > { %v5719_v36 = vpop.permute.xlu1 %4407  ;;  %v1851_v54 = vsel %vm1838_vm7, %v1814_v40, %v4394_v29  ;;  %v1852_v55 = vsel %vm1838_vm7, %v1815_v51, %v4395_v28  ;;  %v1854_v50 = vsel %vm1838_vm7, %v1817_v13, %v4400_v48  ;;  %v4756_v40 = vpack.i.bf16 %v385_v33, %v384_v32  ;;  %v456_v51 = vld [vmem:[%s5032_s29 + $0x124] sm:$0xff] }
 0x103   : > { %v4403_v43 = vpop.permute.xlu0 %4402  ;;  %v1853_v46 = vsel %vm1838_vm7, %v1816_v39, %v4399_v53  ;;  %v4761_v48 = vpack.i.bf16 %v419_v41, %v418_v31  ;;  %v5801_v53 = vld [vmem:[%s5032_s29 + $0x134] sm:$0xff]  ;;  %v4409_v56 = vunpack.i.l.bf16 %v5719_v36 }
 0x104   : > { %v4405_v47 = vunpack.i.h.bf16 %v4403_v43  ;;  %v4404_v52 = vunpack.i.l.bf16 %v4403_v43  ;;  %4697 = vrot.lane.b32.xlu1 %v5684_v1, %s4971_s11 }
 0x105   : > { %4692 = vrot.lane.b32.xlu0 %v5554_v7, %s4971_s11 }
 0x106   : > { %v1888_v59 = vsel %vm1875_vm8, %v1851_v54, %v4404_v52  ;;  %v1889_v60 = vsel %vm1875_vm8, %v1852_v55, %v4405_v47  ;;  %v5739_v61 = vpop.permute.xlu1 %4417  ;;  %v457_v47 = vld [vmem:[%s5032_s29 + $0x12c] sm:$0xff]  ;;  %v5804_v54 = vld [vmem:[%s5032_s29 + $0x13c] sm:$0xff]  ;;  %v4410_v55 = vunpack.i.h.bf16 %v5719_v36 }
 0x107   : > { %v1918_v3 = vpack.c.bf16 %v1889_v60, %v1888_v59  ;;  %v4413_v7 = vpop.permute.xlu0 %4412  ;;  %v4420_v52 = vunpack.i.h.bf16 %v5739_v61  ;;  %v4419_v45 = vunpack.i.l.bf16 %v5739_v61  ;;  %v295_v59 = vld [vmem:[%s5032_s29 + $0x98] sm:$0xff]  ;;  %v292_v61 = vld [vmem:[%s5032_s29 + $0x80] sm:$0xff]  ;;  %v4786_v13 = vpack.i.bf16 %v5804_v54, %v5801_v53  ;;  %v529_v53 = vld [vmem:[%s5032_s29 + $0x12e] sm:$0xff] }
 0x108   : > { %v4415_v42 = vunpack.i.h.bf16 %v4413_v7  ;;  %v4414_v44 = vunpack.i.l.bf16 %v4413_v7  ;;  %4707 = vrot.lane.b32.xlu1 %v5688_v5, %s4972_s12  ;;  %v5820_v7 = vpack.i.bf16 %v457_v47, %v456_v51 }
 0x109   : > { %4702 = vrot.lane.b32.xlu0 %v5684_v1, %s4972_s12  ;;  %3858 = vmatprep.mubr.msk.bf16.mxu0 %vm1957_vm9, %v1918_v3  ;;  %v4726_v1 = vpack.i.bf16 %v345_v57, %v344_v9 }
 0x10a   : > { %v1890_v10 = vsel %vm1875_vm8, %v1853_v46, %v4414_v44  ;;  %v1891_v11 = vsel %vm1875_vm8, %v1854_v50, %v4415_v42  ;;  %v5758_v12 = vpop.permute.xlu1 %4427  ;;  %v1636_v42 = vsel %vm1616_vm1, %v295_v59, %v4420_v52  ;;  %v1633_v50 = vsel %vm1616_vm1, %v292_v61, %v4409_v56  ;;  %v495_v52 = vld [vmem:[%s5032_s29 + $0x13d] sm:$0xff]  ;;  %v492_v61 = vld [vmem:[%s5032_s29 + $0x125] sm:$0xff] }
 0x10b   : > { %v1919_v16 = vpack.c.bf16 %v1891_v11, %v1890_v10  ;;  %v5762_v18 = vpop.permute.xlu0 %4422  ;;  %v4430_v60 = vunpack.i.h.bf16 %v5758_v12  ;;  %v4429_v2 = vunpack.i.l.bf16 %v5758_v12 }
 0x10c   : > { %4717 = vrot.lane.b32.xlu1 %v4716_v4, %s4973_s13  ;;  %v4425_v0 = vunpack.i.h.bf16 %v5762_v18  ;;  %v4424_v62 = vunpack.i.l.bf16 %v5762_v18 }
 0x10d   : > { %4712 = vrot.lane.b32.xlu0 %v4711_v8, %s4973_s13  ;;  %3859 = vmatmul.mubr.msk.bf16.gmra.mrb[12].mxu0 %vm1957_vm9, %v1919_v16  ;;  %v1634_v8 = vsel %vm1616_vm1, %v293_v63, %v4410_v55  ;;  %v1673_v57 = vsel %vm1653_vm2, %v1636_v42, %v4430_v60  ;;  %v493_v63 = vld [vmem:[%s5032_s29 + $0x12d] sm:$0xff] }
 0x10e   : > { %v5769_v22 = vpop.permute.xlu1 %4437  ;;  %v1670_v10 = vsel %vm1653_vm2, %v1633_v50, %v4424_v62  ;;  %v1671_v11 = vsel %vm1653_vm2, %v1634_v8, %v4425_v0  ;;  %v4791_v50 = vpack.i.bf16 %v493_v63, %v492_v61  ;;  %v530_v8 = vld [vmem:[%s5032_s29 + $0x136] sm:$0xff] }
 0x10f   : > { %v5773_v24 = vpop.permute.xlu0 %4432  ;;  %v4440_v36 = vunpack.i.h.bf16 %v5769_v22  ;;  %v4439_v4 = vunpack.i.l.bf16 %v5769_v22 }
 0x110   : > { %4727 = vrot.lane.b32.xlu1 %v4726_v1, %s4968_s8  ;;  %v4435_v44 = vunpack.i.h.bf16 %v5773_v24  ;;  %v4434_v46 = vunpack.i.l.bf16 %v5773_v24 }
 0x111   : > { %4722 = vrot.lane.b32.xlu0 %v4721_v19, %s4974_s14  ;;  %v1710_v18 = vsel %vm1690_vm3, %v1673_v57, %v4440_v36 }
 0x112   : > { %v5779_v28 = vpop.permute.xlu1 %4447  ;;  %v1707_v20 = vsel %vm1690_vm3, %v1670_v10, %v4434_v46  ;;  %v1708_v22 = vsel %vm1690_vm3, %v1671_v11, %v4435_v44 }
 0x113   : > { %v5781_v29 = vpop.permute.xlu0 %4442  ;;  %v4450_v24 = vunpack.i.h.bf16 %v5779_v28 }
 0x114   : > { %4737 = vrot.lane.b32.xlu1 %v4736_v17, %s4968_s8  ;;  %v4445_v12 = vunpack.i.h.bf16 %v5781_v29  ;;  %v4444_v14 = vunpack.i.l.bf16 %v5781_v29  ;;  %v4449_v17 = vunpack.i.l.bf16 %v5779_v28 }
 0x115   : > { %4732 = vrot.lane.b32.xlu0 %v4731_v25, %s4974_s14 }
 0x116   : > { %v5791_v34 = vpop.permute.xlu1 %4457  ;;  %v1744_v27 = vsel %vm1727_vm4, %v1707_v20, %v4444_v14  ;;  %v1745_v29 = vsel %vm1727_vm4, %v1708_v22, %v4445_v12  ;;  %v528_v12 = vld [vmem:[%s5032_s29 + $0x126] sm:$0xff] }
 0x117   : > { %v5793_v43 = vpop.permute.xlu0 %4452  ;;  %v4459_v32 = vunpack.i.l.bf16 %v5791_v34 }
 0x118   : > { %4747 = vrot.lane.b32.xlu1 %v4746_v30, %s4967_s30  ;;  %v4455_v1 = vunpack.i.h.bf16 %v5793_v43  ;;  %v4454_v19 = vunpack.i.l.bf16 %v5793_v43 }
 0x119   : > { %4742 = vrot.lane.b32.xlu0 %v5661_v49, %s4967_s30  ;;  %v1635_v49 = vsel %vm1616_vm1, %v294_v58, %v4419_v45  ;;  %v1747_v58 = vsel %vm1727_vm4, %v1710_v18, %v4450_v24  ;;  %v298_v24 = vld [vmem:[%s5032_s29 + $0xb0] sm:$0xff] }
 0x11a   : > { %v5818_v3 = vpop.permute.xlu1 %4467  ;;  %v1672_v9 = vsel %vm1653_vm2, %v1635_v49, %v4429_v2  ;;  %v1781_v35 = vsel %vm1764_vm5, %v1744_v27, %v4454_v19  ;;  %v1782_v28 = vsel %vm1764_vm5, %v1745_v29, %v4455_v1  ;;  %v296_v27 = vld [vmem:[%s5032_s29 + $0xa0] sm:$0xff]  ;;  %v297_v29 = vld [vmem:[%s5032_s29 + $0xa8] sm:$0xff] }
 0x11b   : > { %v4463_v39 = vpop.permute.xlu0 %4462  ;;  %v1709_v16 = vsel %vm1690_vm3, %v1672_v9, %v4439_v4  ;;  %v4470_v38 = vunpack.i.h.bf16 %v5818_v3  ;;  %v4469_v31 = vunpack.i.l.bf16 %v5818_v3  ;;  %v531_v9 = vld [vmem:[%s5032_s29 + $0x13e] sm:$0xff] }
 0x11c   : > { %4757 = vrot.lane.b32.xlu1 %v4756_v40, %s4969_s9  ;;  %v4465_v6 = vunpack.i.h.bf16 %v4463_v39  ;;  %v4464_v23 = vunpack.i.l.bf16 %v4463_v39  ;;  %v1746_v56 = vsel %vm1727_vm4, %v1709_v16, %v4449_v17  ;;  %v4806_v14 = vpack.i.bf16 %v531_v9, %v530_v8  ;;  %v299_v17 = vld [vmem:[%s5032_s29 + $0xb8] sm:$0xff] }
 0x11d   : > { %4752 = vrot.lane.b32.xlu0 %v4746_v30, %s4969_s9  ;;  %v4460_v30 = vunpack.i.h.bf16 %v5791_v34  ;;  %v494_v34 = vld [vmem:[%s5032_s29 + $0x135] sm:$0xff]  ;;  %v1783_v0 = vsel %vm1764_vm5, %v1746_v56, %v4459_v32 }
 0x11e   : > { %v4478_v15 = vpop.permute.xlu1 %4477  ;;  %v1818_v43 = vsel %vm1801_vm6, %v1781_v35, %v4464_v23  ;;  %v1819_v40 = vsel %vm1801_vm6, %v1782_v28, %v4465_v6  ;;  %v1820_v4 = vsel %vm1801_vm6, %v1783_v0, %v4469_v31 }
 0x11f   : > { %v4473_v21 = vpop.permute.xlu0 %4472  ;;  %v4480_v45 = vunpack.i.h.bf16 %v4478_v15  ;;  %v1784_v62 = vsel %vm1764_vm5, %v1747_v58, %v4460_v30 }
 0x120   : > { %4767 = vrot.lane.b32.xlu1 %v4766_v37, %s4970_s10  ;;  %v4475_v25 = vunpack.i.h.bf16 %v4473_v21  ;;  %v4474_v26 = vunpack.i.l.bf16 %v4473_v21  ;;  %v4479_v37 = vunpack.i.l.bf16 %v4478_v15  ;;  %v1821_v39 = vsel %vm1801_vm6, %v1784_v62, %v4470_v38 }
 0x121   : > { %4762 = vrot.lane.b32.xlu0 %v4761_v48, %s4970_s10  ;;  %v1858_v46 = vsel %vm1838_vm7, %v1821_v39, %v4480_v45 }
 0x122   : > { %v5854_v33 = vpop.permute.xlu1 %4487  ;;  %v1855_v48 = vsel %vm1838_vm7, %v1818_v43, %v4474_v26  ;;  %v1856_v55 = vsel %vm1838_vm7, %v1819_v40, %v4475_v25  ;;  %v1857_v44 = vsel %vm1838_vm7, %v1820_v4, %v4479_v37 }
 0x123   : > { %v4483_v41 = vpop.permute.xlu0 %4482  ;;  %v4490_v6 = vunpack.i.h.bf16 %v5854_v33  ;;  %v4489_v23 = vunpack.i.l.bf16 %v5854_v33 }
 0x124   : > { %v4485_v51 = vunpack.i.h.bf16 %v4483_v41  ;;  %v4484_v47 = vunpack.i.l.bf16 %v4483_v41  ;;  %4777 = vrot.lane.b32.xlu1 %v5820_v7, %s4971_s11 }
 0x125   : > { %4772 = vrot.lane.b32.xlu0 %v5688_v5, %s4971_s11  ;;  %v4796_v5 = vpack.i.bf16 %v495_v52, %v494_v34  ;;  %v1637_v33 = vsel %vm1616_vm1, %v296_v27, %v4489_v23 }
 0x126   : > { %v1892_v59 = vsel %vm1875_vm8, %v1855_v48, %v4484_v47  ;;  %v1893_v60 = vsel %vm1875_vm8, %v1856_v55, %v4485_v51  ;;  %v4498_v2 = vpop.permute.xlu1 %4497  ;;  %v1638_v47 = vsel %vm1616_vm1, %v297_v29, %v4490_v6 }
 0x127   : > { %v1920_v3 = vpack.c.bf16 %v1893_v60, %v1892_v59  ;;  %v4493_v36 = vpop.permute.xlu0 %4492  ;;  %v4500_v20 = vunpack.i.h.bf16 %v4498_v2  ;;  %v4499_v22 = vunpack.i.l.bf16 %v4498_v2 }
 0x128   : > { %v4495_v49 = vunpack.i.h.bf16 %v4493_v36  ;;  %v4494_v42 = vunpack.i.l.bf16 %v4493_v36  ;;  %4787 = vrot.lane.b32.xlu1 %v4786_v13, %s4972_s12 }
 0x129   : > { %4782 = vrot.lane.b32.xlu0 %v5820_v7, %s4972_s12  ;;  %3862 = vmatprep.mubr.msk.bf16.mxu0 %vm1957_vm9, %v1920_v3  ;;  %v4801_v7 = vpack.i.bf16 %v529_v53, %v528_v12  ;;  %v1639_v41 = vsel %vm1616_vm1, %v298_v24, %v4499_v22  ;;  %v1640_v43 = vsel %vm1616_vm1, %v299_v17, %v4500_v20 }
 0x12a   : > { %v1894_v57 = vsel %vm1875_vm8, %v1857_v44, %v4494_v42  ;;  %v1895_v10 = vsel %vm1875_vm8, %v1858_v46, %v4495_v49  ;;  %v4508_v11 = vpop.permute.xlu1 %4507 }
 0x12b   : > { %v1921_v54 = vpack.c.bf16 %v1895_v10, %v1894_v57  ;;  %v4503_v13 = vpop.permute.xlu0 %4502  ;;  %v4510_v25 = vunpack.i.h.bf16 %v4508_v11  ;;  %v4509_v26 = vunpack.i.l.bf16 %v4508_v11 }
 0x12c   : > { %4797 = vrot.lane.b32.xlu1 %v4796_v5, %s4973_s13  ;;  %v4505_v30 = vunpack.i.h.bf16 %v4503_v13  ;;  %v4504_v32 = vunpack.i.l.bf16 %v4503_v13 }
 0x12d   : > { %4792 = vrot.lane.b32.xlu0 %v4791_v50, %s4973_s13  ;;  %3863 = vmatmul.mubr.msk.bf16.gmra.mrb[16].mxu0 %vm1957_vm9, %v1921_v54  ;;  %v1676_v34 = vsel %vm1653_vm2, %v1639_v41, %v4509_v26  ;;  %v1677_v52 = vsel %vm1653_vm2, %v1640_v43, %v4510_v25  ;;  %v2445_v41 = vlaneseq }
 0x12e   : > { %v4518_v15 = vpop.permute.xlu1 %4517  ;;  %v1674_v45 = vsel %vm1653_vm2, %v1637_v33, %v4504_v32  ;;  %v1675_v37 = vsel %vm1653_vm2, %v1638_v47, %v4505_v30 }
 0x12f   : > { %v4513_v16 = vpop.permute.xlu0 %4512  ;;  %v4520_v28 = vunpack.i.h.bf16 %v4518_v15  ;;  %v4519_v38 = vunpack.i.l.bf16 %v4518_v15 }
 0x130   : > { %4807 = vrot.lane.b32.xlu1 %v4806_v14, %s4974_s14  ;;  %v4515_v40 = vunpack.i.h.bf16 %v4513_v16  ;;  %v4514_v51 = vunpack.i.l.bf16 %v4513_v16 }
 0x131   : > { %4802 = vrot.lane.b32.xlu0 %v4801_v7, %s4974_s14  ;;  %v1713_v58 = vsel %vm1690_vm3, %v1676_v34, %v4519_v38  ;;  %v1714_v59 = vsel %vm1690_vm3, %v1677_v52, %v4520_v28 }
 0x132   : > { %v5900_v18 = vpop.permute.xlu1 %4527  ;;  %v1711_v63 = vsel %vm1690_vm3, %v1674_v45, %v4514_v51  ;;  %v1712_v0 = vsel %vm1690_vm3, %v1675_v37, %v4515_v40  ;;  %v5950_v51 = vshrl.u32 %v2445_v41, 7 }
 0x133   : > { %v4523_v1 = vpop.permute.xlu0 %4522  ;;  %v4530_v36 = vunpack.i.h.bf16 %v5900_v18  ;;  %v4529_v5 = vunpack.i.l.bf16 %v5900_v18 }
 0x134   : > { %v4525_v48 = vunpack.i.h.bf16 %v4523_v1  ;;  %v4524_v55 = vunpack.i.l.bf16 %v4523_v1  ;;  %v5955_v34 = vadd.s32 16, %v5950_v51  ;;  %v5960_v45 = vadd.s32 24, %v5950_v51 }
 0x135   : > { %v1750_v18 = vsel %vm1727_vm4, %v1713_v58, %v4529_v5  ;;  %v1751_v1 = vsel %vm1727_vm4, %v1714_v59, %v4530_v36  ;;  %v300_v5 = vld [vmem:[%s5032_s29 + $0xc0] sm:$0xff] }
 0x136   : > { %v5902_v19 = vpop.permute.xlu1 %4537  ;;  %v1748_v49 = vsel %vm1727_vm4, %v1711_v63, %v4524_v55  ;;  %v1749_v42 = vsel %vm1727_vm4, %v1712_v0, %v4525_v48  ;;  %v5963_v48 = vmul.u32.u64.low 3817748708, %v5955_v34  ;;  %v5964_v55 = vmul.u32.u64.high 3817748708, %v5955_v34, %v5963_v48  ;;  %v302_v0 = vld [vmem:[%s5032_s29 + $0xd0] sm:$0xff] }
 0x137   : > { %v4533_v21 = vpop.permute.xlu0 %4532  ;;  %v4540_v44 = vunpack.i.h.bf16 %v5902_v19  ;;  %v4539_v46 = vunpack.i.l.bf16 %v5902_v19 }
 0x138   : > { %v4535_v60 = vunpack.i.h.bf16 %v4533_v21  ;;  %v4534_v2 = vunpack.i.l.bf16 %v4533_v21 }
 0x139   : > { %v1787_v22 = vsel %vm1764_vm5, %v1750_v18, %v4539_v46  ;;  %v1788_v6 = vsel %vm1764_vm5, %v1751_v1, %v4540_v44  ;;  %v5982_v44 = vmul.u32.u64.low 3817748708, %v5960_v45  ;;  %v5983_v46 = vmul.u32.u64.high 3817748708, %v5960_v45, %v5982_v44 }
 0x13a   : > { %v4548_v35 = vpop.permute.xlu1 %4547  ;;  %v1785_v8 = vsel %vm1764_vm5, %v1748_v49, %v4534_v2  ;;  %v1786_v9 = vsel %vm1764_vm5, %v1749_v42, %v4535_v60  ;;  %v5971_v60 = vmul.u32.u64.low 3817748708, %v5950_v51  ;;  %v5972_v2 = vmul.u32.u64.high 3817748708, %v5950_v51, %v5971_v60 }
 0x13b   : > { %v4543_v31 = vpop.permute.xlu0 %4542  ;;  %v4550_v57 = vunpack.i.h.bf16 %v4548_v35  ;;  %v4549_v10 = vunpack.i.l.bf16 %v4548_v35 }
 0x13c   : > { %v4545_v62 = vunpack.i.h.bf16 %v4543_v31  ;;  %v4544_v3 = vunpack.i.l.bf16 %v4543_v31 }
 0x13d   : > { %v1824_v17 = vsel %vm1801_vm6, %v1787_v22, %v4549_v10  ;;  %v1825_v25 = vsel %vm1801_vm6, %v1788_v6, %v4550_v57 }
 0x13e   : > { %v4558_v56 = vpop.permute.xlu1 %4557  ;;  %v1822_v12 = vsel %vm1801_vm6, %v1785_v8, %v4544_v3  ;;  %v1823_v53 = vsel %vm1801_vm6, %v1786_v9, %v4545_v62  ;;  %v303_v62 = vld [vmem:[%s5032_s29 + $0xd8] sm:$0xff] }
 0x13f   : > { %v4553_v61 = vpop.permute.xlu0 %4552  ;;  %v4560_v14 = vunpack.i.h.bf16 %v4558_v56  ;;  %v4559_v7 = vunpack.i.l.bf16 %v4558_v56  ;;  %v5968_v56 = vadd.s32 8, %v5950_v51 }
 0x140   : > { %v4555_v4 = vunpack.i.h.bf16 %v4553_v61  ;;  %v4554_v39 = vunpack.i.l.bf16 %v4553_v61 }
 0x141   : > { %v1861_v29 = vsel %vm1838_vm7, %v1824_v17, %v4559_v7  ;;  %v1862_v30 = vsel %vm1838_vm7, %v1825_v25, %v4560_v14 }
 0x142   : > { %v5928_v50 = vpop.permute.xlu1 %4567  ;;  %v1859_v15 = vsel %vm1838_vm7, %v1822_v12, %v4554_v39  ;;  %v1860_v16 = vsel %vm1838_vm7, %v1823_v53, %v4555_v4  ;;  %v301_v4 = vld [vmem:[%s5032_s29 + $0xc8] sm:$0xff] }
 0x143   : > { %v4563_v11 = vpop.permute.xlu0 %4562  ;;  %v4570_v61 = vunpack.i.h.bf16 %v5928_v50  ;;  %v4569_v63 = vunpack.i.l.bf16 %v5928_v50  ;;  %v5987_v10 = vmul.u32.u64.low 3817748708, %v5968_v56  ;;  %v5988_v50 = vmul.u32.u64.high 3817748708, %v5968_v56, %v5987_v10 }
 0x144   : > { %v4565_v54 = vunpack.i.h.bf16 %v4563_v11  ;;  %v4564_v13 = vunpack.i.l.bf16 %v4563_v11 }
 0x145   : > { %v1642_v14 = vsel %vm1616_vm1, %v301_v4, %v4570_v61 }
 0x146   : > { %v1896_v19 = vsel %vm1875_vm8, %v1859_v15, %v4564_v13  ;;  %v1897_v21 = vsel %vm1875_vm8, %v1860_v16, %v4565_v54  ;;  %v4578_v20 = vpop.permute.xlu1 %4577  ;;  %v1641_v13 = vsel %vm1616_vm1, %v300_v5, %v4569_v63 }
 0x147   : > { %v1922_v23 = vpack.c.bf16 %v1897_v21, %v1896_v19  ;;  %v4573_v24 = vpop.permute.xlu0 %4572  ;;  %v4580_v58 = vunpack.i.h.bf16 %v4578_v20  ;;  %v4579_v59 = vunpack.i.l.bf16 %v4578_v20 }
 0x148   : > { %v4575_v26 = vunpack.i.h.bf16 %v4573_v24  ;;  %v4574_v27 = vunpack.i.l.bf16 %v4573_v24 }
 0x149   : > { %3866 = vmatprep.mubr.msk.bf16.mxu0 %vm1957_vm9, %v1922_v23  ;;  %v1643_v11 = vsel %vm1616_vm1, %v302_v0, %v4579_v59  ;;  %v1644_v12 = vsel %vm1616_vm1, %v303_v62, %v4580_v58 }
 0x14a   : > { %v1898_v32 = vsel %vm1875_vm8, %v1861_v29, %v4574_v27  ;;  %v1899_v35 = vsel %vm1875_vm8, %v1862_v30, %v4575_v26  ;;  %v4588_v28 = vpop.permute.xlu1 %4587 }
 0x14b   : > { %v1923_v38 = vpack.c.bf16 %v1899_v35, %v1898_v32  ;;  %v4583_v31 = vpop.permute.xlu0 %4582  ;;  %v4590_v3 = vunpack.i.h.bf16 %v4588_v28  ;;  %v4589_v36 = vunpack.i.l.bf16 %v4588_v28 }
 0x14c   : > { %v4585_v39 = vunpack.i.h.bf16 %v4583_v31  ;;  %v4584_v49 = vunpack.i.l.bf16 %v4583_v31 }
 0x14d   : > { %3867 = vmatmul.mubr.msk.bf16.gmra.mrb[20].mxu0 %vm1957_vm9, %v1923_v38  ;;  %v1680_v7 = vsel %vm1653_vm2, %v1643_v11, %v4589_v36  ;;  %v1681_v15 = vsel %vm1653_vm2, %v1644_v12, %v4590_v3 }
 0x14e   : > { %v4598_v43 = vpop.permute.xlu1 %4597  ;;  %v1678_v16 = vsel %vm1653_vm2, %v1641_v13, %v4584_v49  ;;  %v1679_v18 = vsel %vm1653_vm2, %v1642_v14, %v4585_v39 }
 0x14f   : > { %v4593_v40 = vpop.permute.xlu0 %4592  ;;  %v4600_v8 = vunpack.i.h.bf16 %v4598_v43  ;;  %v4599_v9 = vunpack.i.l.bf16 %v4598_v43 }
 0x150   : > { %v4595_v53 = vunpack.i.h.bf16 %v4593_v40  ;;  %v4594_v54 = vunpack.i.l.bf16 %v4593_v40 }
 0x151   : > { %v1717_v20 = vsel %vm1690_vm3, %v1680_v7, %v4599_v9  ;;  %v1718_v22 = vsel %vm1690_vm3, %v1681_v15, %v4600_v8 }
 0x152   : > { %v5952_v33 = vpop.permute.xlu1 %4607  ;;  %v1715_v17 = vsel %vm1690_vm3, %v1678_v16, %v4594_v54  ;;  %v1716_v25 = vsel %vm1690_vm3, %v1679_v18, %v4595_v53  ;;  %v2510_v18 = vshrl.u32 %v5964_v55, 4 }
 0x153   : > { %v4603_v47 = vpop.permute.xlu0 %4602  ;;  %v4610_v29 = vunpack.i.h.bf16 %v5952_v33  ;;  %v4609_v30 = vunpack.i.l.bf16 %v5952_v33 }
 0x154   : > { %v4605_v1 = vunpack.i.h.bf16 %v4603_v47  ;;  %v4604_v19 = vunpack.i.l.bf16 %v4603_v47 }
 0x155   : > { %v1754_v3 = vsel %vm1727_vm4, %v1717_v20, %v4609_v30  ;;  %v1755_v36 = vsel %vm1727_vm4, %v1718_v22, %v4610_v29  ;;  %v2499_v20 = vshrl.u32 %v5988_v50, 4  ;;  %v304_v29 = vld [vmem:[%s5032_s29 + $0xe0] sm:$0xff]  ;;  %v305_v30 = vld [vmem:[%s5032_s29 + $0xe8] sm:$0xff]  ;;  %v307_v50 = vld [vmem:[%s5032_s29 + $0xf8] sm:$0xff] }
 0x156   : > { %v5957_v52 = vpop.permute.xlu1 %4617  ;;  %v1752_v28 = vsel %vm1727_vm4, %v1715_v17, %v4604_v19  ;;  %v1753_v38 = vsel %vm1727_vm4, %v1716_v25, %v4605_v1  ;;  %v2488_v1 = vshrl.u32 %v5972_v2, 4  ;;  %v306_v2 = vld [vmem:[%s5032_s29 + $0xf0] sm:$0xff] }
 0x157   : > { %v4613_v37 = vpop.permute.xlu0 %4612  ;;  %v4620_v31 = vunpack.i.h.bf16 %v5957_v52  ;;  %v4619_v41 = vunpack.i.l.bf16 %v5957_v52  ;;  %v2500_v25 = vmul.u32 18, %v2499_v20 }
 0x158   : > { %v4615_v6 = vunpack.i.h.bf16 %v4613_v37  ;;  %v4614_v23 = vunpack.i.l.bf16 %v4613_v37 }
 0x159   : > { %v1791_v49 = vsel %vm1764_vm5, %v1754_v3, %v4619_v41 }
 0x15a   : > { %v4628_v42 = vpop.permute.xlu1 %4627  ;;  %v1789_v40 = vsel %vm1764_vm5, %v1752_v28, %v4614_v23  ;;  %v1790_v47 = vsel %vm1764_vm5, %v1753_v38, %v4615_v6  ;;  %v2511_v6 = vmul.u32 18, %v2510_v18  ;;  %v2489_v23 = vmul.u32 18, %v2488_v1 }
 0x15b   : > { %v4623_v57 = vpop.permute.xlu0 %4622  ;;  %v4630_v37 = vunpack.i.h.bf16 %v4628_v42  ;;  %v4629_v48 = vunpack.i.l.bf16 %v4628_v42  ;;  %v1792_v42 = vsel %vm1764_vm5, %v1755_v36, %v4620_v31 }
 0x15c   : > { %v4625_v26 = vunpack.i.h.bf16 %v4623_v57  ;;  %v4624_v27 = vunpack.i.l.bf16 %v4623_v57  ;;  %v6044_v38 = vsub.s32 %v5955_v34, %v2511_v6  ;;  %v6047_v31 = vsub.s32 %v5950_v51, %v2489_v23 }
 0x15d   : > { %v1828_v9 = vsel %vm1801_vm6, %v1791_v49, %v4629_v48  ;;  %v1829_v57 = vsel %vm1801_vm6, %v1792_v42, %v4630_v37 }
 0x15e   : > { %v4638_v21 = vpop.permute.xlu1 %4637  ;;  %v1826_v33 = vsel %vm1801_vm6, %v1789_v40, %v4624_v27  ;;  %v1827_v59 = vsel %vm1801_vm6, %v1790_v47, %v4625_v26  ;;  %vm2880_vm10 = vcmp.ne.s32.totalorder %v6044_v38, 0  ;;  %vm2916_vm11 = vcmp.lt.s32.totalorder %v6044_v38, 0 }
 0x15f   : > { %v4633_v24 = vpop.permute.xlu0 %4632  ;;  %v4640_v63 = vunpack.i.h.bf16 %v4638_v21  ;;  %v4639_v0 = vunpack.i.l.bf16 %v4638_v21  ;;  %v2521_v21 = vshrl.u32 %v5983_v46, 4  ;;  %vm2878_vm12 = vcmp.ne.s32.totalorder %v6047_v31, 0  ;;  %vm6124_vm14 = vmand %vm2916_vm11, %vm2880_vm10 }
 0x160   : > { %v4635_v32 = vunpack.i.h.bf16 %v4633_v24  ;;  %v4634_v35 = vunpack.i.l.bf16 %v4633_v24  ;;  %vm2914_vm13 = vcmp.lt.s32.totalorder %v6047_v31, 0 }
 0x161   : > { %v1865_v12 = vsel %vm1838_vm7, %v1828_v9, %v4639_v0  ;;  %v1866_v53 = vsel %vm1838_vm7, %v1829_v57, %v4640_v63  ;;  %v2522_v17 = vmul.u32 18, %v2521_v21  ;;  %vm6135_vm15 = vmand %vm2914_vm13, %vm2878_vm12 }
 0x162   : > { %v6009_v43 = vpop.permute.xlu1 %4647  ;;  %v1863_v62 = vsel %vm1838_vm7, %v1826_v33, %v4634_v35  ;;  %v1864_v52 = vsel %vm1838_vm7, %v1827_v59, %v4635_v32 }
 0x163   : > { %v4643_v58 = vpop.permute.xlu0 %4642  ;;  %v4650_v26 = vunpack.i.h.bf16 %v6009_v43  ;;  %v4649_v27 = vunpack.i.l.bf16 %v6009_v43  ;;  %v6050_v41 = vsub.s32 %v5960_v45, %v2522_v17  ;;  %v6053_v43 = vsub.s32 %v5968_v56, %v2500_v25 }
 0x164   : > { %v4645_v60 = vunpack.i.h.bf16 %v4643_v58  ;;  %v4644_v61 = vunpack.i.l.bf16 %v4643_v58 }
 0x165   : > { %v1645_v40 = vsel %vm1616_vm1, %v304_v29, %v4649_v27  ;;  %v1646_v47 = vsel %vm1616_vm1, %v305_v30, %v4650_v26  ;;  %vm2881_vm0 = vcmp.ne.s32.totalorder %v6050_v41, 0  ;;  %vm2917_vm10 = vcmp.lt.s32.totalorder %v6050_v41, 0 }
 0x166   : > { %v1900_v5 = vsel %vm1875_vm8, %v1863_v62, %v4644_v61  ;;  %v1901_v4 = vsel %vm1875_vm8, %v1864_v52, %v4645_v60  ;;  %v4658_v39 = vpop.permute.xlu1 %4657  ;;  %vm2879_vm11 = vcmp.ne.s32.totalorder %v6053_v43, 0  ;;  %vm2915_vm12 = vcmp.lt.s32.totalorder %v6053_v43, 0  ;;  %vm6171_vm13 = vmand %vm2917_vm10, %vm2881_vm0 }
 0x167   : > { %v1924_v44 = vpack.c.bf16 %v1901_v4, %v1900_v5  ;;  %v4653_v8 = vpop.permute.xlu0 %4652  ;;  %v4659_v55 = vunpack.i.l.bf16 %v4658_v39  ;;  %v4660_v32 = vunpack.i.h.bf16 %v4658_v39 }
 0x168   : > { %v4655_v10 = vunpack.i.h.bf16 %v4653_v8  ;;  %v4654_v11 = vunpack.i.l.bf16 %v4653_v8 }
 0x169   : > { %3870 = vmatprep.mubr.msk.bf16.mxu0 %vm1957_vm9, %v1924_v44  ;;  %v1647_v37 = vsel %vm1616_vm1, %v306_v2, %v4659_v55  ;;  %v1648_v60 = vsel %vm1616_vm1, %v307_v50, %v4660_v32 }
 0x16a   : > { %v1902_v54 = vsel %vm1875_vm8, %v1865_v12, %v4654_v11  ;;  %v1903_v13 = vsel %vm1875_vm8, %v1866_v53, %v4655_v10  ;;  %v4668_v14 = vpop.permute.xlu1 %4667 }
 0x16b   : > { %v1925_v7 = vpack.c.bf16 %v1903_v13, %v1902_v54  ;;  %v4663_v15 = vpop.permute.xlu0 %4662  ;;  %v4669_v35 = vunpack.i.l.bf16 %v4668_v14  ;;  %v4670_v48 = vunpack.i.h.bf16 %v4668_v14  ;;  %v6073_v54 = vld [vmem:[%s7274_s2] ss:$0 sm:$0xff] }
 0x16c   : > { %v4665_v58 = vunpack.i.h.bf16 %v4663_v15  ;;  %v4664_v33 = vunpack.i.l.bf16 %v4663_v15 }
 0x16d   : > { %3871 = vmatmul.mubr.msk.bf16.gmra.mrb[24].mxu0 %vm1957_vm9, %v1925_v7  ;;  %v1684_v61 = vsel %vm1653_vm2, %v1647_v37, %v4669_v35  ;;  %v1685_v5 = vsel %vm1653_vm2, %v1648_v60, %v4670_v48 }
 0x16e   : > { %v4678_v16 = vpop.permute.xlu1 %4677  ;;  %v1682_v42 = vsel %vm1653_vm2, %v1645_v40, %v4664_v33  ;;  %v1683_v44 = vsel %vm1653_vm2, %v1646_v47, %v4665_v58 }
 0x16f   : > { %v4673_v19 = vpop.permute.xlu0 %4672  ;;  %v4680_v34 = vunpack.i.h.bf16 %v4678_v16  ;;  %v4679_v59 = vunpack.i.l.bf16 %v4678_v16 }
 0x170   : > { %v4675_v45 = vunpack.i.h.bf16 %v4673_v19  ;;  %v4674_v63 = vunpack.i.l.bf16 %v4673_v19 }
 0x171   : > { %v1721_v8 = vsel %vm1690_vm3, %v1684_v61, %v4679_v59  ;;  %v1722_v9 = vsel %vm1690_vm3, %v1685_v5, %v4680_v34 }
 0x172   : > { %v4688_v22 = vpop.permute.xlu1 %4687  ;;  %v1719_v57 = vsel %vm1690_vm3, %v1682_v42, %v4674_v63  ;;  %v1720_v10 = vsel %vm1690_vm3, %v1683_v44, %v4675_v45  ;;  %v2986_v42 = vadd.s32 18, %v6047_v31 }
 0x173   : > { %v4683_v24 = vpop.permute.xlu0 %4682  ;;  %v4690_v56 = vunpack.i.h.bf16 %v4688_v22  ;;  %v4689_v62 = vunpack.i.l.bf16 %v4688_v22 }
 0x174   : > { %v4685_v52 = vunpack.i.h.bf16 %v4683_v24  ;;  %v4684_v3 = vunpack.i.l.bf16 %v4683_v24 }
 0x175   : > { %v1758_v13 = vsel %vm1727_vm4, %v1721_v8, %v4689_v62  ;;  %v1759_v14 = vsel %vm1727_vm4, %v1722_v9, %v4690_v56 }
 0x176   : > { %v6040_v46 = vpop.permute.xlu1 %4697  ;;  %v1756_v7 = vsel %vm1727_vm4, %v1719_v57, %v4684_v3  ;;  %v1757_v15 = vsel %vm1727_vm4, %v1720_v10, %v4685_v52  ;;  %v6145_v10 = vadd.s32 48, %v5950_v51 }
 0x177   : > { %v4693_v28 = vpop.permute.xlu0 %4692  ;;  %v4699_v4 = vunpack.i.l.bf16 %v6040_v46  ;;  %v4700_v18 = vunpack.i.h.bf16 %v6040_v46 }
 0x178   : > { %v4695_v39 = vunpack.i.h.bf16 %v4693_v28  ;;  %v4694_v49 = vunpack.i.l.bf16 %v4693_v28 }
 0x179   : > { %v1795_v1 = vsel %vm1764_vm5, %v1758_v13, %v4699_v4  ;;  %v1796_v63 = vsel %vm1764_vm5, %v1759_v14, %v4700_v18  ;;  %v6154_v13 = vadd.s32 56, %v5950_v51  ;;  %v6159_v14 = vadd.s32 40, %v5950_v51 }
 0x17a   : > { %v6060_v0 = vpop.permute.xlu1 %4707  ;;  %v1793_v19 = vsel %vm1764_vm5, %v1756_v7, %v4694_v49  ;;  %v1794_v21 = vsel %vm1764_vm5, %v1757_v15, %v4695_v39  ;;  %v2988_v49 = vadd.s32 18, %v6044_v38  ;;  %v3022_v15 = vsel %vm6135_vm15, %v2986_v42, %v6047_v31 }
 0x17b   : > { %v4703_v36 = vpop.permute.xlu0 %4702  ;;  %v4710_v22 = vunpack.i.h.bf16 %v6060_v0  ;;  %v4709_v25 = vunpack.i.l.bf16 %v6060_v0  ;;  %vm6226_vm0 = vcmp.lt.s32.totalorder %v3022_v15, 16 }
 0x17c   : > { %v4705_v11 = vunpack.i.h.bf16 %v4703_v36  ;;  %v4704_v12 = vunpack.i.l.bf16 %v4703_v36  ;;  %v3024_v7 = vsel %vm6124_vm14, %v2988_v49, %v6044_v38  ;;  %vm6185_vm14 = vmand %vm2915_vm12, %vm2879_vm11 }
 0x17d   : > { %v1832_v0 = vsel %vm1801_vm6, %v1795_v1, %v4709_v25  ;;  %v1833_v52 = vsel %vm1801_vm6, %v1796_v63, %v4710_v22  ;;  %v308_v22 = vld [vmem:[%s5032_s29 + $0x100] sm:$0xff]  ;;  %v311_v63 = vld [vmem:[%s5032_s29 + $0x118] sm:$0xff]  ;;  %vm6219_vm15 = vcmp.lt.s32.totalorder %v3024_v7, 16 }
 0x17e   : > { %v4718_v53 = vpop.permute.xlu1 %4717  ;;  %v1830_v26 = vsel %vm1801_vm6, %v1793_v19, %v4704_v12  ;;  %v1831_v27 = vsel %vm1801_vm6, %v1794_v21, %v4705_v11  ;;  %v2987_v19 = vadd.s32 18, %v6053_v43 }
 0x17f   : > { %v4713_v16 = vpop.permute.xlu0 %4712  ;;  %v4720_v2 = vunpack.i.h.bf16 %v4718_v53  ;;  %v4719_v32 = vunpack.i.l.bf16 %v4718_v53  ;;  %v6151_v53 = vadd.s32 32, %v5950_v51 }
 0x180   : > { %v3848_v20 = vpop.f32.mrb[0].mxu0  ;;  %v4715_v6 = vunpack.i.h.bf16 %v4713_v16  ;;  %v4714_v23 = vunpack.i.l.bf16 %v4713_v16  ;;  %v2989_v16 = vadd.s32 18, %v6050_v41 }
 0x181   : > { %v6089_v24 = vadd.f32 %v3848_v20, %v6073_v54  ;;  %v2050_v17 = vpop.f32.mrb[1].mxu0  ;;  %v1869_v5 = vsel %vm1838_vm7, %v1832_v0, %v4719_v32  ;;  %v1870_v4 = vsel %vm1838_vm7, %v1833_v52, %v4720_v2 }
 0x182   : > { %v6095_v55 = vadd.f32 %v6073_v54, %v2050_v17  ;;  %v3849_v29 = vpop.f32.mrb[2].mxu0  ;;  %v6097_v30 = vpop.permute.xlu1 %4727  ;;  %v1867_v58 = vsel %vm1838_vm7, %v1830_v26, %v4714_v23  ;;  %v1868_v33 = vsel %vm1838_vm7, %v1831_v27, %v4715_v6 }
 0x183   : > { %v3724_v35 = vmul.f32 -1.442695, %v6089_v24  ;;  %v6101_v46 = vadd.f32 %v3849_v29, %v6073_v54  ;;  %v4723_v50 = vpop.permute.xlu0 %4722  ;;  %v2053_v28 = vpop.f32.mrb[3].mxu0  ;;  %v4729_v1 = vunpack.i.l.bf16 %v6097_v30  ;;  %v4730_v32 = vunpack.i.h.bf16 %v6097_v30 }
 0x184   : > { %v3722_v40 = vmul.f32 -1.442695, %v6095_v55  ;;  %v4725_v47 = vunpack.i.h.bf16 %v4723_v50  ;;  %v4724_v37 = vunpack.i.l.bf16 %v4723_v50  ;;  %v6105_v48 = vadd.f32 %v6073_v54, %v2053_v28 }
 0x185   : > { %4814 = vpow2.f32 %v3724_v35  ;;  %v3725_v34 = vmul.f32 -1.442695, %v6101_v46  ;;  %v6180_v21 = vmul.u32.u64.low 3817748708, %v6145_v10  ;;  %v6181_v31 = vmul.u32.u64.high 3817748708, %v6145_v10, %v6180_v21 }
 0x186   : > { %4816 = vpow2.f32 %v3722_v40  ;;  %v1904_v59 = vsel %vm1875_vm8, %v1867_v58, %v4724_v37  ;;  %v1905_v60 = vsel %vm1875_vm8, %v1868_v33, %v4725_v47  ;;  %v3723_v61 = vmul.f32 -1.442695, %v6105_v48  ;;  %v6113_v45 = vpop.permute.xlu1 %4737  ;;  %v309_v37 = vld [vmem:[%s5032_s29 + $0x108] sm:$0xff] }
 0x187   : > { %4818 = vpow2.f32 %v3725_v34  ;;  %v1926_v56 = vpack.c.bf16 %v1905_v60, %v1904_v59  ;;  %v4733_v62 = vpop.permute.xlu0 %4732  ;;  %v6190_v17 = vmul.u32.u64.low 3817748708, %v6151_v53  ;;  %v6191_v25 = vmul.u32.u64.high 3817748708, %v6151_v53, %v6190_v17 }
 0x188   : > { %4820 = vpow2.f32 %v3723_v61  ;;  %v4735_v3 = vunpack.i.h.bf16 %v4733_v62  ;;  %v4734_v36 = vunpack.i.l.bf16 %v4733_v62  ;;  %v3025_v47 = vsel %vm6171_vm13, %v2989_v16, %v6050_v41  ;;  %v310_v61 = vld [vmem:[%s5032_s29 + $0x110] sm:$0xff] }
 0x189   : > { %3874 = vmatprep.mubr.msk.bf16.mxu0 %vm1957_vm9, %v1926_v56  ;;  %v6195_v26 = vmul.u32.u64.low 3817748708, %v6154_v13  ;;  %v6196_v27 = vmul.u32.u64.high 3817748708, %v6154_v13, %v6195_v26  ;;  %v6201_v35 = vmul.u32.u64.low 3817748708, %v6159_v14  ;;  %v6202_v50 = vmul.u32.u64.high 3817748708, %v6159_v14, %v6201_v35 }
 0x18a   : > { %v1906_v8 = vsel %vm1875_vm8, %v1869_v5, %v4734_v36  ;;  %v1907_v9 = vsel %vm1875_vm8, %v1870_v4, %v4735_v3  ;;  %v6142_v57 = vpop.permute.xlu1 %4747  ;;  %v4740_v58 = vunpack.i.h.bf16 %v6113_v45  ;;  %v4739_v33 = vunpack.i.l.bf16 %v6113_v45 }
 0x18b   : > { %v1927_v11 = vpack.c.bf16 %v1907_v9, %v1906_v8  ;;  %v6148_v12 = vpop.permute.xlu0 %4742  ;;  %v1649_v30 = vsel %vm1616_vm1, %v308_v22, %v4729_v1  ;;  %v3023_v60 = vsel %vm6185_vm14, %v2987_v19, %v6053_v43  ;;  %v4750_v41 = vunpack.i.h.bf16 %v6142_v57 }
 0x18c   : > { %v4749_v62 = vunpack.i.l.bf16 %v6142_v57  ;;  %v1650_v3 = vsel %vm1616_vm1, %v309_v37, %v4730_v32  ;;  %v4745_v36 = vunpack.i.h.bf16 %v6148_v12  ;;  %v4744_v43 = vunpack.i.l.bf16 %v6148_v12 }
 0x18d   : > { %3875 = vmatmul.mubr.msk.bf16.gmra.mrb[28].mxu0 %vm1957_vm9, %v1927_v11  ;;  %v1651_v4 = vsel %vm1616_vm1, %v310_v61, %v4739_v33  ;;  %v1652_v39 = vsel %vm1616_vm1, %v311_v63, %v4740_v58  ;;  %vm6233_vm10 = vcmp.lt.s32.totalorder %v3025_v47, 16  ;;  %vm6238_vm11 = vcmp.lt.s32.totalorder %v3023_v60, 16 }
 0x18e   : > { %v6177_v38 = vpop.permute.xlu1 %4757  ;;  %v1688_v7 = vsel %vm1653_vm2, %v1651_v4, %v4749_v62  ;;  %v1689_v15 = vsel %vm1653_vm2, %v1652_v39, %v4750_v41  ;;  %v1686_v19 = vsel %vm1653_vm2, %v1649_v30, %v4744_v43  ;;  %v1687_v21 = vsel %vm1653_vm2, %v1650_v3, %v4745_v36 }
 0x18f   : > { %v4815_v20 = vpop.eup %4814  ;;  %v4753_v23 = vpop.permute.xlu0 %4752  ;;  %v4759_v49 = vunpack.i.l.bf16 %v6177_v38  ;;  %v4760_v44 = vunpack.i.h.bf16 %v6177_v38 }
 0x190   : > { %v4817_v29 = vpop.eup %4816  ;;  %v2303_v2 = vadd.f32 1.0, %v4815_v20  ;;  %v4755_v8 = vunpack.i.h.bf16 %v4753_v23  ;;  %v4754_v9 = vunpack.i.l.bf16 %v4753_v23 }
 0x191   : > { %v4819_v28 = vpop.eup %4818  ;;  %v2301_v40 = vadd.f32 1.0, %v4817_v29  ;;  %v1725_v22 = vsel %vm1690_vm3, %v1688_v7, %v4759_v49  ;;  %v1726_v26 = vsel %vm1690_vm3, %v1689_v15, %v4760_v44 }
 0x192   : > { %v4821_v34 = vpop.eup %4820  ;;  %4822 = vrcp.f32 %v2303_v2  ;;  %v2304_v59 = vadd.f32 1.0, %v4819_v28  ;;  %v4768_v0 = vpop.permute.xlu1 %4767  ;;  %v1723_v29 = vsel %vm1690_vm3, %v1686_v19, %v4754_v9  ;;  %v1724_v2 = vsel %vm1690_vm3, %v1687_v21, %v4755_v8 }
 0x193   : > { %4824 = vrcp.f32 %v2301_v40  ;;  %v2302_v56 = vadd.f32 1.0, %v4821_v34  ;;  %v4763_v52 = vpop.permute.xlu0 %4762  ;;  %v4769_v57 = vunpack.i.l.bf16 %v4768_v0  ;;  %v4770_v16 = vunpack.i.h.bf16 %v4768_v0 }
 0x194   : > { %4826 = vrcp.f32 %v2304_v59  ;;  %v4764_v18 = vunpack.i.l.bf16 %v4763_v52  ;;  %v4765_v38 = vunpack.i.h.bf16 %v4763_v52 }
 0x195   : > { %4828 = vrcp.f32 %v2302_v56  ;;  %v1762_v32 = vsel %vm1727_vm4, %v1725_v22, %v4769_v57  ;;  %v1763_v28 = vsel %vm1727_vm4, %v1726_v26, %v4770_v16 }
 0x196   : > { %v4778_v11 = vpop.permute.xlu1 %4777  ;;  %v1760_v40 = vsel %vm1727_vm4, %v1723_v29, %v4764_v18  ;;  %v1761_v34 = vsel %vm1727_vm4, %v1724_v2, %v4765_v38 }
 0x197   : > { %v4773_v1 = vpop.permute.xlu0 %4772  ;;  %v4779_v20 = vunpack.i.l.bf16 %v4778_v11  ;;  %v4780_v6 = vunpack.i.h.bf16 %v4778_v11 }
 0x198   : > { %v4775_v23 = vunpack.i.h.bf16 %v4773_v1  ;;  %v4774_v17 = vunpack.i.l.bf16 %v4773_v1 }
 0x199   : > { %v1799_v59 = vsel %vm1764_vm5, %v1762_v32, %v4779_v20  ;;  %v1800_v0 = vsel %vm1764_vm5, %v1763_v28, %v4780_v6 }
 0x19a   : > { %v4788_v35 = vpop.permute.xlu1 %4787  ;;  %v1797_v56 = vsel %vm1764_vm5, %v1760_v40, %v4774_v17  ;;  %v1798_v41 = vsel %vm1764_vm5, %v1761_v34, %v4775_v23 }
 0x19b   : > { %v4790_v47 = vunpack.i.h.bf16 %v4788_v35  ;;  %v4789_v37 = vunpack.i.l.bf16 %v4788_v35  ;;  %v4783_v58 = vpop.permute.xlu0 %4782 }
 0x19c   : > { %v4823_v33 = vpop.eup %4822  ;;  %v4785_v30 = vunpack.i.h.bf16 %v4783_v58  ;;  %v4784_v60 = vunpack.i.l.bf16 %v4783_v58 }
 0x19d   : > { %v4825_v61 = vpop.eup %4824  ;;  %v2411_v63 = vmul.f32 %v4823_v33, %v6089_v24  ;;  %v1836_v3 = vsel %vm1801_vm6, %v1799_v59, %v4789_v37  ;;  %v1837_v36 = vsel %vm1801_vm6, %v1800_v0, %v4790_v47 }
 0x19e   : > { %v4827_v62 = vpop.eup %4826  ;;  %v2409_v52 = vmul.f32 %v4825_v61, %v6095_v55  ;;  %v1834_v43 = vsel %vm1801_vm6, %v1797_v56, %v4784_v60  ;;  %v4798_v4 = vpop.permute.xlu1 %4797  ;;  %v1835_v11 = vsel %vm1801_vm6, %v1798_v41, %v4785_v30  ;;  %v2554_v56 = vshrl.u32 %v6181_v31, 4 }
 0x19f   : > { %v4829_v39 = vpop.eup %4828  ;;  %v3168_v24 = vsel %vm6219_vm15, %v2411_v63, 0.0  ;;  %v2412_v49 = vmul.f32 %v4827_v62, %v6101_v46  ;;  %v4800_v44 = vunpack.i.h.bf16 %v4798_v4  ;;  %v4799_v8 = vunpack.i.l.bf16 %v4798_v4  ;;  %v4793_v9 = vpop.permute.xlu0 %4792 }
 0x1a0   : > { %v3166_v57 = vsel %vm6226_vm0, %v2409_v52, 0.0  ;;  %v2410_v55 = vmul.f32 %v4829_v39, %v6105_v48  ;;  %v4795_v7 = vunpack.i.h.bf16 %v4793_v9  ;;  %v3852_v15 = vpop.f32.mrb[4].mxu0  ;;  %v3205_v16 = vsel %vm1875_vm8, %v3168_v24, 0.0 }
 0x1a1   : > { %v3202_v18 = vsel %vm1875_vm8, %v3166_v57, 0.0  ;;  %v3169_v45 = vsel %vm6233_vm10, %v2412_v49, 0.0  ;;  %v1873_v46 = vsel %vm1838_vm7, %v1836_v3, %v4799_v8  ;;  %v2066_v1 = vpop.f32.mrb[5].mxu0  ;;  %v1874_v48 = vsel %vm1838_vm7, %v1837_v36, %v4800_v44 }
 0x1a2   : > { %v3207_v19 = vsel %vm1875_vm8, %v3169_v45, 0.0  ;;  %v3167_v5 = vsel %vm6238_vm11, %v2410_v55, 0.0  ;;  %v4794_v21 = vunpack.i.l.bf16 %v4793_v9  ;;  %v3853_v38 = vpop.f32.mrb[6].mxu0  ;;  %v4808_v20 = vpop.permute.xlu1 %4807  ;;  %v6281_v6 = vadd.f32 %v3852_v15, %v6073_v54 }
 0x1a3   : > { %v3203_v22 = vsel %vm1875_vm8, %v3167_v5, 0.0  ;;  %v6284_v42 = vadd.f32 %v6073_v54, %v2066_v1  ;;  %v6287_v23 = vadd.f32 %v3853_v38, %v6073_v54  ;;  %v4803_v17 = vpop.permute.xlu0 %4802  ;;  %v2069_v26 = vpop.f32.mrb[7].mxu0  ;;  %v1872_v29 = vsel %vm1838_vm7, %v1835_v11, %v4795_v7 }
 0x1a4   : > { %v3204_v12 = vadd.f32 %v3203_v22, %v3202_v18  ;;  %v4810_v2 = vunpack.i.h.bf16 %v4808_v20  ;;  %v4809_v32 = vunpack.i.l.bf16 %v4808_v20  ;;  %v3728_v35 = vmul.f32 -1.442695, %v6281_v6 }
 0x1a5   : > { %v3726_v28 = vmul.f32 -1.442695, %v6284_v42  ;;  %v3729_v40 = vmul.f32 -1.442695, %v6287_v23  ;;  %v4805_v47 = vunpack.i.h.bf16 %v4803_v17  ;;  %v4804_v34 = vunpack.i.l.bf16 %v4803_v17 }
 0x1a6   : > { %v3206_v37 = vadd.f32 %v3205_v16, %v3204_v12  ;;  %v1910_v58 = vsel %vm1875_vm8, %v1873_v46, %v4809_v32  ;;  %v1911_v33 = vsel %vm1875_vm8, %v1874_v48, %v4810_v2  ;;  %v1871_v59 = vsel %vm1838_vm7, %v1834_v43, %v4794_v21 }
 0x1a7   : > { %4830 = vpow2.f32 %v3728_v35  ;;  %v1909_v30 = vsel %vm1875_vm8, %v1872_v29, %v4805_v47  ;;  %v6298_v60 = vadd.f32 %v6073_v54, %v2069_v26  ;;  %v1929_v63 = vpack.c.bf16 %v1911_v33, %v1910_v58 }
 0x1a8   : > { %4832 = vpow2.f32 %v3726_v28  ;;  %v6300_v61 = vadd.f32 %v3207_v19, %v3206_v37  ;;  %v1908_v0 = vsel %vm1875_vm8, %v1871_v59, %v4804_v34  ;;  %v2532_v52 = vshrl.u32 %v6191_v25, 4 }
 0x1a9   : > { %4834 = vpow2.f32 %v3729_v40  ;;  %v1928_v41 = vpack.c.bf16 %v1909_v30, %v1908_v0  ;;  %v3727_v62 = vmul.f32 -1.442695, %v6298_v60  ;;  %v2543_v3 = vshrl.u32 %v6202_v50, 4 }
 0x1aa   : > { %v2555_v36 = vmul.u32 18, %v2554_v56  ;;  %v2565_v43 = vshrl.u32 %v6196_v27, 4  ;;  %v2533_v4 = vmul.u32 18, %v2532_v52  ;;  %v6327_v18 = vadd.s32 80, %v5950_v51 }
 0x1ab   : > { %4836 = vpow2.f32 %v3727_v62  ;;  %3878 = vmatprep.mubr.msk.bf16.mxu0 %vm1957_vm9, %v1928_v41  ;;  %v2544_v39 = vmul.u32 18, %v2543_v3  ;;  %v6338_v5 = vadd.s32 64, %v5950_v51  ;;  %v6343_v21 = vadd.s32 88, %v5950_v51 }
 0x1ac   : > { %3879 = vmatmul.mubr.msk.bf16.gmra.mrb[32].mxu0 %vm1957_vm9, %v1929_v63  ;;  %v2556_v31 = vsub.s32 %v6145_v10, %v2555_v36  ;;  %v2566_v49 = vmul.u32 18, %v2565_v43  ;;  %v2534_v25 = vsub.s32 %v6151_v53, %v2533_v4  ;;  %v6350_v17 = vadd.s32 72, %v5950_v51 }
 0x1ad   : > { %v2545_v50 = vsub.s32 %v6159_v14, %v2544_v39  ;;  %v6346_v20 = vmul.u32.u64.low 3817748708, %v6327_v18  ;;  %v6347_v22 = vmul.u32.u64.high 3817748708, %v6327_v18, %v6346_v20 }
 0x1ae   : > { %vm2884_vm1 = vcmp.ne.s32.totalorder %v2556_v31, 0  ;;  %vm2920_vm2 = vcmp.lt.s32.totalorder %v2556_v31, 0  ;;  %v2567_v27 = vsub.s32 %v6154_v13, %v2566_v49  ;;  %vm2882_vm3 = vcmp.ne.s32.totalorder %v2534_v25, 0 }
 0x1af   : > { %vm2918_vm4 = vcmp.lt.s32.totalorder %v2534_v25, 0  ;;  %vm2883_vm5 = vcmp.ne.s32.totalorder %v2545_v50, 0  ;;  %vm2919_vm6 = vcmp.lt.s32.totalorder %v2545_v50, 0  ;;  %vm6314_vm7 = vmand %vm2920_vm2, %vm2884_vm1  ;;  %v2992_v7 = vadd.s32 18, %v2556_v31 }
 0x1b0   : > { %v2990_v14 = vadd.s32 18, %v2534_v25  ;;  %vm6318_vm9 = vmand %vm2918_vm4, %vm2882_vm3  ;;  %vm2885_vm12 = vcmp.ne.s32.totalorder %v2567_v27, 0  ;;  %vm2921_vm13 = vcmp.lt.s32.totalorder %v2567_v27, 0  ;;  %v2991_v13 = vadd.s32 18, %v2545_v50 }
 0x1b1   : > { %v4831_v24 = vpop.eup %4830  ;;  %vm6322_vm14 = vmand %vm2919_vm6, %vm2883_vm5  ;;  %v2993_v45 = vadd.s32 18, %v2567_v27  ;;  %v3028_v46 = vsel %vm6314_vm7, %v2992_v7, %v2556_v31  ;;  %v6368_v47 = vmul.u32.u64.low 3817748708, %v6338_v5  ;;  %v6369_v37 = vmul.u32.u64.high 3817748708, %v6338_v5, %v6368_v47 }
 0x1b2   : > { %v4833_v44 = vpop.eup %4832  ;;  %v2307_v8 = vadd.f32 1.0, %v4831_v24  ;;  %v3026_v1 = vsel %vm6318_vm9, %v2990_v14, %v2534_v25  ;;  %vm6333_vm15 = vmand %vm2921_vm13, %vm2885_vm12  ;;  %v3027_v48 = vsel %vm6322_vm14, %v2991_v13, %v2545_v50  ;;  %vm6352_vm0 = vcmp.lt.s32.totalorder %v3028_v46, 16 }
 0x1b3   : > { %v4835_v9 = vpop.eup %4834  ;;  %v2305_v57 = vadd.f32 1.0, %v4833_v44  ;;  %vm6356_vm10 = vcmp.lt.s32.totalorder %v3026_v1, 16  ;;  %v3029_v2 = vsel %vm6333_vm15, %v2993_v45, %v2567_v27  ;;  %vm6363_vm11 = vcmp.lt.s32.totalorder %v3027_v48, 16 }
 0x1b4   : > { %4838 = vrcp.f32 %v2307_v8  ;;  %v2308_v55 = vadd.f32 1.0, %v4835_v9  ;;  %v6376_v59 = vmul.u32.u64.low 3817748708, %v6343_v21  ;;  %v6377_v30 = vmul.u32.u64.high 3817748708, %v6343_v21, %v6376_v59 }
 0x1b5   : > { %v4837_v11 = vpop.eup %4836  ;;  %4840 = vrcp.f32 %v2305_v57  ;;  %v6385_v41 = vmul.u32.u64.low 3817748708, %v6350_v17  ;;  %v6386_v62 = vmul.u32.u64.high 3817748708, %v6350_v17, %v6385_v41  ;;  %vm6393_vm1 = vcmp.lt.s32.totalorder %v3029_v2, 16 }
 0x1b6   : > { %4842 = vrcp.f32 %v2308_v55  ;;  %v2306_v10 = vadd.f32 1.0, %v4837_v11  ;;  %v2598_v44 = vshrl.u32 %v6347_v22, 4  ;;  %v2576_v55 = vshrl.u32 %v6369_v37, 4 }
 0x1b7   : > { %v2609_v53 = vshrl.u32 %v6377_v30, 4  ;;  %v2587_v14 = vshrl.u32 %v6386_v62, 4 }
 0x1b8   : > { %4844 = vrcp.f32 %v2306_v10  ;;  %v2599_v10 = vmul.u32 18, %v2598_v44  ;;  %v2577_v15 = vmul.u32 18, %v2576_v55 }
 0x1b9   : > { %v2610_v16 = vmul.u32 18, %v2609_v53  ;;  %v2588_v46 = vmul.u32 18, %v2587_v14 }
 0x1ba   : > { %v2600_v13 = vsub.s32 %v6327_v18, %v2599_v10  ;;  %v2578_v48 = vsub.s32 %v6338_v5, %v2577_v15 }
 0x1bb   : > { %v2611_v22 = vsub.s32 %v6343_v21, %v2610_v16  ;;  %v2589_v29 = vsub.s32 %v6350_v17, %v2588_v46 }
 0x1bc   : > { %vm2888_vm2 = vcmp.ne.s32.totalorder %v2600_v13, 0  ;;  %vm2924_vm3 = vcmp.lt.s32.totalorder %v2600_v13, 0  ;;  %vm2886_vm4 = vcmp.ne.s32.totalorder %v2578_v48, 0  ;;  %vm2922_vm5 = vcmp.lt.s32.totalorder %v2578_v48, 0 }
 0x1bd   : > { %v2996_v2 = vadd.s32 18, %v2600_v13  ;;  %vm6425_vm6 = vmand %vm2924_vm3, %vm2888_vm2  ;;  %v2994_v5 = vadd.s32 18, %v2578_v48  ;;  %vm2889_vm7 = vcmp.ne.s32.totalorder %v2611_v22, 0  ;;  %vm2925_vm9 = vcmp.lt.s32.totalorder %v2611_v22, 0 }
 0x1be   : > { %v4839_v38 = vpop.eup %4838  ;;  %vm6429_vm12 = vmand %vm2922_vm5, %vm2886_vm4  ;;  %vm2887_vm13 = vcmp.ne.s32.totalorder %v2589_v29, 0  ;;  %vm2923_vm14 = vcmp.lt.s32.totalorder %v2589_v29, 0  ;;  %v2997_v17 = vadd.s32 18, %v2611_v22  ;;  %v2995_v28 = vadd.s32 18, %v2589_v29 }
 0x1bf   : > { %v4841_v26 = vpop.eup %4840  ;;  %v2415_v58 = vmul.f32 %v4839_v38, %v6281_v6  ;;  %vm6433_vm15 = vmand %vm2925_vm9, %vm2889_vm7  ;;  %v3030_v47 = vsel %vm6429_vm12, %v2994_v5, %v2578_v48 }
 0x1c0   : > { %v4843_v32 = vpop.eup %4842  ;;  %v2413_v35 = vmul.f32 %v4841_v26, %v6284_v42  ;;  %v3856_v40 = vpop.f32.mrb[8].mxu0  ;;  %v3033_v30 = vsel %vm6433_vm15, %v2997_v17, %v2611_v22 }
 0x1c1   : > { %v6373_v33 = vadd.f32 %v3856_v40, %v6073_v54  ;;  %v2082_v34 = vpop.f32.mrb[9].mxu0  ;;  %v2416_v52 = vmul.f32 %v4843_v32, %v6287_v23  ;;  %v3172_v49 = vsel %vm6352_vm0, %v2415_v58, 0.0  ;;  %v3032_v40 = vsel %vm6425_vm6, %v2996_v2, %v2600_v13  ;;  %vm6441_vm0 = vmand %vm2923_vm14, %vm2887_vm13 }
 0x1c2   : > { %v4845_v42 = vpop.eup %4844  ;;  %v3170_v63 = vsel %vm6356_vm10, %v2413_v35, 0.0  ;;  %v6382_v0 = vadd.f32 %v6073_v54, %v2082_v34  ;;  %v3857_v56 = vpop.f32.mrb[10].mxu0  ;;  %v3213_v50 = vsel %vm1875_vm8, %v3172_v49, 0.0  ;;  %v2458_v58 = vadd.s32 96, %v5950_v51 }
 0x1c3   : > { %v3209_v6 = vsel %vm1875_vm8, %v3170_v63, 0.0  ;;  %v2414_v3 = vmul.f32 %v4845_v42, %v6298_v60  ;;  %v3732_v36 = vmul.f32 -1.442695, %v6373_v33  ;;  %v2085_v43 = vpop.f32.mrb[11].mxu0  ;;  %v6399_v31 = vadd.f32 %v3857_v56, %v6073_v54 }
 0x1c4   : > { %v3210_v4 = vadd.f32 %v3209_v6, %v6300_v61  ;;  %v3730_v24 = vmul.f32 -1.442695, %v6382_v0  ;;  %v6406_v60 = vadd.f32 %v6073_v54, %v2085_v43  ;;  %v3173_v25 = vsel %vm6393_vm1, %v2416_v52, 0.0 }
 0x1c5   : > { %v3171_v23 = vsel %vm6363_vm11, %v2414_v3, 0.0  ;;  %4846 = vpow2.f32 %v3732_v36  ;;  %v3733_v8 = vmul.f32 -1.442695, %v6399_v31  ;;  %v3215_v27 = vsel %vm1875_vm8, %v3173_v25, 0.0 }
 0x1c6   : > { %v3211_v61 = vsel %vm1875_vm8, %v3171_v23, 0.0  ;;  %4848 = vpow2.f32 %v3730_v24  ;;  %v3731_v57 = vmul.f32 -1.442695, %v6406_v60  ;;  %v6447_v34 = vadd.s32 112, %v5950_v51 }
 0x1c7   : > { %v3212_v9 = vadd.f32 %v3211_v61, %v3210_v4  ;;  %4850 = vpow2.f32 %v3733_v8  ;;  %v6452_v42 = vadd.s32 120, %v5950_v51  ;;  %vm6454_vm10 = vcmp.lt.s32.totalorder %v3032_v40, 16 }
 0x1c8   : > { %4852 = vpow2.f32 %v3731_v57  ;;  %vm3066_vm11 = vcmp.lt.s32.totalorder %v3030_v47, 16  ;;  %v3031_v41 = vsel %vm6441_vm0, %v2995_v28, %v2589_v29  ;;  %v2459_v3 = vadd.s32 104, %v5950_v51 }
 0x1c9   : > { %v3214_v11 = vadd.f32 %v3213_v50, %v3212_v9  ;;  %v6461_v6 = vmul.u32.u64.low 3817748708, %v2458_v58  ;;  %v6462_v52 = vmul.u32.u64.high 3817748708, %v2458_v58, %v6461_v6  ;;  %vm6466_vm1 = vcmp.lt.s32.totalorder %v3033_v30, 16 }
 0x1ca   : > { %v6471_v39 = vmul.u32.u64.low 3817748708, %v6447_v34  ;;  %v6472_v24 = vmul.u32.u64.high 3817748708, %v6447_v34, %v6471_v39  ;;  %vm6474_vm2 = vcmp.lt.s32.totalorder %v3031_v41, 16 }
 0x1cb   : > { %v6418_v7 = vadd.f32 %v3215_v27, %v3214_v11  ;;  %v6479_v44 = vmul.u32.u64.low 3817748708, %v6452_v42  ;;  %v6480_v8 = vmul.u32.u64.high 3817748708, %v6452_v42, %v6479_v44  ;;  %v6537_v39 = vadd.s32 144, %v5950_v51 }
 0x1cc   : > { %v6492_v10 = vmul.u32.u64.low 3817748708, %v2459_v3  ;;  %v6493_v53 = vmul.u32.u64.high 3817748708, %v2459_v3, %v6492_v10 }
 0x1cd   : > { %v2653_v32 = vshrl.u32 %v6480_v8, 4 }
 0x1ce   : > { %v2631_v2 = vshrl.u32 %v6493_v53, 4 }
 0x1cf   : > { %v4847_v45 = vpop.eup %4846  ;;  %v2654_v28 = vmul.u32 18, %v2653_v32 }
 0x1d0   : > { %v4849_v1 = vpop.eup %4848  ;;  %v2311_v19 = vadd.f32 1.0, %v4847_v45  ;;  %v2632_v17 = vmul.u32 18, %v2631_v2 }
 0x1d1   : > { %v2309_v38 = vadd.f32 1.0, %v4849_v1  ;;  %v4851_v20 = vpop.eup %4850 }
 0x1d2   : > { %4854 = vrcp.f32 %v2311_v19  ;;  %v4853_v26 = vpop.eup %4852  ;;  %v2312_v12 = vadd.f32 1.0, %v4851_v20  ;;  %v2633_v41 = vsub.s32 %v2459_v3, %v2632_v17 }
 0x1d3   : > { %4856 = vrcp.f32 %v2309_v38  ;;  %v2310_v18 = vadd.f32 1.0, %v4853_v26  ;;  %v2620_v38 = vshrl.u32 %v6462_v52, 4 }
 0x1d4   : > { %4858 = vrcp.f32 %v2312_v12  ;;  %v2642_v12 = vshrl.u32 %v6472_v24, 4  ;;  %vm2891_vm9 = vcmp.ne.s32.totalorder %v2633_v41, 0  ;;  %vm2927_vm12 = vcmp.lt.s32.totalorder %v2633_v41, 0 }
 0x1d5   : > { %4860 = vrcp.f32 %v2310_v18  ;;  %v2621_v18 = vmul.u32 18, %v2620_v38  ;;  %vm6532_vm0 = vmand %vm2927_vm12, %vm2891_vm9 }
 0x1d6   : > { %v2643_v5 = vmul.u32 18, %v2642_v12 }
 0x1d7   : > { %v2622_v21 = vsub.s32 %v2458_v58, %v2621_v18 }
 0x1d9   : > { %vm2890_vm3 = vcmp.ne.s32.totalorder %v2622_v21, 0  ;;  %vm2926_vm4 = vcmp.lt.s32.totalorder %v2622_v21, 0  ;;  %v2998_v58 = vadd.s32 18, %v2622_v21 }
 0x1da   : > { %vm6522_vm7 = vmand %vm2926_vm4, %vm2890_vm3 }
 0x1dc   : > { %v4855_v59 = vpop.eup %4854 }
 0x1dd   : > { %v4857_v63 = vpop.eup %4856  ;;  %v2419_v43 = vmul.f32 %v4855_v59, %v6373_v33  ;;  %v2644_v59 = vsub.s32 %v6447_v34, %v2643_v5 }
 0x1de   : > { %v2417_v62 = vmul.f32 %v4857_v63, %v6382_v0  ;;  %v4859_v36 = vpop.eup %4858 }
 0x1df   : > { %v4861_v49 = vpop.eup %4860  ;;  %v2420_v25 = vmul.f32 %v4859_v36, %v6399_v31  ;;  %v3176_v14 = vsel %vm6454_vm10, %v2419_v43, 0.0  ;;  %vm2892_vm5 = vcmp.ne.s32.totalorder %v2644_v59, 0  ;;  %vm2928_vm6 = vcmp.lt.s32.totalorder %v2644_v59, 0 }
 0x1e0   : > { %v3174_v23 = vsel %vm3066_vm11, %v2417_v62, 0.0  ;;  %v3860_v61 = vpop.f32.mrb[12].mxu0  ;;  %v2418_v9 = vmul.f32 %v4861_v49, %v6406_v60  ;;  %v3221_v48 = vsel %vm1875_vm8, %v3176_v14, 0.0  ;;  %v2655_v62 = vsub.s32 %v6452_v42, %v2654_v28  ;;  %vm6526_vm15 = vmand %vm2928_vm6, %vm2892_vm5 }
 0x1e1   : > { %v3217_v33 = vsel %vm1875_vm8, %v3174_v23, 0.0  ;;  %v6486_v57 = vadd.f32 %v3860_v61, %v6073_v54  ;;  %v2098_v50 = vpop.f32.mrb[13].mxu0  ;;  %v3177_v46 = vsel %vm6466_vm1, %v2420_v25, 0.0  ;;  %v3000_v3 = vadd.s32 18, %v2644_v59 }
 0x1e2   : > { %v3218_v55 = vadd.f32 %v3217_v33, %v6418_v7  ;;  %v6490_v11 = vadd.f32 %v6073_v54, %v2098_v50  ;;  %v3861_v27 = vpop.f32.mrb[14].mxu0  ;;  %v3175_v31 = vsel %vm6474_vm2, %v2418_v9, 0.0  ;;  %v3223_v26 = vsel %vm1875_vm8, %v3177_v46, 0.0 }
 0x1e3   : > { %v3736_v60 = vmul.f32 -1.442695, %v6486_v57  ;;  %v6501_v15 = vadd.f32 %v3861_v27, %v6073_v54  ;;  %v2101_v13 = vpop.f32.mrb[15].mxu0  ;;  %v3219_v7 = vsel %vm1875_vm8, %v3175_v31, 0.0  ;;  %vm2893_vm13 = vcmp.ne.s32.totalorder %v2655_v62, 0 }
 0x1e4   : > { %v3734_v16 = vmul.f32 -1.442695, %v6490_v11  ;;  %v6506_v45 = vadd.f32 %v6073_v54, %v2101_v13  ;;  %v3220_v1 = vadd.f32 %v3219_v7, %v3218_v55  ;;  %vm2929_vm14 = vcmp.lt.s32.totalorder %v2655_v62, 0 }
 0x1e5   : > { %4862 = vpow2.f32 %v3736_v60  ;;  %v3737_v19 = vmul.f32 -1.442695, %v6501_v15  ;;  %v2999_v42 = vadd.s32 18, %v2633_v41  ;;  %v3034_v36 = vsel %vm6522_vm7, %v2998_v58, %v2622_v21  ;;  %vm6539_vm10 = vmand %vm2929_vm14, %vm2893_vm13 }
 0x1e6   : > { %4864 = vpow2.f32 %v3734_v16  ;;  %v3735_v20 = vmul.f32 -1.442695, %v6506_v45  ;;  %v3222_v22 = vadd.f32 %v3221_v48, %v3220_v1  ;;  %v3001_v43 = vadd.s32 18, %v2655_v62 }
 0x1e7   : > { %4866 = vpow2.f32 %v3737_v19  ;;  %v2462_v49 = vadd.s32 128, %v5950_v51  ;;  %v6545_v23 = vadd.s32 152, %v5950_v51  ;;  %v3036_v61 = vsel %vm6526_vm15, %v3000_v3, %v2644_v59 }
 0x1e8   : > { %4868 = vpow2.f32 %v3735_v20  ;;  %v6516_v29 = vadd.f32 %v3223_v26, %v3222_v22  ;;  %vm6549_vm11 = vcmp.lt.s32.totalorder %v3034_v36, 16  ;;  %v3035_v8 = vsel %vm6532_vm0, %v2999_v42, %v2633_v41 }
 0x1e9   : > { %v3037_v25 = vsel %vm6539_vm10, %v3001_v43, %v2655_v62  ;;  %v6558_v9 = vmul.u32.u64.low 3817748708, %v6537_v39  ;;  %v6559_v50 = vmul.u32.u64.high 3817748708, %v6537_v39, %v6558_v9  ;;  %v6562_v55 = vadd.s32 136, %v5950_v51 }
 0x1ea   : > { %v6566_v14 = vmul.u32.u64.low 3817748708, %v2462_v49  ;;  %v6567_v31 = vmul.u32.u64.high 3817748708, %v2462_v49, %v6566_v14  ;;  %vm6569_vm1 = vcmp.lt.s32.totalorder %v3036_v61, 16  ;;  %vm6573_vm2 = vcmp.lt.s32.totalorder %v3035_v8, 16 }
 0x1eb   : > { %v6578_v16 = vmul.u32.u64.low 3817748708, %v6545_v23  ;;  %v6579_v46 = vmul.u32.u64.high 3817748708, %v6545_v23, %v6578_v16  ;;  %vm6584_vm3 = vcmp.lt.s32.totalorder %v3037_v25, 16  ;;  %v6651_v13 = vadd.s32 160, %v5950_v51  ;;  %v3284_v14 = vld [vmem:[%s7275_s3 + $0x18] sm:$0xff] }
 0x1ec   : > { %v6594_v26 = vmul.u32.u64.low 3817748708, %v6562_v55  ;;  %v6595_v12 = vmul.u32.u64.high 3817748708, %v6562_v55, %v6594_v26  ;;  %v6654_v7 = vadd.s32 184, %v5950_v51 }
 0x1ed   : > { %v2697_v52 = vshrl.u32 %v6579_v46, 4 }
 0x1ee   : > { %v2675_v58 = vshrl.u32 %v6595_v12, 4 }
 0x1ef   : > { %v4863_v35 = vpop.eup %4862  ;;  %v2698_v43 = vmul.u32 18, %v2697_v52 }
 0x1f0   : > { %v4865_v40 = vpop.eup %4864  ;;  %v2315_v47 = vadd.f32 1.0, %v4863_v35  ;;  %v2676_v42 = vmul.u32 18, %v2675_v58 }
 0x1f1   : > { %v4867_v37 = vpop.eup %4866  ;;  %v2313_v30 = vadd.f32 1.0, %v4865_v40  ;;  %v2699_v9 = vsub.s32 %v6545_v23, %v2698_v43 }
 0x1f2   : > { %v4869_v63 = vpop.eup %4868  ;;  %4870 = vrcp.f32 %v2315_v47  ;;  %v2316_v56 = vadd.f32 1.0, %v4867_v37  ;;  %v2677_v25 = vsub.s32 %v6562_v55, %v2676_v42 }
 0x1f3   : > { %4872 = vrcp.f32 %v2313_v30  ;;  %v2314_v6 = vadd.f32 1.0, %v4869_v63  ;;  %v2664_v63 = vshrl.u32 %v6567_v31, 4  ;;  %vm2897_vm14 = vcmp.ne.s32.totalorder %v2699_v9, 0 }
 0x1f4   : > { %4874 = vrcp.f32 %v2316_v56  ;;  %vm2895_vm12 = vcmp.ne.s32.totalorder %v2677_v25, 0  ;;  %vm2931_vm13 = vcmp.lt.s32.totalorder %v2677_v25, 0  ;;  %vm2933_vm15 = vcmp.lt.s32.totalorder %v2699_v9, 0 }
 0x1f5   : > { %4876 = vrcp.f32 %v2314_v6  ;;  %v2665_v6 = vmul.u32 18, %v2664_v63  ;;  %v3003_v23 = vadd.s32 18, %v2677_v25  ;;  %vm6639_vm10 = vmand %vm2931_vm13, %vm2895_vm12  ;;  %v6644_v31 = vadd.s32 176, %v5950_v51 }
 0x1f7   : > { %v2666_v3 = vsub.s32 %v2462_v49, %v2665_v6 }
 0x1f9   : > { %vm2894_vm4 = vcmp.ne.s32.totalorder %v2666_v3, 0  ;;  %vm2930_vm5 = vcmp.lt.s32.totalorder %v2666_v3, 0 }
 0x1fa   : > { %vm6629_vm9 = vmand %vm2930_vm5, %vm2894_vm4 }
 0x1fc   : > { %v4871_v0 = vpop.eup %4870 }
 0x1fd   : > { %v4873_v33 = vpop.eup %4872  ;;  %v2423_v10 = vmul.f32 %v4871_v0, %v6486_v57 }
 0x1fe   : > { %v4875_v27 = vpop.eup %4874  ;;  %v2421_v53 = vmul.f32 %v4873_v33, %v6490_v11 }
 0x1ff   : > { %v4877_v60 = vpop.eup %4876  ;;  %v2424_v11 = vmul.f32 %v4875_v27, %v6501_v15  ;;  %v3180_v15 = vsel %vm6569_vm1, %v2423_v10, 0.0 }
 0x200   : > { %v3178_v57 = vsel %vm6549_vm11, %v2421_v53, 0.0  ;;  %v2422_v19 = vmul.f32 %v4877_v60, %v6506_v45  ;;  %v3864_v48 = vpop.f32.mrb[16].mxu0  ;;  %v3229_v37 = vsel %vm1875_vm8, %v3180_v15, 0.0  ;;  %v3005_v53 = vadd.s32 18, %v2699_v9  ;;  %vm6646_vm11 = vmand %vm2933_vm15, %vm2897_vm14  ;;  %v3288_v60 = vld [vmem:[%s7275_s3 + $0x38] sm:$0xff] }
 0x201   : > { %v3225_v38 = vsel %vm1875_vm8, %v3178_v57, 0.0  ;;  %v6591_v20 = vadd.f32 %v3864_v48, %v6073_v54  ;;  %v2114_v22 = vpop.f32.mrb[17].mxu0  ;;  %v3181_v28 = vsel %vm6584_vm3, %v2424_v11, 0.0  ;;  %v3039_v11 = vsel %vm6639_vm10, %v3003_v23, %v2677_v25  ;;  %v3281_v23 = vld [vmem:[%s7275_s3] sm:$0xff] }
 0x202   : > { %v3226_v18 = vadd.f32 %v3225_v38, %v6516_v29  ;;  %v3179_v2 = vsel %vm6573_vm2, %v2422_v19, 0.0  ;;  %v6603_v45 = vadd.f32 %v6073_v54, %v2114_v22  ;;  %v3865_v32 = vpop.f32.mrb[18].mxu0  ;;  %v3231_v41 = vsel %vm1875_vm8, %v3181_v28, 0.0 }
 0x203   : > { %v3227_v5 = vsel %vm1875_vm8, %v3179_v2, 0.0  ;;  %v3740_v21 = vmul.f32 -1.442695, %v6591_v20  ;;  %v6608_v17 = vadd.f32 %v3865_v32, %v6073_v54  ;;  %v2117_v35 = vpop.f32.mrb[19].mxu0  ;;  %v3041_v19 = vsel %vm6646_vm11, %v3005_v53, %v2699_v9 }
 0x204   : > { %v3228_v40 = vadd.f32 %v3227_v5, %v3226_v18  ;;  %v3738_v29 = vmul.f32 -1.442695, %v6603_v45  ;;  %v6614_v47 = vadd.f32 %v6073_v54, %v2117_v35  ;;  %v2686_v54 = vshrl.u32 %v6559_v50, 4 }
 0x205   : > { %4878 = vpow2.f32 %v3740_v21  ;;  %v3741_v59 = vmul.f32 -1.442695, %v6608_v17  ;;  %v3002_v50 = vadd.s32 18, %v2666_v3  ;;  %v6671_v22 = vadd.s32 168, %v5950_v51 }
 0x206   : > { %v3230_v30 = vadd.f32 %v3229_v37, %v3228_v40  ;;  %4880 = vpow2.f32 %v3738_v29  ;;  %v3739_v56 = vmul.f32 -1.442695, %v6614_v47  ;;  %v2687_v34 = vmul.u32 18, %v2686_v54 }
 0x207   : > { %4882 = vpow2.f32 %v3741_v59  ;;  %v3038_v10 = vsel %vm6629_vm9, %v3002_v50, %v2666_v3  ;;  %v6667_v48 = vmul.u32.u64.low 3817748708, %v6644_v31  ;;  %v6668_v38 = vmul.u32.u64.high 3817748708, %v6644_v31, %v6667_v48 }
 0x208   : > { %v6621_v62 = vadd.f32 %v3231_v41, %v3230_v30  ;;  %4884 = vpow2.f32 %v3739_v56  ;;  %v2688_v61 = vsub.s32 %v6537_v39, %v2687_v34  ;;  %vm6658_vm1 = vcmp.lt.s32.totalorder %v3038_v10, 16  ;;  %v6703_v30 = vld [vmem:[%s7274_s2] ss:$0 sm:$0xff]  ;;  %v3282_v39 = vld [vmem:[%s7275_s3 + $0x8] sm:$0xff] }
 0x209   : > { %v6676_v18 = vmul.u32.u64.low 3817748708, %v6651_v13  ;;  %v6677_v2 = vmul.u32.u64.high 3817748708, %v6651_v13, %v6676_v18  ;;  %vm6683_vm3 = vcmp.lt.s32.totalorder %v3039_v11, 16  ;;  %vm6694_vm4 = vcmp.lt.s32.totalorder %v3041_v19, 16  ;;  %v3290_v19 = vld [vmem:[%s7275_s3 + $0x48] sm:$0xff] }
 0x20a   : > { %vm2896_vm6 = vcmp.ne.s32.totalorder %v2688_v61, 0  ;;  %vm2932_vm7 = vcmp.lt.s32.totalorder %v2688_v61, 0  ;;  %v3004_v55 = vadd.s32 18, %v2688_v61  ;;  %v3930_v57 = vpack.c.bf16 %v3284_v14, %v3281_v23 }
 0x20b   : > { %vm6633_vm0 = vmand %vm2932_vm7, %vm2896_vm6  ;;  %v6688_v35 = vmul.u32.u64.low 3817748708, %v6654_v7  ;;  %v6689_v28 = vmul.u32.u64.high 3817748708, %v6654_v7, %v6688_v35 }
 0x20c   : > { %v3040_v46 = vsel %vm6633_vm0, %v3004_v55, %v2688_v61  ;;  %v3285_v55 = vld [vmem:[%s7275_s3 + $0x20] sm:$0xff] }
 0x20d   : > { %vm6679_vm2 = vcmp.lt.s32.totalorder %v3040_v46, 16  ;;  %v2741_v10 = vshrl.u32 %v6689_v28, 4  ;;  %v3928_v53 = vpack.c.bf16 %v3285_v55, %v3282_v39  ;;  %v4975_v46 = vmov 0.0  }
 0x20e   : > { %3377 = vmatprep.mubr.f32.mxu1 %v4975_v46  ;;  %v6892_v55 = vadd.s32 240, %v5950_v51 }
 0x20f   : > { %v4879_v36 = vpop.eup %4878  ;;  %3929 = vmatprep.subr.bf16.mxu1 %v3928_v53  ;;  %v2742_v18 = vmul.u32 18, %v2741_v10  ;;  %v6901_v53 = vadd.s32 232, %v5950_v51 }
 0x210   : > { %v4881_v4 = vpop.eup %4880  ;;  %v2319_v24 = vadd.f32 1.0, %v4879_v36  ;;  %3931 = vmatpush1.bf16.msra.mxu1 %v3930_v57 }
 0x211   : > { %v4883_v0 = vpop.eup %4882  ;;  %v2317_v44 = vadd.f32 1.0, %v4881_v4 }
 0x212   : > { %v4885_v8 = vpop.eup %4884  ;;  %4886 = vrcp.f32 %v2319_v24  ;;  %v2320_v33 = vadd.f32 1.0, %v4883_v0 }
 0x213   : > { %4888 = vrcp.f32 %v2317_v44  ;;  %v2318_v49 = vadd.f32 1.0, %v4885_v8  ;;  %v2708_v8 = vshrl.u32 %v6677_v2, 4 }
 0x214   : > { %4890 = vrcp.f32 %v2320_v33 }
 0x215   : > { %4892 = vrcp.f32 %v2318_v49  ;;  %v2730_v49 = vshrl.u32 %v6668_v38, 4  ;;  %v2709_v50 = vmul.u32 18, %v2708_v8 }
 0x217   : > { %v2731_v48 = vmul.u32 18, %v2730_v49  ;;  %v2710_v38 = vsub.s32 %v6651_v13, %v2709_v50  ;;  %v2743_v13 = vsub.s32 %v6654_v7, %v2742_v18 }
 0x219   : > { %v2732_v21 = vsub.s32 %v6644_v31, %v2731_v48  ;;  %vm2898_vm5 = vcmp.ne.s32.totalorder %v2710_v38, 0  ;;  %vm2934_vm6 = vcmp.lt.s32.totalorder %v2710_v38, 0  ;;  %v3006_v31 = vadd.s32 18, %v2710_v38 }
 0x21a   : > { %vm6772_vm12 = vmand %vm2934_vm6, %vm2898_vm5  ;;  %vm2901_vm15 = vcmp.ne.s32.totalorder %v2743_v13, 0  ;;  %vm2937_vm0 = vcmp.lt.s32.totalorder %v2743_v13, 0 }
 0x21b   : > { %vm2900_vm7 = vcmp.ne.s32.totalorder %v2732_v21, 0  ;;  %vm2936_vm9 = vcmp.lt.s32.totalorder %v2732_v21, 0 }
 0x21c   : > { %v4887_v16 = vpop.eup %4886  ;;  %vm6776_vm10 = vmand %vm2936_vm9, %vm2900_vm7 }
 0x21d   : > { %v4889_v1 = vpop.eup %4888  ;;  %v2427_v12 = vmul.f32 %v4887_v16, %v6591_v20  ;;  %v3291_v16 = vld [vmem:[%s7275_s3 + $0x50] sm:$0xff] }
 0x21e   : > { %v4891_v26 = vpop.eup %4890  ;;  %v2425_v15 = vmul.f32 %v4889_v1, %v6603_v45  ;;  %v3932_v11 = vpack.c.bf16 %v3291_v16, %v3288_v60  ;;  %v3287_v1 = vld [vmem:[%s7275_s3 + $0x30] sm:$0xff] }
 0x21f   : > { %v4893_v32 = vpop.eup %4892  ;;  %v2428_v45 = vmul.f32 %v4891_v26, %v6608_v17  ;;  %v6709_v17 = vmul.u32.u64.low 3817748708, %v6671_v22  ;;  %v6710_v41 = vmul.u32.u64.high 3817748708, %v6671_v22, %v6709_v17  ;;  %v3184_v54 = vsel %vm6679_vm2, %v2427_v12, 0.0 }
 0x220   : > { %v3182_v20 = vsel %vm6658_vm1, %v2425_v15, 0.0  ;;  %v2426_v29 = vmul.f32 %v4893_v32, %v6614_v47  ;;  %v3868_v37 = vpop.f32.mrb[20].mxu0  ;;  %v3237_v0 = vsel %vm1875_vm8, %v3184_v54, 0.0  ;;  %v3934_v12 = vpack.c.bf16 %v3290_v19, %v3287_v1  ;;  %3933 = vmatprep.subr.bf16.mxu1 %v3932_v11  ;;  %vm6789_vm1 = vmand %vm2937_vm0, %vm2901_vm15 }
 0x221   : > { %v3233_v59 = vsel %vm1875_vm8, %v3182_v20, 0.0  ;;  %v6706_v63 = vadd.f32 %v6703_v30, %v3868_v37  ;;  %v2130_v56 = vpop.f32.mrb[21].mxu0  ;;  %v3185_v43 = vsel %vm6694_vm4, %v2428_v45, 0.0  ;;  %v2719_v27 = vshrl.u32 %v6710_v41, 4 }
 0x222   : > { %v3234_v47 = vadd.f32 %v3233_v59, %v6621_v62  ;;  %v3183_v6 = vsel %vm6683_vm3, %v2426_v29, 0.0  ;;  %v6718_v58 = vadd.f32 %v6703_v30, %v2130_v56  ;;  %v3869_v52 = vpop.f32.mrb[22].mxu0  ;;  %v3239_v25 = vsel %vm1875_vm8, %v3185_v43, 0.0  ;;  %3935 = vmatpush1.bf16.msra.mxu1 %v3934_v12 }
 0x223   : > { %v3235_v34 = vsel %vm1875_vm8, %v3183_v6, 0.0  ;;  %v3744_v3 = vmul.f32 -1.442695, %v6706_v63  ;;  %v6723_v42 = vadd.f32 %v6703_v30, %v3869_v52  ;;  %v2133_v36 = vpop.f32.mrb[23].mxu0  ;;  %v2720_v26 = vmul.u32 18, %v2719_v27 }
 0x224   : > { %v3236_v4 = vadd.f32 %v3235_v34, %v3234_v47  ;;  %v3742_v62 = vmul.f32 -1.442695, %v6718_v58  ;;  %v6729_v24 = vadd.f32 %v6703_v30, %v2133_v36  ;;  %v4976_v29 = vmov 0.0|0.0  }
 0x225   : > { %4894 = vpow2.f32 %v3744_v3  ;;  %v3745_v61 = vmul.f32 -1.442695, %v6723_v42  ;;  %v2721_v45 = vsub.s32 %v6671_v22, %v2720_v26  ;;  %3936 = vmatprep.subr.bf16.mxu1 %v4976_v29  ;;  %v3008_v22 = vadd.s32 18, %v2732_v21 }
 0x226   : > { %v3238_v44 = vadd.f32 %v3237_v0, %v3236_v4  ;;  %4896 = vpow2.f32 %v3742_v62  ;;  %v3743_v33 = vmul.f32 -1.442695, %v6729_v24  ;;  %v3042_v56 = vsel %vm6772_vm12, %v3006_v31, %v2710_v38 }
 0x227   : > { %4898 = vpow2.f32 %v3745_v61  ;;  %vm2899_vm13 = vcmp.ne.s32.totalorder %v2721_v45, 0  ;;  %vm2935_vm14 = vcmp.lt.s32.totalorder %v2721_v45, 0  ;;  %v3007_v59 = vadd.s32 18, %v2721_v45 }
 0x228   : > { %v6736_v9 = vadd.f32 %v3239_v25, %v3238_v44  ;;  %4900 = vpow2.f32 %v3743_v33  ;;  %v3009_v17 = vadd.s32 18, %v2743_v13  ;;  %vm6782_vm11 = vmand %vm2935_vm14, %vm2899_vm13  ;;  %v6787_v54 = vadd.s32 208, %v5950_v51 }
 0x229   : > { %v2470_v6 = vadd.s32 192, %v5950_v51  ;;  %v6795_v52 = vadd.s32 200, %v5950_v51  ;;  %v3044_v3 = vsel %vm6776_vm10, %v3008_v22, %v2732_v21  ;;  %vm6799_vm2 = vcmp.lt.s32.totalorder %v3042_v56, 16 }
 0x22a   : > { %v3043_v43 = vsel %vm6782_vm11, %v3007_v59, %v2721_v45  ;;  %v3045_v62 = vsel %vm6789_vm1, %v3009_v17, %v2743_v13  ;;  %v6808_v0 = vmul.u32.u64.low 3817748708, %v6787_v54  ;;  %v6809_v61 = vmul.u32.u64.high 3817748708, %v6787_v54, %v6808_v0 }
 0x22b   : > { %v6812_v44 = vadd.s32 216, %v5950_v51  ;;  %v6816_v49 = vmul.u32.u64.low 3817748708, %v2470_v6  ;;  %v6817_v50 = vmul.u32.u64.high 3817748708, %v2470_v6, %v6816_v49  ;;  %vm6819_vm3 = vcmp.lt.s32.totalorder %v3044_v3, 16 }
 0x22c   : > { %vm6823_vm4 = vcmp.lt.s32.totalorder %v3043_v43, 16  ;;  %v6828_v23 = vmul.u32.u64.low 3817748708, %v6795_v52  ;;  %v6829_v10 = vmul.u32.u64.high 3817748708, %v6795_v52, %v6828_v23  ;;  %vm6834_vm5 = vcmp.lt.s32.totalorder %v3045_v62, 16 }
 0x22d   : > { %v6844_v1 = vmul.u32.u64.low 3817748708, %v6812_v44  ;;  %v6845_v19 = vmul.u32.u64.high 3817748708, %v6812_v44, %v6844_v1  ;;  %v2752_v13 = vshrl.u32 %v6817_v50, 4 }
 0x22e   : > { %v2763_v7 = vshrl.u32 %v6829_v10, 4 }
 0x22f   : > { %v4895_v15 = vpop.eup %4894  ;;  %v2753_v59 = vmul.u32 18, %v2752_v13  ;;  %v2785_v56 = vshrl.u32 %v6845_v19, 4 }
 0x230   : > { %v4897_v2 = vpop.eup %4896  ;;  %v2323_v32 = vadd.f32 1.0, %v4895_v15  ;;  %v2764_v17 = vmul.u32 18, %v2763_v7 }
 0x231   : > { %v4899_v5 = vpop.eup %4898  ;;  %v2321_v35 = vadd.f32 1.0, %v4897_v2  ;;  %v2754_v47 = vsub.s32 %v2470_v6, %v2753_v59  ;;  %v2786_v3 = vmul.u32 18, %v2785_v56 }
 0x232   : > { %v4901_v28 = vpop.eup %4900  ;;  %4902 = vrcp.f32 %v2323_v32  ;;  %v2324_v20 = vadd.f32 1.0, %v4899_v5 }
 0x233   : > { %4904 = vrcp.f32 %v2321_v35  ;;  %v2322_v40 = vadd.f32 1.0, %v4901_v28  ;;  %v2774_v28 = vshrl.u32 %v6809_v61, 4  ;;  %vm2902_vm9 = vcmp.ne.s32.totalorder %v2754_v47, 0 }
 0x234   : > { %4906 = vrcp.f32 %v2324_v20  ;;  %vm2938_vm12 = vcmp.lt.s32.totalorder %v2754_v47, 0 }
 0x235   : > { %4908 = vrcp.f32 %v2322_v40  ;;  %v2775_v22 = vmul.u32 18, %v2774_v28  ;;  %vm6883_vm0 = vmand %vm2938_vm12, %vm2902_vm9 }
 0x237   : > { %v2776_v41 = vsub.s32 %v6787_v54, %v2775_v22 }
 0x239   : > { %vm2904_vm6 = vcmp.ne.s32.totalorder %v2776_v41, 0  ;;  %vm2940_vm7 = vcmp.lt.s32.totalorder %v2776_v41, 0 }
 0x23a   : > { %vm6879_vm15 = vmand %vm2940_vm7, %vm2904_vm6 }
 0x23c   : > { %v4903_v34 = vpop.eup %4902 }
 0x23d   : > { %v4905_v4 = vpop.eup %4904  ;;  %v2431_v33 = vmul.f32 %v4903_v34, %v6706_v63 }
 0x23e   : > { %v4907_v8 = vpop.eup %4906  ;;  %v2429_v25 = vmul.f32 %v4905_v4, %v6718_v58  ;;  %v2765_v4 = vsub.s32 %v6795_v52, %v2764_v17  ;;  %v3012_v52 = vadd.s32 18, %v2776_v41 }
 0x23f   : > { %v4909_v27 = vpop.eup %4908  ;;  %v2432_v58 = vmul.f32 %v4907_v8, %v6723_v42  ;;  %v3188_v42 = vsel %vm6819_vm3, %v2431_v33, 0.0  ;;  %v2787_v33 = vsub.s32 %v6812_v44, %v2786_v3 }
 0x240   : > { %v3186_v63 = vsel %vm6799_vm2, %v2429_v25, 0.0  ;;  %v2430_v14 = vmul.f32 %v4909_v27, %v6729_v24  ;;  %v3872_v60 = vpop.f32.mrb[24].mxu0  ;;  %v3245_v35 = vsel %vm1875_vm8, %v3188_v42, 0.0  ;;  %vm2903_vm13 = vcmp.ne.s32.totalorder %v2765_v4, 0 }
 0x241   : > { %v3241_v16 = vsel %vm1875_vm8, %v3186_v63, 0.0  ;;  %v6841_v57 = vadd.f32 %v6703_v30, %v3872_v60  ;;  %v2146_v11 = vpop.f32.mrb[25].mxu0  ;;  %v3189_v32 = vsel %vm6834_vm5, %v2432_v58, 0.0  ;;  %vm2939_vm14 = vcmp.lt.s32.totalorder %v2765_v4, 0 }
 0x242   : > { %v3242_v48 = vadd.f32 %v3241_v16, %v6736_v9  ;;  %v3187_v38 = vsel %vm6823_vm4, %v2430_v14, 0.0  ;;  %v6853_v24 = vadd.f32 %v6703_v30, %v2146_v11  ;;  %v3873_v26 = vpop.f32.mrb[26].mxu0  ;;  %v3247_v31 = vsel %vm1875_vm8, %v3189_v32, 0.0  ;;  %vm2975_vm1 = vmand %vm2939_vm14, %vm2903_vm13 }
 0x243   : > { %v3243_v12 = vsel %vm1875_vm8, %v3187_v38, 0.0  ;;  %v3748_v15 = vmul.f32 -1.442695, %v6841_v57  ;;  %v6858_v18 = vadd.f32 %v6703_v30, %v3873_v26  ;;  %v2149_v2 = vpop.f32.mrb[27].mxu0  ;;  %v3010_v25 = vadd.s32 18, %v2754_v47 }
 0x244   : > { %v3244_v5 = vadd.f32 %v3243_v12, %v3242_v48  ;;  %v3746_v9 = vmul.f32 -1.442695, %v6853_v24  ;;  %v6864_v21 = vadd.f32 %v6703_v30, %v2149_v2  ;;  %v3011_v50 = vadd.s32 18, %v2765_v4 }
 0x245   : > { %4910 = vpow2.f32 %v3748_v15  ;;  %v3749_v20 = vmul.f32 -1.442695, %v6858_v18  ;;  %vm2905_vm10 = vcmp.ne.s32.totalorder %v2787_v33, 0  ;;  %vm2941_vm11 = vcmp.lt.s32.totalorder %v2787_v33, 0 }
 0x246   : > { %v3246_v45 = vadd.f32 %v3245_v35, %v3244_v5  ;;  %4912 = vpow2.f32 %v3746_v9  ;;  %v3747_v40 = vmul.f32 -1.442695, %v6864_v21  ;;  %v3048_v44 = vsel %vm6879_vm15, %v3012_v52, %v2776_v41  ;;  %vm6894_vm2 = vmand %vm2941_vm11, %vm2905_vm10 }
 0x247   : > { %4914 = vpow2.f32 %v3749_v20  ;;  %v3046_v27 = vsel %vm6883_vm0, %v3010_v25, %v2754_v47  ;;  %v3013_v39 = vadd.s32 18, %v2787_v33  ;;  %v3047_v10 = vsel %vm2975_vm1, %v3011_v50, %v2765_v4 }
 0x248   : > { %v6872_v37 = vadd.f32 %v3247_v31, %v3246_v45  ;;  %4916 = vpow2.f32 %v3747_v40  ;;  %v2474_v63 = vadd.s32 224, %v5950_v51  ;;  %v2477_v58 = vadd.s32 248, %v5950_v51 }
 0x249   : > { %vm6903_vm3 = vcmp.lt.s32.totalorder %v3048_v44, 16  ;;  %vm6907_vm4 = vcmp.lt.s32.totalorder %v3046_v27, 16  ;;  %v3049_v1 = vsel %vm6894_vm2, %v3013_v39, %v2787_v33  ;;  %vm6913_vm5 = vcmp.lt.s32.totalorder %v3047_v10, 16 }
 0x24a   : > { %v6918_v42 = vmul.u32.u64.low 3817748708, %v6892_v55  ;;  %v6919_v48 = vmul.u32.u64.high 3817748708, %v6892_v55, %v6918_v42  ;;  %v6923_v15 = vmul.u32.u64.low 3817748708, %v2474_v63  ;;  %v6924_v2 = vmul.u32.u64.high 3817748708, %v2474_v63, %v6923_v15 }
 0x24b   : > { %v6926_v5 = vmul.u32.u64.low 3817748708, %v2477_v58  ;;  %v6927_v9 = vmul.u32.u64.high 3817748708, %v2477_v58, %v6926_v5  ;;  %v6930_v35 = vmul.u32.u64.low 3817748708, %v6901_v53  ;;  %v6931_v28 = vmul.u32.u64.high 3817748708, %v6901_v53, %v6930_v35 }
 0x24c   : > { %vm6938_vm6 = vcmp.lt.s32.totalorder %v3049_v1, 16  ;;  %v2478_v35 = vadd.s32 256, %v5950_v51 }
 0x24d   : > { %v2829_v6 = vshrl.u32 %v6927_v9, 4  ;;  %v2807_v25 = vshrl.u32 %v6931_v28, 4  ;;  %v6989_v9 = vadd.s32 272, %v5950_v51  ;;  %v6993_v28 = vadd.s32 280, %v5950_v51 }
 0x24f   : > { %v4911_v34 = vpop.eup %4910  ;;  %v2830_v44 = vmul.u32 18, %v2829_v6  ;;  %v2808_v27 = vmul.u32 18, %v2807_v25 }
 0x250   : > { %v4913_v36 = vpop.eup %4912  ;;  %v2327_v43 = vadd.f32 1.0, %v4911_v34 }
 0x251   : > { %v4915_v62 = vpop.eup %4914  ;;  %v2325_v0 = vadd.f32 1.0, %v4913_v36 }
 0x252   : > { %v4917_v61 = vpop.eup %4916  ;;  %4918 = vrcp.f32 %v2327_v43  ;;  %v2328_v8 = vadd.f32 1.0, %v4915_v62  ;;  %v2818_v62 = vshrl.u32 %v6919_v48, 4 }
 0x253   : > { %4920 = vrcp.f32 %v2325_v0  ;;  %v2326_v54 = vadd.f32 1.0, %v4917_v61 }
 0x254   : > { %4922 = vrcp.f32 %v2328_v8  ;;  %v2796_v8 = vshrl.u32 %v6924_v2, 4  ;;  %v2819_v49 = vmul.u32 18, %v2818_v62 }
 0x255   : > { %4924 = vrcp.f32 %v2326_v54 }
 0x256   : > { %v2797_v50 = vmul.u32 18, %v2796_v8  ;;  %v2820_v39 = vsub.s32 %v6892_v55, %v2819_v49 }
 0x258   : > { %v2798_v23 = vsub.s32 %v2474_v63, %v2797_v50  ;;  %vm2908_vm7 = vcmp.ne.s32.totalorder %v2820_v39, 0  ;;  %vm2944_vm9 = vcmp.lt.s32.totalorder %v2820_v39, 0 }
 0x259   : > { %vm6976_vm0 = vmand %vm2944_vm9, %vm2908_vm7 }
 0x25a   : > { %vm2906_vm12 = vcmp.ne.s32.totalorder %v2798_v23, 0  ;;  %vm2942_vm13 = vcmp.lt.s32.totalorder %v2798_v23, 0 }
 0x25b   : > { %vm6980_vm1 = vmand %vm2942_vm13, %vm2906_vm12 }
 0x25c   : > { %v4919_v14 = vpop.eup %4918 }
 0x25d   : > { %v4921_v11 = vpop.eup %4920  ;;  %v2435_v26 = vmul.f32 %v4919_v14, %v6841_v57  ;;  %v2831_v14 = vsub.s32 %v2477_v58, %v2830_v44  ;;  %v3016_v58 = vadd.s32 18, %v2820_v39 }
 0x25e   : > { %v4923_v38 = vpop.eup %4922  ;;  %v2433_v12 = vmul.f32 %v4921_v11, %v6853_v24  ;;  %v2809_v11 = vsub.s32 %v6901_v53, %v2808_v27 }
 0x25f   : > { %v4925_v32 = vpop.eup %4924  ;;  %v2436_v45 = vmul.f32 %v4923_v38, %v6858_v18  ;;  %v3192_v22 = vsel %vm6903_vm3, %v2435_v26, 0.0  ;;  %vm2909_vm14 = vcmp.ne.s32.totalorder %v2831_v14, 0  ;;  %vm2945_vm15 = vcmp.lt.s32.totalorder %v2831_v14, 0 }
 0x260   : > { %v3190_v20 = vsel %vm6907_vm4, %v2433_v12, 0.0  ;;  %v2434_v57 = vmul.f32 %v4925_v32, %v6864_v21  ;;  %v3876_v13 = vpop.f32.mrb[28].mxu0  ;;  %v3253_v4 = vsel %vm1875_vm8, %v3192_v22, 0.0  ;;  %vm2907_vm10 = vcmp.ne.s32.totalorder %v2809_v11, 0  ;;  %vm2981_vm2 = vmand %vm2945_vm15, %vm2909_vm14 }
 0x261   : > { %v3249_v24 = vsel %vm1875_vm8, %v3190_v20, 0.0  ;;  %v6943_v31 = vadd.f32 %v6703_v30, %v3876_v13  ;;  %v2162_v7 = vpop.f32.mrb[29].mxu0  ;;  %v3193_v3 = vsel %vm6938_vm6, %v2436_v45, 0.0  ;;  %vm2943_vm11 = vcmp.lt.s32.totalorder %v2809_v11, 0 }
 0x262   : > { %v3250_v59 = vadd.f32 %v3249_v24, %v6872_v37  ;;  %v3191_v18 = vsel %vm6913_vm5, %v2434_v57, 0.0  ;;  %v6951_v21 = vadd.f32 %v6703_v30, %v2162_v7  ;;  %v3877_v56 = vpop.f32.mrb[30].mxu0  ;;  %v3255_v54 = vsel %vm1875_vm8, %v3193_v3, 0.0  ;;  %vm2979_vm3 = vmand %vm2943_vm11, %vm2907_vm10 }
 0x263   : > { %v3251_v17 = vsel %vm1875_vm8, %v3191_v18, 0.0  ;;  %v3752_v41 = vmul.f32 -1.442695, %v6943_v31  ;;  %v6956_v47 = vadd.f32 %v6703_v30, %v3877_v56  ;;  %v2165_v34 = vpop.f32.mrb[31].mxu0  ;;  %v3014_v38 = vadd.s32 18, %v2798_v23 }
 0x264   : > { %v3252_v36 = vadd.f32 %v3251_v17, %v3250_v59  ;;  %v3750_v37 = vmul.f32 -1.442695, %v6951_v21  ;;  %v6962_v43 = vadd.f32 %v6703_v30, %v2165_v34  ;;  %v3017_v26 = vadd.s32 18, %v2831_v14 }
 0x265   : > { %4926 = vpow2.f32 %v3752_v41  ;;  %v3753_v0 = vmul.f32 -1.442695, %v6956_v47  ;;  %v3015_v12 = vadd.s32 18, %v2809_v11  ;;  %v3052_v15 = vsel %vm6976_vm0, %v3016_v58, %v2820_v39 }
 0x266   : > { %v3254_v61 = vadd.f32 %v3253_v4, %v3252_v36  ;;  %4928 = vpow2.f32 %v3750_v37  ;;  %v3751_v33 = vmul.f32 -1.442695, %v6962_v43  ;;  %v3050_v2 = vsel %vm6980_vm1, %v3014_v38, %v2798_v23 }
 0x267   : > { %4930 = vpow2.f32 %v3753_v0  ;;  %v3053_v32 = vsel %vm2981_vm2, %v3017_v26, %v2831_v14  ;;  %v3051_v5 = vsel %vm2979_vm3, %v3015_v12, %v2809_v11  ;;  %vm6995_vm4 = vcmp.lt.s32.totalorder %v3052_v15, 16 }
 0x268   : > { %v6971_v52 = vadd.f32 %v3255_v54, %v3254_v61  ;;  %4932 = vpow2.f32 %v3751_v33  ;;  %vm6999_vm5 = vcmp.lt.s32.totalorder %v3050_v2, 16  ;;  %vm7003_vm6 = vcmp.lt.s32.totalorder %v3053_v32, 16 }
 0x269   : > { %vm7007_vm7 = vcmp.lt.s32.totalorder %v3051_v5, 16  ;;  %v2479_v7 = vadd.s32 264, %v5950_v51  ;;  %v7015_v56 = vmul.u32.u64.low 3817748708, %v6989_v9  ;;  %v7016_v17 = vmul.u32.u64.high 3817748708, %v6989_v9, %v7015_v56 }
 0x26a   : > { %v7018_v3 = vmul.u32.u64.low 3817748708, %v2478_v35  ;;  %v7019_v36 = vmul.u32.u64.high 3817748708, %v2478_v35, %v7018_v3  ;;  %v7022_v37 = vmul.u32.u64.low 3817748708, %v6993_v28  ;;  %v7023_v4 = vmul.u32.u64.high 3817748708, %v6993_v28, %v7022_v37 }
 0x26b   : > { %v7036_v6 = vmul.u32.u64.low 3817748708, %v2479_v7  ;;  %v7037_v25 = vmul.u32.u64.high 3817748708, %v2479_v7, %v7036_v6 }
 0x26c   : > { %v2873_v58 = vshrl.u32 %v7023_v4, 4 }
 0x26e   : > { %v2874_v5 = vmul.u32 18, %v2873_v58 }
 0x26f   : > { %v4927_v10 = vpop.eup %4926 }
 0x270   : > { %v4929_v60 = vpop.eup %4928  ;;  %v2331_v16 = vadd.f32 1.0, %v4927_v10 }
 0x271   : > { %v4931_v1 = vpop.eup %4930  ;;  %v2329_v19 = vadd.f32 1.0, %v4929_v60 }
 0x272   : > { %v4933_v42 = vpop.eup %4932  ;;  %4934 = vrcp.f32 %v2331_v16  ;;  %v2332_v48 = vadd.f32 1.0, %v4931_v1 }
 0x273   : > { %4936 = vrcp.f32 %v2329_v19  ;;  %v2330_v55 = vadd.f32 1.0, %v4933_v42  ;;  %v2840_v42 = vshrl.u32 %v7019_v36, 4 }
 0x274   : > { %4938 = vrcp.f32 %v2332_v48  ;;  %v2862_v48 = vshrl.u32 %v7016_v17, 4 }
 0x275   : > { %4940 = vrcp.f32 %v2330_v55  ;;  %v2851_v55 = vshrl.u32 %v7037_v25, 4  ;;  %v2841_v63 = vmul.u32 18, %v2840_v42  ;;  %v3289_v42 = vld [vmem:[%s7275_s3 + $0x40] sm:$0xff] }
 0x276   : > { %v2863_v53 = vmul.u32 18, %v2862_v48  ;;  %v3473_v48 = vld [vmem:[%s7277_s5 + $0x80] sm:$0xff] }
 0x277   : > { %v2852_v26 = vmul.u32 18, %v2851_v55  ;;  %v2842_v2 = vsub.s32 %v2478_v35, %v2841_v63  ;;  %v3474_v55 = vld [vmem:[%s7277_s5 + $0x88] sm:$0xff] }
 0x278   : > { %v2864_v45 = vsub.s32 %v6989_v9, %v2863_v53  ;;  %v3942_v58 = vpack.c.bf16 %v3474_v55, %v3473_v48  ;;  %v3457_v53 = vld [vmem:[%s7277_s5] sm:$0xff] }
 0x279   : > { %v2853_v24 = vsub.s32 %v2479_v7, %v2852_v26  ;;  %vm2910_vm9 = vcmp.ne.s32.totalorder %v2842_v2, 0  ;;  %vm2946_vm12 = vcmp.lt.s32.totalorder %v2842_v2, 0  ;;  %v3475_v26 = vld [vmem:[%s7277_s5 + $0x90] sm:$0xff] }
 0x27a   : > { %vm2912_vm13 = vcmp.ne.s32.totalorder %v2864_v45, 0  ;;  %vm2948_vm14 = vcmp.lt.s32.totalorder %v2864_v45, 0  ;;  %vm2982_vm15 = vmand %vm2946_vm12, %vm2910_vm9  ;;  %v3020_v9 = vadd.s32 18, %v2864_v45  ;;  %vm4977_vm12 = vmmov 0  }
 0x27b   : > { %vm2911_vm0 = vcmp.ne.s32.totalorder %v2853_v24, 0  ;;  %vm2947_vm10 = vcmp.lt.s32.totalorder %v2853_v24, 0  ;;  %vm7065_vm11 = vmand %vm2948_vm14, %vm2912_vm13  ;;  %v3019_v7 = vadd.s32 18, %v2853_v24 }
 0x27c   : > { %v4935_v20 = vpop.eup %4934  ;;  %vm2983_vm3 = vmand %vm2947_vm10, %vm2911_vm0 }
 0x27d   : > { %v4937_v57 = vpop.eup %4936  ;;  %v2439_v59 = vmul.f32 %v4935_v20, %v6943_v31  ;;  %v3055_v3 = vsel %vm2983_vm3, %v3019_v7, %v2853_v24  ;;  %v3461_v24 = vld [vmem:[%s7277_s5 + $0x20] sm:$0xff]  ;;  %v3463_v7 = vld [vmem:[%s7277_s5 + $0x30] sm:$0xff] }
 0x27e   : > { %v4939_v22 = vpop.eup %4938  ;;  %v2437_v18 = vmul.f32 %v4937_v57, %v6951_v21 }
 0x27f   : > { %v4941_v41 = vpop.eup %4940  ;;  %v3880_v34 = vpop.f32.mrb[32].mxu0  ;;  %v2440_v31 = vmul.f32 %v4939_v22, %v6956_v47  ;;  %v3196_v49 = vsel %vm6995_vm4, %v2439_v59, 0.0  ;;  %v2875_v22 = vsub.s32 %v6993_v28, %v2874_v5  ;;  %v3018_v59 = vadd.s32 18, %v2842_v2  ;;  %v3460_v5 = vld [vmem:[%s7277_s5 + $0x18] sm:$0xff] }
 0x280   : > { %v3194_v62 = vsel %vm6999_vm5, %v2437_v18, 0.0  ;;  %v2438_v21 = vmul.f32 %v4941_v41, %v6962_v43  ;;  %v7030_v0 = vadd.f32 %v6703_v30, %v3880_v34  ;;  %v2178_v61 = vpop.f32.mrb[33].mxu0  ;;  %v3261_v60 = vsel %vm1875_vm8, %v3196_v49, 0.0 }
 0x281   : > { %v3257_v8 = vsel %vm1875_vm8, %v3194_v62, 0.0  ;;  %v7034_v33 = vadd.f32 %v6703_v30, %v2178_v61  ;;  %v3881_v54 = vpop.f32.mrb[34].mxu0  ;;  %v3197_v14 = vsel %vm7003_vm6, %v2440_v31, 0.0  ;;  %vm2913_vm1 = vcmp.ne.s32.totalorder %v2875_v22, 0 }
 0x282   : > { %v3258_v47 = vadd.f32 %v3257_v8, %v6971_v52  ;;  %v3195_v43 = vsel %vm7007_vm7, %v2438_v21, 0.0  ;;  %v3756_v50 = vmul.f32 -1.442695, %v7030_v0  ;;  %v2181_v44 = vpop.f32.mrb[35].mxu0  ;;  %v7048_v23 = vadd.f32 %v6703_v30, %v3881_v54 }
 0x283   : > { %v3259_v27 = vsel %vm1875_vm8, %v3195_v43, 0.0  ;;  %v3754_v39 = vmul.f32 -1.442695, %v7034_v33  ;;  %v7051_v10 = vadd.f32 %v6703_v30, %v2181_v44  ;;  %v3263_v19 = vsel %vm1875_vm8, %v3197_v14, 0.0 }
 0x284   : > { %v3260_v52 = vadd.f32 %v3259_v27, %v3258_v47  ;;  %4942 = vpow2.f32 %v3756_v50  ;;  %v3757_v16 = vmul.f32 -1.442695, %v7048_v23  ;;  %vm2949_vm2 = vcmp.lt.s32.totalorder %v2875_v22, 0 }
 0x285   : > { %4944 = vpow2.f32 %v3754_v39  ;;  %v3755_v11 = vmul.f32 -1.442695, %v7051_v10  ;;  %v3054_v18 = vsel %vm2982_vm15, %v3018_v59, %v2842_v2  ;;  %v3021_v56 = vadd.s32 18, %v2875_v22  ;;  %vm7069_vm4 = vmand %vm2949_vm2, %vm2913_vm1  ;;  %v3480_v59 = vld [vmem:[%s7277_s5 + $0xb8] sm:$0xff] }
 0x286   : > { %v3262_v1 = vadd.f32 %v3261_v60, %v3260_v52  ;;  %4946 = vpow2.f32 %v3757_v16  ;;  %v3056_v34 = vsel %vm7065_vm11, %v3020_v9, %v2864_v45  ;;  %vm3090_vm5 = vcmp.lt.s32.totalorder %v3054_v18, 16  ;;  %v3286_v16 = vld [vmem:[%s7275_s3 + $0x28] sm:$0xff]  ;;  %v3464_v18 = vld [vmem:[%s7277_s5 + $0x38] sm:$0xff] }
 0x287   : > { %4948 = vpow2.f32 %v3755_v11  ;;  %v3057_v62 = vsel %vm7069_vm4, %v3021_v56, %v2875_v22  ;;  %vm3092_vm6 = vcmp.lt.s32.totalorder %v3056_v34, 16  ;;  %vm3091_vm7 = vcmp.lt.s32.totalorder %v3055_v3, 16  ;;  %v3478_v45 = vld [vmem:[%s7277_s5 + $0xa8] sm:$0xff]  ;;  %v3479_v22 = vld [vmem:[%s7277_s5 + $0xb0] sm:$0xff]  ;;  %v3481_v56 = vld [vmem:[%s7277_s5 + $0xc0] sm:$0xff] }
 0x288   : > { %v3264_v30 = vadd.f32 %v3263_v19, %v3262_v1  ;;  %vm3093_vm9 = vcmp.lt.s32.totalorder %v3057_v62, 16  ;;  %v3954_v9 = vpack.c.bf16 %v3480_v59, %v3479_v22  ;;  %v3956_v28 = vpack.c.bf16 %v3464_v18, %v3463_v7  ;;  %v3465_v34 = vld [vmem:[%s7277_s5 + $0x40] sm:$0xff]  ;;  %v3466_v3 = vld [vmem:[%s7277_s5 + $0x48] sm:$0xff]  ;;  %v3504_v18 = vld [vmem:[%s7277_s5 + $0x178] sm:$0xff] }
 0x289   : > { %v3305_v22 = vsub.s32 2, %v5950_v51  ;;  %v3501_v59 = vld [vmem:[%s7277_s5 + $0x160] sm:$0xff] }
 0x28e   : > { %v4943_v38 = vpop.eup %4942 }
 0x28f   : > { %v4945_v12 = vpop.eup %4944  ;;  %v2335_v15 = vadd.f32 1.0, %v4943_v38  ;;  %v3458_v38 = vld [vmem:[%s7277_s5 + $0x8] sm:$0xff] }
 0x290   : > { %v2333_v32 = vadd.f32 1.0, %v4945_v12  ;;  %v4947_v20 = vpop.eup %4946  ;;  %v3476_v12 = vld [vmem:[%s7277_s5 + $0x98] sm:$0xff] }
 0x291   : > { %4950 = vrcp.f32 %v2335_v15  ;;  %v4949_v57 = vpop.eup %4948  ;;  %v2336_v13 = vadd.f32 1.0, %v4947_v20  ;;  %v3944_v15 = vpack.c.bf16 %v3458_v38, %v3457_v53  ;;  %v3946_v2 = vpack.c.bf16 %v3476_v12, %v3475_v26  ;;  %v3477_v20 = vld [vmem:[%s7277_s5 + $0xa0] sm:$0xff] }
 0x292   : > { %4952 = vrcp.f32 %v2333_v32  ;;  %v2334_v40 = vadd.f32 1.0, %v4949_v57  ;;  %v3459_v32 = vld [vmem:[%s7277_s5 + $0x10] sm:$0xff]  ;;  %v3493_v12 = vld [vmem:[%s7277_s5 + $0x120] sm:$0xff] }
 0x293   : > { %4954 = vrcp.f32 %v2336_v13  ;;  %v3948_v57 = vpack.c.bf16 %v3460_v5, %v3459_v32  ;;  %v3950_v13 = vpack.c.bf16 %v3478_v45, %v3477_v20  ;;  %v3495_v32 = vld [vmem:[%s7277_s5 + $0x130] sm:$0xff]  ;;  %v3497_v20 = vld [vmem:[%s7277_s5 + $0x140] sm:$0xff]  ;;  %v3498_v45 = vld [vmem:[%s7277_s5 + $0x148] sm:$0xff] }
 0x294   : > { %4956 = vrcp.f32 %v2334_v40  ;;  %v3462_v40 = vld [vmem:[%s7277_s5 + $0x28] sm:$0xff] }
 0x295   : > { %v3952_v35 = vpack.c.bf16 %v3462_v40, %v3461_v24  ;;  %v3500_v24 = vld [vmem:[%s7277_s5 + $0x158] sm:$0xff] }
 0x29b   : > { %v4951_v17 = vpop.eup %4950 }
 0x29c   : > { %v4953_v41 = vpop.eup %4952  ;;  %v2443_v4 = vmul.f32 %v4951_v17, %v7030_v0  ;;  %v3482_v17 = vld [vmem:[%s7277_s5 + $0xc8] sm:$0xff] }
 0x29d   : > { %v2441_v36 = vmul.f32 %v4953_v41, %v7034_v33  ;;  %v4955_v37 = vpop.eup %4954  ;;  %v3958_v41 = vpack.c.bf16 %v3482_v17, %v3481_v56 }
 0x29e   : > { %v4957_v31 = vpop.eup %4956  ;;  %v2444_v8 = vmul.f32 %v4955_v37, %v7048_v23  ;;  %v3200_v25 = vsel %vm3092_vm6, %v2443_v4, 0.0  ;;  %v3484_v37 = vld [vmem:[%s7277_s5 + $0xd8] sm:$0xff]  ;;  %v3960_v4 = vpack.c.bf16 %v3466_v3, %v3465_v34 }
 0x29f   : > { %v3198_v21 = vsel %vm3090_vm5, %v2441_v36, 0.0  ;;  %v2442_v54 = vmul.f32 %v4957_v31, %v7051_v10  ;;  %v3269_v43 = vsel %vm1875_vm8, %v3200_v25, 0.0  ;;  %v3283_v10 = vld [vmem:[%s7275_s3 + $0x10] sm:$0xff]  ;;  %v3469_v25 = vld [vmem:[%s7277_s5 + $0x60] sm:$0xff] }
 0x2a0   : > { %v3265_v61 = vsel %vm1875_vm8, %v3198_v21, 0.0  ;;  %v3201_v0 = vsel %vm3093_vm9, %v2444_v8, 0.0  ;;  %v3937_v1 = vpack.c.bf16 %v3286_v16, %v3283_v10  ;;  %v3483_v36 = vld [vmem:[%s7277_s5 + $0xd0] sm:$0xff]  ;;  %v3468_v21 = vld [vmem:[%s7277_s5 + $0x58] sm:$0xff]  ;;  %v3486_v8 = vld [vmem:[%s7277_s5 + $0xe8] sm:$0xff] }
 0x2a1   : > { %v3266_v6 = vadd.f32 %v3265_v61, %v3264_v30  ;;  %v3199_v33 = vsel %vm3091_vm7, %v2442_v54, 0.0  ;;  %v3271_v44 = vsel %vm1875_vm8, %v3201_v0, 0.0  ;;  %v3292_v30 = vld [vmem:[%s7275_s3 + $0x58] sm:$0xff]  ;;  %v3962_v62 = vpack.c.bf16 %v3484_v37, %v3483_v36  ;;  %v3467_v31 = vld [vmem:[%s7277_s5 + $0x50] sm:$0xff]  ;;  %v3485_v61 = vld [vmem:[%s7277_s5 + $0xe0] sm:$0xff] }
 0x2a2   : > { %v3267_v49 = vsel %vm1875_vm8, %v3199_v33, 0.0  ;;  %v3940_v63 = vpack.c.bf16 %v3292_v30, %v3289_v42  ;;  %v3964_v54 = vpack.c.bf16 %v3468_v21, %v3467_v31  ;;  %v3470_v33 = vld [vmem:[%s7277_s5 + $0x68] sm:$0xff]  ;;  %v3487_v0 = vld [vmem:[%s7277_s5 + $0xf0] sm:$0xff]  ;;  %v3505_v36 = vld [vmem:[%s7278_s6] sm:$0x1] }
 0x2a3   : > { %v3268_v47 = vadd.f32 %v3267_v49, %v3266_v6  ;;  %v3966_v6 = vpack.c.bf16 %v3486_v8, %v3485_v61  ;;  %v3968_v49 = vpack.c.bf16 %v3470_v33, %v3469_v25 }
 0x2a5   : > { %v3270_v50 = vadd.f32 %v3269_v43, %v3268_v47  ;;  %v3488_v47 = vld [vmem:[%s7277_s5 + $0xf8] sm:$0xff] }
 0x2a6   : > { %v3970_v43 = vpack.c.bf16 %v3488_v47, %v3487_v0 }
 0x2a7   : > { %v3272_v27 = vadd.f32 %v3271_v44, %v3270_v50  ;;  %v3471_v50 = vld [vmem:[%s7277_s5 + $0x70] sm:$0xff]  ;;  %v3472_v44 = vld [vmem:[%s7277_s5 + $0x78] sm:$0xff] }
 0x2a9   : > { %v3273_v39 = vrot.slane %v3272_v27, 4 }
 0x2ab   : > { %v3274_v14 = vadd.f32 %v3273_v39, %v3272_v27  ;;  %v3972_v27 = vpack.c.bf16 %v3472_v44, %v3471_v50  ;;  %v3297_v39 = vsub.s32 0, %v5950_v51 }
 0x2ad   : > { %v3275_v52 = vrot.slane %v3274_v14, 2 }
 0x2af   : > { %v3276_v23 = vadd.f32 %v3275_v52, %v3274_v14  ;;  %v3293_v14 = vld [vmem:[%s7276_s4] sm:$0x7]  ;;  %v3301_v52 = vsub.s32 1, %v5950_v51  ;;  %v3503_v51 = vld [vmem:[%s7277_s5 + $0x170] sm:$0xff] }
 0x2b0   : > { %v3306_v7 = vrot.slane %v3293_v14, %v3305_v22  ;;  %v3996_v56 = vpack.c.bf16 %v3504_v18, %v3503_v51 }
 0x2b1   : > { %v3277_v60 = vrot.slane %v3276_v23, 1 }
 0x2b3   : > { %v3278_v11 = vadd.f32 %v3277_v60, %v3276_v23  ;;  %v3298_v23 = vrot.slane %v3293_v14, %v3297_v39  ;;  %v3302_v60 = vrot.slane %v3293_v14, %v3301_v52 }
 0x2b5   : > { %v3280_v19 = vmul.f32 0.00390625, %v3278_v11 }
 0x2b7   : > { %3758 = vmatmul.mubr.msk.f32.vlgmr.msra.gmra.mrb[0].mxu1 %vm1875_vm8, %v3280_v19 }
 0x2b8   : > { %3938 = vmatpush3.bf16.msra.mxu1 %v3937_v1  ;;  %3890 = vmatprep.mubr.msk.f32.mxu1 %vm4977_vm12, %v4975_v46  ;;  %v3489_v1 = vld [vmem:[%s7277_s5 + $0x100] sm:$0xff] }
 0x2b9   : > { %3939 = vmatprep.subr.bf16.mxu1 %v4976_v29 }
 0x2bc   : > { %3941 = vmatpush3.bf16.msra.mxu1 %v3940_v63  ;;  %v3491_v63 = vld [vmem:[%s7277_s5 + $0x110] sm:$0xff] }
 0x2bd   : > { %3943 = vmatprep.subr.bf16.mxu1 %v3942_v58  ;;  %v3492_v58 = vld [vmem:[%s7277_s5 + $0x118] sm:$0xff] }
 0x2be   : > { %v3978_v38 = vpack.c.bf16 %v3492_v58, %v3491_v63 }
 0x2bf   : > { %3891 = vmatmul.mubr.msk.f32.vlgmr.msra.gmra.mrb[2].mxu1 %vm1875_vm8, %v3280_v19  ;;  %v3490_v19 = vld [vmem:[%s7277_s5 + $0x108] sm:$0xff] }
 0x2c0   : > { %3945 = vmatpush3.bf16.msra.mxu1 %v3944_v15  ;;  %v3975_v48 = vpack.c.bf16 %v3490_v19, %v3489_v1  ;;  %v3494_v15 = vld [vmem:[%s7277_s5 + $0x128] sm:$0xff] }
 0x2c1   : > { %3947 = vmatprep.subr.bf16.mxu1 %v3946_v2  ;;  %v3981_v2 = vpack.c.bf16 %v3494_v15, %v3493_v12 }
 0x2c4   : > { %3949 = vmatpush3.bf16.msra.mxu1 %v3948_v57  ;;  %v3987_v57 = vpack.c.bf16 %v3498_v45, %v3497_v20 }
 0x2c5   : > { %3951 = vmatprep.subr.bf16.mxu1 %v3950_v13  ;;  %v3499_v13 = vld [vmem:[%s7277_s5 + $0x150] sm:$0xff] }
 0x2c6   : > { %v3990_v40 = vpack.c.bf16 %v3500_v24, %v3499_v13 }
 0x2c8   : > { %3953 = vmatpush3.bf16.msra.mxu1 %v3952_v35  ;;  %v3502_v35 = vld [vmem:[%s7277_s5 + $0x168] sm:$0xff] }
 0x2c9   : > { %3955 = vmatprep.subr.bf16.mxu1 %v3954_v9  ;;  %v3993_v9 = vpack.c.bf16 %v3502_v35, %v3501_v59 }
 0x2cc   : > { %3957 = vmatpush3.bf16.msra.mxu1 %v3956_v28 }
 0x2cd   : > { %3959 = vmatprep.subr.bf16.mxu1 %v3958_v41 }
 0x2d0   : > { %3961 = vmatpush3.bf16.msra.mxu1 %v3960_v4 }
 0x2d1   : > { %3963 = vmatprep.subr.bf16.mxu1 %v3962_v62 }
 0x2d4   : > { %3965 = vmatpush3.bf16.msra.mxu1 %v3964_v54 }
 0x2d5   : > { %3967 = vmatprep.subr.bf16.mxu1 %v3966_v6 }
 0x2d8   : > { %3969 = vmatpush3.bf16.msra.mxu1 %v3968_v49 }
 0x2d9   : > { %3971 = vmatprep.subr.bf16.mxu1 %v3970_v43 }
 0x2dc   : > { %3973 = vmatpush3.bf16.msra.mxu1 %v3972_v27 }
 0x2dd   : > { %3974 = vmatprep.subr.bf16.mxu1 %v4976_v29 }
 0x38a   : > { %v3379_v10 = vpop.f32.mrb[0].mxu1 }
 0x38b   : > { %v3380_v16 = vadd.f32 %v3379_v10, %v3298_v23  ;;  %v3381_v11 = vpop.f32.mrb[1].mxu1 }
 0x38c   : > { %v3382_v42 = vadd.f32 %v3381_v11, %v3302_v60 }
 0x38d   : > { %v3454_v55 = vmax.f32 %v3380_v16, 0.0 }
 0x38e   : > { %v3455_v30 = vmax.f32 %v3382_v42, 0.0 }
 0x390   : > { %3570 = vmatprep.mubr.f32.mxu1 %v3455_v30 }
 0x391   : > { %3571 = vmatmul.mubr.f32.vlgmr.msra.gmra.mrb[4].mxu1 %v3454_v55 }
 0x392   : > { %v3450_v53 = vpop.f32.mrb[2].mxu1  ;;  %3976 = vmatpush3.bf16.msra.mxu1 %v3975_v48  ;;  %3925 = vmatprep.mubr.msk.f32.mxu1 %vm4977_vm12, %v4975_v46  ;;  %v3496_v46 = vld [vmem:[%s7277_s5 + $0x138] sm:$0xff] }
 0x393   : > { %v3892_v26 = vpop.f32.mrb[3].mxu1  ;;  %3977 = vmatprep.subr.bf16.mxu1 %v4976_v29  ;;  %v3984_v5 = vpack.c.bf16 %v3496_v46, %v3495_v32  ;;  %v3451_v17 = vadd.f32 %v3450_v53, %v3306_v7 }
 0x395   : > { %v3456_v28 = vmax.f32 %v3451_v17, 0.0 }
 0x396   : > { %3979 = vmatpush3.bf16.msra.mxu1 %v3978_v38 }
 0x397   : > { %3980 = vmatprep.subr.bf16.mxu1 %v4976_v29 }
 0x39a   : > { %3982 = vmatpush3.bf16.msra.mxu1 %v3981_v2 }
 0x39b   : > { %3983 = vmatprep.subr.bf16.mxu1 %v4976_v29 }
 0x39e   : > { %3985 = vmatpush3.bf16.msra.mxu1 %v3984_v5 }
 0x39f   : > { %3986 = vmatprep.subr.bf16.mxu1 %v4976_v29 }
 0x3a2   : > { %3988 = vmatpush3.bf16.msra.mxu1 %v3987_v57 }
 0x3a3   : > { %3989 = vmatprep.subr.bf16.mxu1 %v4976_v29 }
 0x3a6   : > { %3991 = vmatpush3.bf16.msra.mxu1 %v3990_v40 }
 0x3a7   : > { %3992 = vmatprep.subr.bf16.mxu1 %v4976_v29 }
 0x3aa   : > { %3994 = vmatpush3.bf16.msra.mxu1 %v3993_v9 }
 0x3ab   : > { %3995 = vmatprep.subr.bf16.mxu1 %v4976_v29 }
 0x3ae   : > { %3997 = vmatpush3.bf16.msra.mxu1 %v3996_v56 }
 0x3b1   : > { %3926 = vmatmul.mubr.f32.vlgmr.msra.gmra.mrb[6].mxu1 %v3456_v28 }
 0x464   : > { %v3820_v41 = vpop.f32.mrb[4].mxu1 }
 0x465   : > { %v3821_v34 = vpop.f32.mrb[5].mxu1 }
 0x466   : > { %v3822_v3 = vadd.f32 %v3821_v34, %v3820_v41 }
 0x468   : > { %v3573_v37 = vadd.f32 %v3822_v3, %v3505_v36 }
 0x484   : > { %v3642_v4 = vpop.f32.mrb[6].mxu1 }
 0x485   : > { %v3643_v62 = vadd.f32 %v3642_v4, %v3573_v37  ;;  %v3927_v31 = vpop.f32.mrb[7].mxu1 }
 0x487   : > { %3646 = vst [vmem:[%s274_s27] sm:$0x1] %v3643_v62 }
 0x488 PF: > { %s17_s24 = sadd.s32 1, %s4965_s24  }
 0x489   : > { %p14_p4 = scmp.ge.s32.totalorder %s17_s24, 4  }
 0x48b   :  { %16 = sbr.rel (!%p14_p4) target bundleno = 1 (0x1), region = 78 }

</bundles_post_ra>
